<compile_context>
chip_gen: v6e
topology: v6e:2x2x1
jax: 0.10.0
libtpu: 0.0.40
codegen_flags: <defaults>
</compile_context>

<pallas_src>
import functools

import jax
import jax.numpy as jnp
from jax.experimental import pallas as pl
from jax.experimental.pallas import tpu as pltpu


# -----------------------------------------------------------------------------
# small helpers
# -----------------------------------------------------------------------------
def _pick_tm(m, target=1024):
    """Largest row tile <= target that divides m (multiple of 8), else m."""
    if m <= target:
        return m
    t = (target // 8) * 8
    while t >= 8:
        if m % t == 0:
            return t
        t -= 8
    return m


def _pick_g(nm, target=16):
    """Largest mode-block <= target that divides nm."""
    g = min(nm, target)
    while g > 1 and nm % g != 0:
        g -= 1
    return max(g, 1)


def _block_diag(w, pack):
    """(Cin, Cout) -> (pack*Cin, pack*Cout) block-diagonal (pack copies of W)."""
    return jnp.kron(jnp.eye(pack, dtype=jnp.float32), w.astype(jnp.float32))


def _tile_vec(v, pack):
    return jnp.tile(v.astype(jnp.float32), pack)


# -----------------------------------------------------------------------------
# Pallas kernel 1: fused pointwise linear (no residual)
#   out = act( x @ W' + shift' )          [W' = W*scale, shift' = b*scale+shift]
# -----------------------------------------------------------------------------
def _pw_kernel(x_ref, w_ref, sh_ref, o_ref, *, relu):
    acc = jnp.dot(x_ref[...], w_ref[...], preferred_element_type=jnp.float32)
    acc = acc + sh_ref[...]
    if relu:
        acc = jnp.maximum(acc, 0.0)
    o_ref[...] = acc


# -----------------------------------------------------------------------------
# Pallas kernel 2: fused pointwise linear + residual + BN (+ReLU)
#   out = act( x @ W' + r*scale + shift' )
# -----------------------------------------------------------------------------
def _pw_res_kernel(x_ref, w_ref, r_ref, sc_ref, sh_ref, o_ref, *, relu):
    acc = jnp.dot(x_ref[...], w_ref[...], preferred_element_type=jnp.float32)
    acc = acc + r_ref[...] * sc_ref[...] + sh_ref[...]
    if relu:
        acc = jnp.maximum(acc, 0.0)
    o_ref[...] = acc


def fused_pointwise(x, w, shift, residual=None, scale=None, relu=False,
                    tm_target=1024):
    """x: (M, K) f32, w: (K, N) f32, shift: (N,) f32 -> (M, N) f32."""
    M, K = x.shape
    N = w.shape[1]
    tm = _pick_tm(M, tm_target)
    grid = (M // tm,)
    sh2 = shift.reshape(1, N).astype(jnp.float32)
    cp = pltpu.CompilerParams(dimension_semantics=("parallel",))

    if residual is None:
        return pl.pallas_call(
            functools.partial(_pw_kernel, relu=relu),
            out_shape=jax.ShapeDtypeStruct((M, N), jnp.float32),
            grid=grid,
            in_specs=[
                pl.BlockSpec((tm, K), lambda i: (i, 0)),   # x tile
                pl.BlockSpec((K, N), lambda i: (0, 0)),    # weight (resident)
                pl.BlockSpec((1, N), lambda i: (0, 0)),    # folded shift
            ],
            out_specs=pl.BlockSpec((tm, N), lambda i: (i, 0)),
            compiler_params=cp,
        )(x.astype(jnp.float32), w.astype(jnp.float32), sh2)

    sc2 = scale.reshape(1, N).astype(jnp.float32)
    return pl.pallas_call(
        functools.partial(_pw_res_kernel, relu=relu),
        out_shape=jax.ShapeDtypeStruct((M, N), jnp.float32),
        grid=grid,
        in_specs=[
            pl.BlockSpec((tm, K), lambda i: (i, 0)),   # x tile
            pl.BlockSpec((K, N), lambda i: (0, 0)),    # weight (resident)
            pl.BlockSpec((tm, N), lambda i: (i, 0)),   # residual tile
            pl.BlockSpec((1, N), lambda i: (0, 0)),    # bn scale
            pl.BlockSpec((1, N), lambda i: (0, 0)),    # folded shift
        ],
        out_specs=pl.BlockSpec((tm, N), lambda i: (i, 0)),
        compiler_params=cp,
    )(x.astype(jnp.float32), w.astype(jnp.float32),
      residual.astype(jnp.float32), sc2, sh2)


# -----------------------------------------------------------------------------
# Pallas kernel 3: fused tail  (w3 + residual + BN3) -> fc1 -> ReLU -> fc2
#   keeps the (tm, 4*128) fc1 activation in VMEM, writes only (tm, PACK) output
# -----------------------------------------------------------------------------
def _head_kernel(x_ref, r_ref, w3_ref, sc_ref, sh_ref, w1_ref, b1_ref,
                 w2_ref, b2_ref, o_ref):
    h = jnp.dot(x_ref[...], w3_ref[...], preferred_element_type=jnp.float32)
    h = h + r_ref[...] * sc_ref[...] + sh_ref[...]            # bn3 (no relu)
    h = jnp.dot(h, w1_ref[...], preferred_element_type=jnp.float32) + b1_ref[...]
    h = jnp.maximum(h, 0.0)                                   # relu after fc1
    o_ref[...] = (jnp.dot(h, w2_ref[...], preferred_element_type=jnp.float32)
                  + b2_ref[...])


def fused_head(x, residual, w3, scale, shift3, w1, b1, w2, b2, tm_target=1024):
    M, K = x.shape
    H = w1.shape[1]
    N = w2.shape[1]
    tm = _pick_tm(M, tm_target)
    grid = (M // tm,)
    return pl.pallas_call(
        _head_kernel,
        out_shape=jax.ShapeDtypeStruct((M, N), jnp.float32),
        grid=grid,
        in_specs=[
            pl.BlockSpec((tm, K), lambda i: (i, 0)),   # x tile
            pl.BlockSpec((tm, K), lambda i: (i, 0)),   # residual tile
            pl.BlockSpec((K, K), lambda i: (0, 0)),    # w3' (scale folded)
            pl.BlockSpec((1, K), lambda i: (0, 0)),    # bn scale (for residual)
            pl.BlockSpec((1, K), lambda i: (0, 0)),    # folded shift3
            pl.BlockSpec((K, H), lambda i: (0, 0)),    # fc1 (block-diag)
            pl.BlockSpec((1, H), lambda i: (0, 0)),    # fc1 bias
            pl.BlockSpec((H, N), lambda i: (0, 0)),    # fc2 (block-diag)
            pl.BlockSpec((1, N), lambda i: (0, 0)),    # fc2 bias
        ],
        out_specs=pl.BlockSpec((tm, N), lambda i: (i, 0)),
        compiler_params=pltpu.CompilerParams(dimension_semantics=("parallel",)),
    )(x.astype(jnp.float32), residual.astype(jnp.float32),
      w3.astype(jnp.float32), scale.reshape(1, K).astype(jnp.float32),
      shift3.reshape(1, K).astype(jnp.float32), w1.astype(jnp.float32),
      b1.reshape(1, H).astype(jnp.float32), w2.astype(jnp.float32),
      b2.reshape(1, N).astype(jnp.float32))


# -----------------------------------------------------------------------------
# Pallas kernel 4: complex mode mixing for SpectralConv2d
#   out[m, b, o] = sum_i x[m, b, i] * w[m, i, o]   (complex, Karatsuba 3-matmul)
# Both frequency bands are merged; G modes per grid step (static unrolled loop).
# -----------------------------------------------------------------------------
def _modemix_kernel(xr_ref, xi_ref, wr_ref, wi_ref, or_ref, oi_ref, *, gm):
    for j in range(gm):                      # static, unrolled over modes
        ar = xr_ref[j]                       # (B, Cin)
        ai = xi_ref[j]
        br = wr_ref[j]                       # (Cin, Cout)
        bi = wi_ref[j]
        rr = jnp.dot(ar, br, preferred_element_type=jnp.float32)
        ii = jnp.dot(ai, bi, preferred_element_type=jnp.float32)
        cc = jnp.dot(ar + ai, br + bi, preferred_element_type=jnp.float32)
        or_ref[j] = rr - ii
        oi_ref[j] = cc - rr - ii


def _mode_mix(xr, xi, wr, wi):
    """xr/xi: (NM, B, Cin) f32; wr/wi: (NM, Cin, Cout) f32 -> 2x (NM, B, Cout)."""
    NM, B, Cin = xr.shape
    Cout = wr.shape[-1]
    G = _pick_g(NM)
    grid = (NM // G,)
    return pl.pallas_call(
        functools.partial(_modemix_kernel, gm=G),
        out_shape=(jax.ShapeDtypeStruct((NM, B, Cout), jnp.float32),
                   jax.ShapeDtypeStruct((NM, B, Cout), jnp.float32)),
        grid=grid,
        in_specs=[
            pl.BlockSpec((G, B, Cin), lambda g: (g, 0, 0)),
            pl.BlockSpec((G, B, Cin), lambda g: (g, 0, 0)),
            pl.BlockSpec((G, Cin, Cout), lambda g: (g, 0, 0)),
            pl.BlockSpec((G, Cin, Cout), lambda g: (g, 0, 0)),
        ],
        out_specs=(
            pl.BlockSpec((G, B, Cout), lambda g: (g, 0, 0)),
            pl.BlockSpec((G, B, Cout), lambda g: (g, 0, 0)),
        ),
        compiler_params=pltpu.CompilerParams(dimension_semantics=("parallel",)),
    )(xr, xi, wr, wi)


# -----------------------------------------------------------------------------
# SpectralConv2d_fast (channels-last): FFT glue + Pallas mode-mixing kernel
# -----------------------------------------------------------------------------
def spectral_conv2d(h, w1_r, w1_i, w2_r, w2_i, m1, m2):
    """h: (B, X, Y, C) f32. Weights: (m1, m2, Cin, Cout) real/imag."""
    B, X, Y, C = h.shape
    Cout = w1_r.shape[-1]
    NM = 2 * m1 * m2

    x_ft = jnp.fft.rfft2(h, axes=(1, 2))                 # (B, X, Yf, C) c64
    Yf = x_ft.shape[2]

    # retained modes of both bands, merged into one kernel call
    x_sel = jnp.concatenate(
        [x_ft[:, :m1, :m2, :], x_ft[:, X - m1:, :m2, :]], axis=1)  # (B,2m1,m2,C)
    x_sel = x_sel.transpose(1, 2, 0, 3).reshape(NM, B, C)  # tiny (modes only)
    xr = jnp.real(x_sel).astype(jnp.float32)
    xi = jnp.imag(x_sel).astype(jnp.float32)

    wr = jnp.concatenate([w1_r, w2_r], axis=0).reshape(NM, C, Cout).astype(jnp.float32)
    wi = jnp.concatenate([w1_i, w2_i], axis=0).reshape(NM, C, Cout).astype(jnp.float32)

    out_r, out_i = _mode_mix(xr, xi, wr, wi)              # (NM, B, Cout) each
    out_c = jax.lax.complex(out_r, out_i).reshape(2 * m1, m2, B, Cout)
    out_c = out_c.transpose(2, 0, 1, 3)                   # (B, 2m1, m2, Cout)

    # assemble full spectrum via pad/concat (no zeros + scatter)
    pad_y = Yf - m2
    top = jnp.pad(out_c[:, :m1], ((0, 0), (0, 0), (0, pad_y), (0, 0)))
    bot = jnp.pad(out_c[:, m1:], ((0, 0), (0, 0), (0, pad_y), (0, 0)))
    mid = jnp.zeros((B, X - 2 * m1, Yf, Cout), dtype=top.dtype)
    out_ft = jnp.concatenate([top, mid, bot], axis=1)     # (B, X, Yf, Cout)

    return jnp.fft.irfft2(out_ft, s=(X, Y), axes=(1, 2)).astype(jnp.float32)


# -----------------------------------------------------------------------------
# FNO2d forward (Pallas)
# -----------------------------------------------------------------------------
def fno2d_forward(x, params, modes1, modes2, width):
    """x: (B, X, Y, 10) f32 -> (B, X, Y, 1) f32."""
    B, X, Y, _ = x.shape
    M = B * X * Y
    pack = 4 if M % 4 == 0 else (2 if M % 2 == 0 else 1)
    Mq = M // pack

    # get_grid + concat (glue)
    gridx = jnp.broadcast_to(
        jnp.linspace(0.0, 1.0, X, dtype=jnp.float32).reshape(1, X, 1, 1), (B, X, Y, 1))
    gridy = jnp.broadcast_to(
        jnp.linspace(0.0, 1.0, Y, dtype=jnp.float32).reshape(1, 1, Y, 1), (B, X, Y, 1))
    xin = jnp.concatenate([x, gridx, gridy], axis=-1)     # (B, X, Y, 12)

    # fc0 (lane-packed pointwise, Pallas)
    w_fc0 = _block_diag(params["fc0_w"], pack)            # (12p, Wp)
    b_fc0 = _tile_vec(params["fc0_b"], pack)
    h_p = fused_pointwise(xin.reshape(Mq, pack * 12), w_fc0, b_fc0, relu=False)
    hC = h_p.reshape(B, X, Y, width)

    # Fourier layers 0..2: spectral conv + (w_l + residual + BN + ReLU)
    for l in range(3):
        x1 = spectral_conv2d(
            hC,
            params[f"conv{l}_w1r"], params[f"conv{l}_w1i"],
            params[f"conv{l}_w2r"], params[f"conv{l}_w2i"],
            modes1, modes2)
        scale_t = _tile_vec(params[f"bn{l}_scale"], pack)
        shift_t = _tile_vec(params[f"bn{l}_shift"], pack)
        w_bd = _block_diag(params[f"w{l}_w"], pack) * scale_t[None, :]
        sh_f = _tile_vec(params[f"w{l}_b"], pack) * scale_t + shift_t
        h_p = fused_pointwise(hC.reshape(Mq, pack * width), w_bd, sh_f,
                              residual=x1.reshape(Mq, pack * width),
                              scale=scale_t, relu=True)
        hC = h_p.reshape(B, X, Y, width)

    # Fourier layer 3 fused with the projection head (w3+BN3 -> fc1 -> ReLU -> fc2)
    x1 = spectral_conv2d(
        hC,
        params["conv3_w1r"], params["conv3_w1i"],
        params["conv3_w2r"], params["conv3_w2i"],
        modes1, modes2)
    scale_t = _tile_vec(params["bn3_scale"], pack)
    shift_t = _tile_vec(params["bn3_shift"], pack)
    w3_bd = _block_diag(params["w3_w"], pack) * scale_t[None, :]
    sh3_f = _tile_vec(params["w3_b"], pack) * scale_t + shift_t
    w1_bd = _block_diag(params["fc1_w"], pack)            # (Wp, 128p)
    b1_t = _tile_vec(params["fc1_b"], pack)
    w2_bd = _block_diag(params["fc2_w"], pack)            # (128p, p)
    b2_t = _tile_vec(params["fc2_b"], pack)

    out = fused_head(hC.reshape(Mq, pack * width), x1.reshape(Mq, pack * width),
                     w3_bd, scale_t, sh3_f, w1_bd, b1_t, w2_bd, b2_t)  # (Mq, p)
    return out.reshape(B, X, Y, 1)


# -----------------------------------------------------------------------------
# Pure-JAX reference (mirrors the PyTorch forward, eval-mode BN) for validation
# -----------------------------------------------------------------------------
def fno2d_reference(x, params, modes1, modes2, width):
    B, X, Y, _ = x.shape
    gridx = jnp.broadcast_to(
        jnp.linspace(0.0, 1.0, X, dtype=jnp.float32).reshape(1, X, 1, 1), (B, X, Y, 1))
    gridy = jnp.broadcast_to(
        jnp.linspace(0.0, 1.0, Y, dtype=jnp.float32).reshape(1, 1, Y, 1), (B, X, Y, 1))
    h = jnp.concatenate([x, gridx, gridy], axis=-1) @ params["fc0_w"] + params["fc0_b"]
    for l in range(4):
        x_ft = jnp.fft.rfft2(h, axes=(1, 2))
        w1 = params[f"conv{l}_w1r"] + 1j * params[f"conv{l}_w1i"]
        w2 = params[f"conv{l}_w2r"] + 1j * params[f"conv{l}_w2i"]
        out_ft = jnp.zeros(x_ft.shape[:3] + (width,), jnp.complex64)
        out_ft = out_ft.at[:, :modes1, :modes2, :].set(
            jnp.einsum('bxyi,xyio->bxyo', x_ft[:, :modes1, :modes2, :], w1))
        out_ft = out_ft.at[:, X - modes1:, :modes2, :].set(
            jnp.einsum('bxyi,xyio->bxyo', x_ft[:, X - modes1:, :modes2, :], w2))
        x1 = jnp.fft.irfft2(out_ft, s=(X, Y), axes=(1, 2)).astype(jnp.float32)
        x2 = h @ params[f"w{l}_w"] + params[f"w{l}_b"]
        h = (x1 + x2) * params[f"bn{l}_scale"] + params[f"bn{l}_shift"]
        if l < 3:
            h = jnp.maximum(h, 0.0)
    h = jnp.maximum(h @ params["fc1_w"] + params["fc1_b"], 0.0)
    return h @ params["fc2_w"] + params["fc2_b"]


# -----------------------------------------------------------------------------
# Deterministic parameter initialization (synthetic; mirrors the module shapes)
# -----------------------------------------------------------------------------
def init_params(key, modes1, modes2, width):
    params = {}
    keys = iter(jax.random.split(key, 64))

    def uni(shape, lo=-0.1, hi=0.1):
        return jax.random.uniform(next(keys), shape, dtype=jnp.float32,
                                  minval=lo, maxval=hi)

    # fc0: Linear(12, width) -> stored transposed (in, out)
    params["fc0_w"] = uni((12, width))
    params["fc0_b"] = uni((width,))

    # SpectralConv2d weights: torch (in, out, m1, m2) cfloat, scale*rand.
    # stored here as (m1, m2, in, out) real/imag.
    scale = 1.0 / (width * width)
    for l in range(4):
        for wname in ("w1", "w2"):
            params[f"conv{l}_{wname}r"] = scale * jax.random.uniform(
                next(keys), (modes1, modes2, width, width), dtype=jnp.float32)
            params[f"conv{l}_{wname}i"] = scale * jax.random.uniform(
                next(keys), (modes1, modes2, width, width), dtype=jnp.float32)

    # w0..w3: Conv1d(width, width, 1) -> stored as (in, out) matmul weight
    for l in range(4):
        params[f"w{l}_w"] = uni((width, width))
        params[f"w{l}_b"] = uni((width,))

    # BatchNorm2d(width), eval mode, default params.
    eps = 1e-5
    bn_scale = jnp.ones((width,), jnp.float32) / jnp.sqrt(1.0 + eps)
    bn_shift = jnp.zeros((width,), jnp.float32)
    for l in range(4):
        params[f"bn{l}_scale"] = bn_scale
        params[f"bn{l}_shift"] = bn_shift

    # fc1: Linear(width, 128), fc2: Linear(128, 1)
    params["fc1_w"] = uni((width, 128))
    params["fc1_b"] = uni((128,))
    params["fc2_w"] = uni((128, 1))
    params["fc2_b"] = uni((1,))
    return params


if __name__ == "__main__":
    # Small shapes consistent with the module: input (B, X, Y, 10), +2 grid ch.
    B, X, Y = 2, 16, 16
    modes1, modes2, width = 4, 4, 32

    key = jax.random.PRNGKey(0)
    k_in, k_par = jax.random.split(key)
    x = jax.random.uniform(k_in, (B, X, Y, 10), dtype=jnp.float32)
    params = init_params(k_par, modes1, modes2, width)

    fwd = jax.jit(functools.partial(fno2d_forward, modes1=modes1, modes2=modes2,
                                    width=width))
    out = jax.block_until_ready(fwd(x, params))

    assert out.shape == (B, X, Y, 1), out.shape
    assert bool(jnp.all(jnp.isfinite(out)))

    # numerical check against a pure-JAX transcription of the PyTorch forward
    with jax.default_matmul_precision("float32"):
        ref = fno2d_reference(x, params, modes1, modes2, width)
    max_err = float(jnp.max(jnp.abs(out - ref)))
    assert max_err < 2e-3, f"max abs error vs reference: {max_err}"

    print("KERNEL_OK")
</pallas_src>

<mosaic_0001>
module attributes {stable_mosaic.version = 11 : i64} {
  func.func @_pw_kernel(%arg0: i32, %arg1: memref<128x48xf32, #tpu.memory_space<vmem>>, %arg2: memref<48x128xf32, #tpu.memory_space<vmem>>, %arg3: memref<1x128xf32, #tpu.memory_space<vmem>>, %arg4: memref<128x128xf32, #tpu.memory_space<vmem>>) attributes {dimension_semantics = [#tpu.dimension_semantics<parallel>], iteration_bounds = array<i64: 1>, scalar_prefetch = 0 : i64, scratch_operands = 0 : i64, tpu.core_type = #tpu.core_type<tc>, window_params = [{transform_indices = @transform_0, window_bounds = array<i64: 128, 48>}, {pipeline_mode = #tpu.pipeline_mode<synchronous>, transform_indices = @transform_1, window_bounds = array<i64: 48, 128>}, {pipeline_mode = #tpu.pipeline_mode<synchronous>, transform_indices = @transform_2, window_bounds = array<i64: 1, 128>}, {transform_indices = @transform_3, window_bounds = array<i64: 128, 128>}]} {
    %c0 = arith.constant 0 : index
    %c0_0 = arith.constant 0 : index
    %0 = vector.load %arg1[%c0, %c0_0] : memref<128x48xf32, #tpu.memory_space<vmem>>, vector<128x48xf32>
    %c0_1 = arith.constant 0 : index
    %c0_2 = arith.constant 0 : index
    %1 = vector.load %arg2[%c0_1, %c0_2] : memref<48x128xf32, #tpu.memory_space<vmem>>, vector<48x128xf32>
    %cst = arith.constant dense<0.000000e+00> : vector<128x128xf32>
    %2 = tpu.matmul %0, %1, %cst {dimension_numbers = #tpu.dot_dimension_numbers<[1], [0], [0], [1], [0, 0, 1, 1], [], []>} : vector<128x48xf32>, vector<48x128xf32>, vector<128x128xf32> -> vector<128x128xf32>
    %c0_3 = arith.constant 0 : index
    %c0_4 = arith.constant 0 : index
    %3 = vector.load %arg3[%c0_3, %c0_4] : memref<1x128xf32, #tpu.memory_space<vmem>>, vector<1x128xf32>
    %4 = vector.broadcast %3 : vector<1x128xf32> to vector<128x128xf32>
    %5 = arith.addf %2, %4 : vector<128x128xf32>
    %c0_5 = arith.constant 0 : index
    %c0_6 = arith.constant 0 : index
    %6 = vector.load %arg4[%c0_5, %c0_6] : memref<128x128xf32, #tpu.memory_space<vmem>>, vector<128x128xf32>
    tpu.vector_store %arg4[%c0_5, %c0_6], %5 {strides = array<i32>} : memref<128x128xf32, #tpu.memory_space<vmem>>, vector<128x128xf32>,
    return
  }
  func.func @transform_0(%arg0: i32) -> (i32, i32) {
    %c0_i32 = arith.constant 0 : i32
    %c0_i32_0 = arith.constant 0 : i32
    return %arg0, %c0_i32 : i32, i32
  }
  func.func @transform_1(%arg0: i32) -> (i32, i32) {
    %c0_i32 = arith.constant 0 : i32
    %c0_i32_0 = arith.constant 0 : i32
    %c0_i32_1 = arith.constant 0 : i32
    return %c0_i32, %c0_i32_0 : i32, i32
  }
  func.func @transform_2(%arg0: i32) -> (i32, i32) {
    %c0_i32 = arith.constant 0 : i32
    %c0_i32_0 = arith.constant 0 : i32
    %c0_i32_1 = arith.constant 0 : i32
    return %c0_i32, %c0_i32_0 : i32, i32
  }
  func.func @transform_3(%arg0: i32) -> (i32, i32) {
    %c0_i32 = arith.constant 0 : i32
    %c0_i32_0 = arith.constant 0 : i32
    return %arg0, %c0_i32 : i32, i32
  }
}

module attributes {stable_mosaic.version = 11 : i64} {
  func.func @_modemix_kernel(%arg0: i32, %arg1: memref<16x2x32xf32, #tpu.memory_space<vmem>>, %arg2: memref<16x2x32xf32, #tpu.memory_space<vmem>>, %arg3: memref<16x32x32xf32, #tpu.memory_space<vmem>>, %arg4: memref<16x32x32xf32, #tpu.memory_space<vmem>>, %arg5: memref<16x2x32xf32, #tpu.memory_space<vmem>>, %arg6: memref<16x2x32xf32, #tpu.memory_space<vmem>>) attributes {dimension_semantics = [#tpu.dimension_semantics<parallel>], iteration_bounds = array<i64: 2>, scalar_prefetch = 0 : i64, scratch_operands = 0 : i64, tpu.core_type = #tpu.core_type<tc>, window_params = [{transform_indices = @transform_0, window_bounds = array<i64: 16, 2, 32>}, {transform_indices = @transform_1, window_bounds = array<i64: 16, 2, 32>}, {transform_indices = @transform_2, window_bounds = array<i64: 16, 32, 32>}, {transform_indices = @transform_3, window_bounds = array<i64: 16, 32, 32>}, {transform_indices = @transform_4, window_bounds = array<i64: 16, 2, 32>}, {transform_indices = @transform_5, window_bounds = array<i64: 16, 2, 32>}]} {
    %c0 = arith.constant 0 : index
    %c0_0 = arith.constant 0 : index
    %c0_1 = arith.constant 0 : index
    %0 = vector.load %arg1[%c0, %c0_0, %c0_1] : memref<16x2x32xf32, #tpu.memory_space<vmem>>, vector<1x2x32xf32>
    %1 = vector.shape_cast %0 : vector<1x2x32xf32> to vector<2x32xf32>
    %c0_2 = arith.constant 0 : index
    %c0_3 = arith.constant 0 : index
    %c0_4 = arith.constant 0 : index
    %2 = vector.load %arg2[%c0_2, %c0_3, %c0_4] : memref<16x2x32xf32, #tpu.memory_space<vmem>>, vector<1x2x32xf32>
    %3 = vector.shape_cast %2 : vector<1x2x32xf32> to vector<2x32xf32>
    %c0_5 = arith.constant 0 : index
    %c0_6 = arith.constant 0 : index
    %c0_7 = arith.constant 0 : index
    %4 = vector.load %arg3[%c0_5, %c0_6, %c0_7] : memref<16x32x32xf32, #tpu.memory_space<vmem>>, vector<1x32x32xf32>
    %5 = vector.shape_cast %4 : vector<1x32x32xf32> to vector<32x32xf32>
    %c0_8 = arith.constant 0 : index
    %c0_9 = arith.constant 0 : index
    %c0_10 = arith.constant 0 : index
    %6 = vector.load %arg4[%c0_8, %c0_9, %c0_10] : memref<16x32x32xf32, #tpu.memory_space<vmem>>, vector<1x32x32xf32>
    %7 = vector.shape_cast %6 : vector<1x32x32xf32> to vector<32x32xf32>
    %cst = arith.constant dense<0.000000e+00> : vector<2x32xf32>
    %8 = tpu.matmul %1, %5, %cst {dimension_numbers = #tpu.dot_dimension_numbers<[1], [0], [0], [1], [0, 0, 1, 1], [], []>} : vector<2x32xf32>, vector<32x32xf32>, vector<2x32xf32> -> vector<2x32xf32>
    %cst_11 = arith.constant dense<0.000000e+00> : vector<2x32xf32>
    %9 = tpu.matmul %3, %7, %cst_11 {dimension_numbers = #tpu.dot_dimension_numbers<[1], [0], [0], [1], [0, 0, 1, 1], [], []>} : vector<2x32xf32>, vector<32x32xf32>, vector<2x32xf32> -> vector<2x32xf32>
    %10 = arith.addf %1, %3 : vector<2x32xf32>
    %11 = arith.addf %5, %7 : vector<32x32xf32>
    %cst_12 = arith.constant dense<0.000000e+00> : vector<2x32xf32>
    %12 = tpu.matmul %10, %11, %cst_12 {dimension_numbers = #tpu.dot_dimension_numbers<[1], [0], [0], [1], [0, 0, 1, 1], [], []>} : vector<2x32xf32>, vector<32x32xf32>, vector<2x32xf32> -> vector<2x32xf32>
    %13 = arith.subf %8, %9 : vector<2x32xf32>
    %c0_13 = arith.constant 0 : index
    %c0_14 = arith.constant 0 : index
    %c0_15 = arith.constant 0 : index
    %14 = vector.load %arg5[%c0_13, %c0_14, %c0_15] : memref<16x2x32xf32, #tpu.memory_space<vmem>>, vector<1x2x32xf32>
    %15 = vector.shape_cast %14 : vector<1x2x32xf32> to vector<2x32xf32>
    %16 = vector.shape_cast %13 : vector<2x32xf32> to vector<1x2x32xf32>
    tpu.vector_store %arg5[%c0_13, %c0_14, %c0_15], %16 {strides = array<i32>} : memref<16x2x32xf32, #tpu.memory_space<vmem>>, vector<1x2x32xf32>,
    %17 = arith.subf %12, %8 : vector<2x32xf32>
    %18 = arith.subf %17, %9 : vector<2x32xf32>
    %c0_16 = arith.constant 0 : index
    %c0_17 = arith.constant 0 : index
    %c0_18 = arith.constant 0 : index
    %19 = vector.load %arg6[%c0_16, %c0_17, %c0_18] : memref<16x2x32xf32, #tpu.memory_space<vmem>>, vector<1x2x32xf32>
    %20 = vector.shape_cast %19 : vector<1x2x32xf32> to vector<2x32xf32>
    %21 = vector.shape_cast %18 : vector<2x32xf32> to vector<1x2x32xf32>
    tpu.vector_store %arg6[%c0_16, %c0_17, %c0_18], %21 {strides = array<i32>} : memref<16x2x32xf32, #tpu.memory_space<vmem>>, vector<1x2x32xf32>,
    %c1 = arith.constant 1 : index
    %c0_19 = arith.constant 0 : index
    %c0_20 = arith.constant 0 : index
    %22 = vector.load %arg1[%c1, %c0_19, %c0_20] : memref<16x2x32xf32, #tpu.memory_space<vmem>>, vector<1x2x32xf32>
    %23 = vector.shape_cast %22 : vector<1x2x32xf32> to vector<2x32xf32>
    %c1_21 = arith.constant 1 : index
    %c0_22 = arith.constant 0 : index
    %c0_23 = arith.constant 0 : index
    %24 = vector.load %arg2[%c1_21, %c0_22, %c0_23] : memref<16x2x32xf32, #tpu.memory_space<vmem>>, vector<1x2x32xf32>
    %25 = vector.shape_cast %24 : vector<1x2x32xf32> to vector<2x32xf32>
    %c1_24 = arith.constant 1 : index
    %c0_25 = arith.constant 0 : index
    %c0_26 = arith.constant 0 : index
    %26 = vector.load %arg3[%c1_24, %c0_25, %c0_26] : memref<16x32x32xf32, #tpu.memory_space<vmem>>, vector<1x32x32xf32>
    %27 = vector.shape_cast %26 : vector<1x32x32xf32> to vector<32x32xf32>
    %c1_27 = arith.constant 1 : index
    %c0_28 = arith.constant 0 : index
    %c0_29 = arith.constant 0 : index
    %28 = vector.load %arg4[%c1_27, %c0_28, %c0_29] : memref<16x32x32xf32, #tpu.memory_space<vmem>>, vector<1x32x32xf32>
    %29 = vector.shape_cast %28 : vector<1x32x32xf32> to vector<32x32xf32>
    %cst_30 = arith.constant dense<0.000000e+00> : vector<2x32xf32>
    %30 = tpu.matmul %23, %27, %cst_30 {dimension_numbers = #tpu.dot_dimension_numbers<[1], [0], [0], [1], [0, 0, 1, 1], [], []>} : vector<2x32xf32>, vector<32x32xf32>, vector<2x32xf32> -> vector<2x32xf32>
    %cst_31 = arith.constant dense<0.000000e+00> : vector<2x32xf32>
    %31 = tpu.matmul %25, %29, %cst_31 {dimension_numbers = #tpu.dot_dimension_numbers<[1], [0], [0], [1], [0, 0, 1, 1], [], []>} : vector<2x32xf32>, vector<32x32xf32>, vector<2x32xf32> -> vector<2x32xf32>
    %32 = arith.addf %23, %25 : vector<2x32xf32>
    %33 = arith.addf %27, %29 : vector<32x32xf32>
    %cst_32 = arith.constant dense<0.000000e+00> : vector<2x32xf32>
    %34 = tpu.matmul %32, %33, %cst_32 {dimension_numbers = #tpu.dot_dimension_numbers<[1], [0], [0], [1], [0, 0, 1, 1], [], []>} : vector<2x32xf32>, vector<32x32xf32>, vector<2x32xf32> -> vector<2x32xf32>
    %35 = arith.subf %30, %31 : vector<2x32xf32>
    %c1_33 = arith.constant 1 : index
    %c0_34 = arith.constant 0 : index
    %c0_35 = arith.constant 0 : index
    %36 = vector.load %arg5[%c1_33, %c0_34, %c0_35] : memref<16x2x32xf32, #tpu.memory_space<vmem>>, vector<1x2x32xf32>
    %37 = vector.shape_cast %36 : vector<1x2x32xf32> to vector<2x32xf32>
    %38 = vector.shape_cast %35 : vector<2x32xf32> to vector<1x2x32xf32>
    tpu.vector_store %arg5[%c1_33, %c0_34, %c0_35], %38 {strides = array<i32>} : memref<16x2x32xf32, #tpu.memory_space<vmem>>, vector<1x2x32xf32>,
    %39 = arith.subf %34, %30 : vector<2x32xf32>
    %40 = arith.subf %39, %31 : vector<2x32xf32>
    %c1_36 = arith.constant 1 : index
    %c0_37 = arith.constant 0 : index
    %c0_38 = arith.constant 0 : index
    %41 = vector.load %arg6[%c1_36, %c0_37, %c0_38] : memref<16x2x32xf32, #tpu.memory_space<vmem>>, vector<1x2x32xf32>
    %42 = vector.shape_cast %41 : vector<1x2x32xf32> to vector<2x32xf32>
    %43 = vector.shape_cast %40 : vector<2x32xf32> to vector<1x2x32xf32>
    tpu.vector_store %arg6[%c1_36, %c0_37, %c0_38], %43 {strides = array<i32>} : memref<16x2x32xf32, #tpu.memory_space<vmem>>, vector<1x2x32xf32>,
    %c2 = arith.constant 2 : index
    %c0_39 = arith.constant 0 : index
    %c0_40 = arith.constant 0 : index
    %44 = vector.load %arg1[%c2, %c0_39, %c0_40] : memref<16x2x32xf32, #tpu.memory_space<vmem>>, vector<1x2x32xf32>
    %45 = vector.shape_cast %44 : vector<1x2x32xf32> to vector<2x32xf32>
    %c2_41 = arith.constant 2 : index
    %c0_42 = arith.constant 0 : index
    %c0_43 = arith.constant 0 : index
    %46 = vector.load %arg2[%c2_41, %c0_42, %c0_43] : memref<16x2x32xf32, #tpu.memory_space<vmem>>, vector<1x2x32xf32>
    %47 = vector.shape_cast %46 : vector<1x2x32xf32> to vector<2x32xf32>
    %c2_44 = arith.constant 2 : index
    %c0_45 = arith.constant 0 : index
    %c0_46 = arith.constant 0 : index
    %48 = vector.load %arg3[%c2_44, %c0_45, %c0_46] : memref<16x32x32xf32, #tpu.memory_space<vmem>>, vector<1x32x32xf32>
    %49 = vector.shape_cast %48 : vector<1x32x32xf32> to vector<32x32xf32>
    %c2_47 = arith.constant 2 : index
    %c0_48 = arith.constant 0 : index
    %c0_49 = arith.constant 0 : index
    %50 = vector.load %arg4[%c2_47, %c0_48, %c0_49] : memref<16x32x32xf32, #tpu.memory_space<vmem>>, vector<1x32x32xf32>
    %51 = vector.shape_cast %50 : vector<1x32x32xf32> to vector<32x32xf32>
    %cst_50 = arith.constant dense<0.000000e+00> : vector<2x32xf32>
    %52 = tpu.matmul %45, %49, %cst_50 {dimension_numbers = #tpu.dot_dimension_numbers<[1], [0], [0], [1], [0, 0, 1, 1], [], []>} : vector<2x32xf32>, vector<32x32xf32>, vector<2x32xf32> -> vector<2x32xf32>
    %cst_51 = arith.constant dense<0.000000e+00> : vector<2x32xf32>
    %53 = tpu.matmul %47, %51, %cst_51 {dimension_numbers = #tpu.dot_dimension_numbers<[1], [0], [0], [1], [0, 0, 1, 1], [], []>} : vector<2x32xf32>, vector<32x32xf32>, vector<2x32xf32> -> vector<2x32xf32>
    %54 = arith.addf %45, %47 : vector<2x32xf32>
    %55 = arith.addf %49, %51 : vector<32x32xf32>
    %cst_52 = arith.constant dense<0.000000e+00> : vector<2x32xf32>
    %56 = tpu.matmul %54, %55, %cst_52 {dimension_numbers = #tpu.dot_dimension_numbers<[1], [0], [0], [1], [0, 0, 1, 1], [], []>} : vector<2x32xf32>, vector<32x32xf32>, vector<2x32xf32> -> vector<2x32xf32>
    %57 = arith.subf %52, %53 : vector<2x32xf32>
    %c2_53 = arith.constant 2 : index
    %c0_54 = arith.constant 0 : index
    %c0_55 = arith.constant 0 : index
    %58 = vector.load %arg5[%c2_53, %c0_54, %c0_55] : memref<16x2x32xf32, #tpu.memory_space<vmem>>, vector<1x2x32xf32>
    %59 = vector.shape_cast %58 : vector<1x2x32xf32> to vector<2x32xf32>
    %60 = vector.shape_cast %57 : vector<2x32xf32> to vector<1x2x32xf32>
    tpu.vector_store %arg5[%c2_53, %c0_54, %c0_55], %60 {strides = array<i32>} : memref<16x2x32xf32, #tpu.memory_space<vmem>>, vector<1x2x32xf32>,
    %61 = arith.subf %56, %52 : vector<2x32xf32>
    %62 = arith.subf %61, %53 : vector<2x32xf32>
    %c2_56 = arith.constant 2 : index
    %c0_57 = arith.constant 0 : index
    %c0_58 = arith.constant 0 : index
    %63 = vector.load %arg6[%c2_56, %c0_57, %c0_58] : memref<16x2x32xf32, #tpu.memory_space<vmem>>, vector<1x2x32xf32>
    %64 = vector.shape_cast %63 : vector<1x2x32xf32> to vector<2x32xf32>
    %65 = vector.shape_cast %62 : vector<2x32xf32> to vector<1x2x32xf32>
    tpu.vector_store %arg6[%c2_56, %c0_57, %c0_58], %65 {strides = array<i32>} : memref<16x2x32xf32, #tpu.memory_space<vmem>>, vector<1x2x32xf32>,
    %c3 = arith.constant 3 : index
    %c0_59 = arith.constant 0 : index
    %c0_60 = arith.constant 0 : index
    %66 = vector.load %arg1[%c3, %c0_59, %c0_60] : memref<16x2x32xf32, #tpu.memory_space<vmem>>, vector<1x2x32xf32>
    %67 = vector.shape_cast %66 : vector<1x2x32xf32> to vector<2x32xf32>
    %c3_61 = arith.constant 3 : index
    %c0_62 = arith.constant 0 : index
    %c0_63 = arith.constant 0 : index
    %68 = vector.load %arg2[%c3_61, %c0_62, %c0_63] : memref<16x2x32xf32, #tpu.memory_space<vmem>>, vector<1x2x32xf32>
    %69 = vector.shape_cast %68 : vector<1x2x32xf32> to vector<2x32xf32>
    %c3_64 = arith.constant 3 : index
    %c0_65 = arith.constant 0 : index
    %c0_66 = arith.constant 0 : index
    %70 = vector.load %arg3[%c3_64, %c0_65, %c0_66] : memref<16x32x32xf32, #tpu.memory_space<vmem>>, vector<1x32x32xf32>
    %71 = vector.shape_cast %70 : vector<1x32x32xf32> to vector<32x32xf32>
    %c3_67 = arith.constant 3 : index
    %c0_68 = arith.constant 0 : index
    %c0_69 = arith.constant 0 : index
    %72 = vector.load %arg4[%c3_67, %c0_68, %c0_69] : memref<16x32x32xf32, #tpu.memory_space<vmem>>, vector<1x32x32xf32>
    %73 = vector.shape_cast %72 : vector<1x32x32xf32> to vector<32x32xf32>
    %cst_70 = arith.constant dense<0.000000e+00> : vector<2x32xf32>
    %74 = tpu.matmul %67, %71, %cst_70 {dimension_numbers = #tpu.dot_dimension_numbers<[1], [0], [0], [1], [0, 0, 1, 1], [], []>} : vector<2x32xf32>, vector<32x32xf32>, vector<2x32xf32> -> vector<2x32xf32>
    %cst_71 = arith.constant dense<0.000000e+00> : vector<2x32xf32>
    %75 = tpu.matmul %69, %73, %cst_71 {dimension_numbers = #tpu.dot_dimension_numbers<[1], [0], [0], [1], [0, 0, 1, 1], [], []>} : vector<2x32xf32>, vector<32x32xf32>, vector<2x32xf32> -> vector<2x32xf32>
    %76 = arith.addf %67, %69 : vector<2x32xf32>
    %77 = arith.addf %71, %73 : vector<32x32xf32>
    %cst_72 = arith.constant dense<0.000000e+00> : vector<2x32xf32>
    %78 = tpu.matmul %76, %77, %cst_72 {dimension_numbers = #tpu.dot_dimension_numbers<[1], [0], [0], [1], [0, 0, 1, 1], [], []>} : vector<2x32xf32>, vector<32x32xf32>, vector<2x32xf32> -> vector<2x32xf32>
    %79 = arith.subf %74, %75 : vector<2x32xf32>
    %c3_73 = arith.constant 3 : index
    %c0_74 = arith.constant 0 : index
    %c0_75 = arith.constant 0 : index
    %80 = vector.load %arg5[%c3_73, %c0_74, %c0_75] : memref<16x2x32xf32, #tpu.memory_space<vmem>>, vector<1x2x32xf32>
    %81 = vector.shape_cast %80 : vector<1x2x32xf32> to vector<2x32xf32>
    %82 = vector.shape_cast %79 : vector<2x32xf32> to vector<1x2x32xf32>
    tpu.vector_store %arg5[%c3_73, %c0_74, %c0_75], %82 {strides = array<i32>} : memref<16x2x32xf32, #tpu.memory_space<vmem>>, vector<1x2x32xf32>,
    %83 = arith.subf %78, %74 : vector<2x32xf32>
    %84 = arith.subf %83, %75 : vector<2x32xf32>
    %c3_76 = arith.constant 3 : index
    %c0_77 = arith.constant 0 : index
    %c0_78 = arith.constant 0 : index
    %85 = vector.load %arg6[%c3_76, %c0_77, %c0_78] : memref<16x2x32xf32, #tpu.memory_space<vmem>>, vector<1x2x32xf32>
    %86 = vector.shape_cast %85 : vector<1x2x32xf32> to vector<2x32xf32>
    %87 = vector.shape_cast %84 : vector<2x32xf32> to vector<1x2x32xf32>
    tpu.vector_store %arg6[%c3_76, %c0_77, %c0_78], %87 {strides = array<i32>} : memref<16x2x32xf32, #tpu.memory_space<vmem>>, vector<1x2x32xf32>,
    %c4 = arith.constant 4 : index
    %c0_79 = arith.constant 0 : index
    %c0_80 = arith.constant 0 : index
    %88 = vector.load %arg1[%c4, %c0_79, %c0_80] : memref<16x2x32xf32, #tpu.memory_space<vmem>>, vector<1x2x32xf32>
    %89 = vector.shape_cast %88 : vector<1x2x32xf32> to vector<2x32xf32>
    %c4_81 = arith.constant 4 : index
    %c0_82 = arith.constant 0 : index
    %c0_83 = arith.constant 0 : index
    %90 = vector.load %arg2[%c4_81, %c0_82, %c0_83] : memref<16x2x32xf32, #tpu.memory_space<vmem>>, vector<1x2x32xf32>
    %91 = vector.shape_cast %90 : vector<1x2x32xf32> to vector<2x32xf32>
    %c4_84 = arith.constant 4 : index
    %c0_85 = arith.constant 0 : index
    %c0_86 = arith.constant 0 : index
    %92 = vector.load %arg3[%c4_84, %c0_85, %c0_86] : memref<16x32x32xf32, #tpu.memory_space<vmem>>, vector<1x32x32xf32>
    %93 = vector.shape_cast %92 : vector<1x32x32xf32> to vector<32x32xf32>
    %c4_87 = arith.constant 4 : index
    %c0_88 = arith.constant 0 : index
    %c0_89 = arith.constant 0 : index
    %94 = vector.load %arg4[%c4_87, %c0_88, %c0_89] : memref<16x32x32xf32, #tpu.memory_space<vmem>>, vector<1x32x32xf32>
    %95 = vector.shape_cast %94 : vector<1x32x32xf32> to vector<32x32xf32>
    %cst_90 = arith.constant dense<0.000000e+00> : vector<2x32xf32>
    %96 = tpu.matmul %89, %93, %cst_90 {dimension_numbers = #tpu.dot_dimension_numbers<[1], [0], [0], [1], [0, 0, 1, 1], [], []>} : vector<2x32xf32>, vector<32x32xf32>, vector<2x32xf32> -> vector<2x32xf32>
    %cst_91 = arith.constant dense<0.000000e+00> : vector<2x32xf32>
    %97 = tpu.matmul %91, %95, %cst_91 {dimension_numbers = #tpu.dot_dimension_numbers<[1], [0], [0], [1], [0, 0, 1, 1], [], []>} : vector<2x32xf32>, vector<32x32xf32>, vector<2x32xf32> -> vector<2x32xf32>
    %98 = arith.addf %89, %91 : vector<2x32xf32>
    %99 = arith.addf %93, %95 : vector<32x32xf32>
    %cst_92 = arith.constant dense<0.000000e+00> : vector<2x32xf32>
    %100 = tpu.matmul %98, %99, %cst_92 {dimension_numbers = #tpu.dot_dimension_numbers<[1], [0], [0], [1], [0, 0, 1, 1], [], []>} : vector<2x32xf32>, vector<32x32xf32>, vector<2x32xf32> -> vector<2x32xf32>
    %101 = arith.subf %96, %97 : vector<2x32xf32>
    %c4_93 = arith.constant 4 : index
    %c0_94 = arith.constant 0 : index
    %c0_95 = arith.constant 0 : index
    %102 = vector.load %arg5[%c4_93, %c0_94, %c0_95] : memref<16x2x32xf32, #tpu.memory_space<vmem>>, vector<1x2x32xf32>
    %103 = vector.shape_cast %102 : vector<1x2x32xf32> to vector<2x32xf32>
    %104 = vector.shape_cast %101 : vector<2x32xf32> to vector<1x2x32xf32>
    tpu.vector_store %arg5[%c4_93, %c0_94, %c0_95], %104 {strides = array<i32>} : memref<16x2x32xf32, #tpu.memory_space<vmem>>, vector<1x2x32xf32>,
    %105 = arith.subf %100, %96 : vector<2x32xf32>
    %106 = arith.subf %105, %97 : vector<2x32xf32>
    %c4_96 = arith.constant 4 : index
    %c0_97 = arith.constant 0 : index
    %c0_98 = arith.constant 0 : index
    %107 = vector.load %arg6[%c4_96, %c0_97, %c0_98] : memref<16x2x32xf32, #tpu.memory_space<vmem>>, vector<1x2x32xf32>
    %108 = vector.shape_cast %107 : vector<1x2x32xf32> to vector<2x32xf32>
    %109 = vector.shape_cast %106 : vector<2x32xf32> to vector<1x2x32xf32>
    tpu.vector_store %arg6[%c4_96, %c0_97, %c0_98], %109 {strides = array<i32>} : memref<16x2x32xf32, #tpu.memory_space<vmem>>, vector<1x2x32xf32>,
    %c5 = arith.constant 5 : index
    %c0_99 = arith.constant 0 : index
    %c0_100 = arith.constant 0 : index
    %110 = vector.load %arg1[%c5, %c0_99, %c0_100] : memref<16x2x32xf32, #tpu.memory_space<vmem>>, vector<1x2x32xf32>
    %111 = vector.shape_cast %110 : vector<1x2x32xf32> to vector<2x32xf32>
    %c5_101 = arith.constant 5 : index
    %c0_102 = arith.constant 0 : index
    %c0_103 = arith.constant 0 : index
    %112 = vector.load %arg2[%c5_101, %c0_102, %c0_103] : memref<16x2x32xf32, #tpu.memory_space<vmem>>, vector<1x2x32xf32>
    %113 = vector.shape_cast %112 : vector<1x2x32xf32> to vector<2x32xf32>
    %c5_104 = arith.constant 5 : index
    %c0_105 = arith.constant 0 : index
    %c0_106 = arith.constant 0 : index
    %114 = vector.load %arg3[%c5_104, %c0_105, %c0_106] : memref<16x32x32xf32, #tpu.memory_space<vmem>>, vector<1x32x32xf32>
    %115 = vector.shape_cast %114 : vector<1x32x32xf32> to vector<32x32xf32>
    %c5_107 = arith.constant 5 : index
    %c0_108 = arith.constant 0 : index
    %c0_109 = arith.constant 0 : index
    %116 = vector.load %arg4[%c5_107, %c0_108, %c0_109] : memref<16x32x32xf32, #tpu.memory_space<vmem>>, vector<1x32x32xf32>
    %117 = vector.shape_cast %116 : vector<1x32x32xf32> to vector<32x32xf32>
    %cst_110 = arith.constant dense<0.000000e+00> : vector<2x32xf32>
    %118 = tpu.matmul %111, %115, %cst_110 {dimension_numbers = #tpu.dot_dimension_numbers<[1], [0], [0], [1], [0, 0, 1, 1], [], []>} : vector<2x32xf32>, vector<32x32xf32>, vector<2x32xf32> -> vector<2x32xf32>
    %cst_111 = arith.constant dense<0.000000e+00> : vector<2x32xf32>
    %119 = tpu.matmul %113, %117, %cst_111 {dimension_numbers = #tpu.dot_dimension_numbers<[1], [0], [0], [1], [0, 0, 1, 1], [], []>} : vector<2x32xf32>, vector<32x32xf32>, vector<2x32xf32> -> vector<2x32xf32>
    %120 = arith.addf %111, %113 : vector<2x32xf32>
    %121 = arith.addf %115, %117 : vector<32x32xf32>
    %cst_112 = arith.constant dense<0.000000e+00> : vector<2x32xf32>
    %122 = tpu.matmul %120, %121, %cst_112 {dimension_numbers = #tpu.dot_dimension_numbers<[1], [0], [0], [1], [0, 0, 1, 1], [], []>} : vector<2x32xf32>, vector<32x32xf32>, vector<2x32xf32> -> vector<2x32xf32>
    %123 = arith.subf %118, %119 : vector<2x32xf32>
    %c5_113 = arith.constant 5 : index
    %c0_114 = arith.constant 0 : index
    %c0_115 = arith.constant 0 : index
    %124 = vector.load %arg5[%c5_113, %c0_114, %c0_115] : memref<16x2x32xf32, #tpu.memory_space<vmem>>, vector<1x2x32xf32>
    %125 = vector.shape_cast %124 : vector<1x2x32xf32> to vector<2x32xf32>
    %126 = vector.shape_cast %123 : vector<2x32xf32> to vector<1x2x32xf32>
    tpu.vector_store %arg5[%c5_113, %c0_114, %c0_115], %126 {strides = array<i32>} : memref<16x2x32xf32, #tpu.memory_space<vmem>>, vector<1x2x32xf32>,
    %127 = arith.subf %122, %118 : vector<2x32xf32>
    %128 = arith.subf %127, %119 : vector<2x32xf32>
    %c5_116 = arith.constant 5 : index
    %c0_117 = arith.constant 0 : index
    %c0_118 = arith.constant 0 : index
    %129 = vector.load %arg6[%c5_116, %c0_117, %c0_118] : memref<16x2x32xf32, #tpu.memory_space<vmem>>, vector<1x2x32xf32>
    %130 = vector.shape_cast %129 : vector<1x2x32xf32> to vector<2x32xf32>
    %131 = vector.shape_cast %128 : vector<2x32xf32> to vector<1x2x32xf32>
    tpu.vector_store %arg6[%c5_116, %c0_117, %c0_118], %131 {strides = array<i32>} : memref<16x2x32xf32, #tpu.memory_space<vmem>>, vector<1x2x32xf32>,
    %c6 = arith.constant 6 : index
    %c0_119 = arith.constant 0 : index
    %c0_120 = arith.constant 0 : index
    %132 = vector.load %arg1[%c6, %c0_119, %c0_120] : memref<16x2x32xf32, #tpu.memory_space<vmem>>, vector<1x2x32xf32>
    %133 = vector.shape_cast %132 : vector<1x2x32xf32> to vector<2x32xf32>
    %c6_121 = arith.constant 6 : index
    %c0_122 = arith.constant 0 : index
    %c0_123 = arith.constant 0 : index
    %134 = vector.load %arg2[%c6_121, %c0_122, %c0_123] : memref<16x2x32xf32, #tpu.memory_space<vmem>>, vector<1x2x32xf32>
    %135 = vector.shape_cast %134 : vector<1x2x32xf32> to vector<2x32xf32>
    %c6_124 = arith.constant 6 : index
    %c0_125 = arith.constant 0 : index
    %c0_126 = arith.constant 0 : index
    %136 = vector.load %arg3[%c6_124, %c0_125, %c0_126] : memref<16x32x32xf32, #tpu.memory_space<vmem>>, vector<1x32x32xf32>
    %137 = vector.shape_cast %136 : vector<1x32x32xf32> to vector<32x32xf32>
    %c6_127 = arith.constant 6 : index
    %c0_128 = arith.constant 0 : index
    %c0_129 = arith.constant 0 : index
    %138 = vector.load %arg4[%c6_127, %c0_128, %c0_129] : memref<16x32x32xf32, #tpu.memory_space<vmem>>, vector<1x32x32xf32>
    %139 = vector.shape_cast %138 : vector<1x32x32xf32> to vector<32x32xf32>
    %cst_130 = arith.constant dense<0.000000e+00> : vector<2x32xf32>
    %140 = tpu.matmul %133, %137, %cst_130 {dimension_numbers = #tpu.dot_dimension_numbers<[1], [0], [0], [1], [0, 0, 1, 1], [], []>} : vector<2x32xf32>, vector<32x32xf32>, vector<2x32xf32> -> vector<2x32xf32>
    %cst_131 = arith.constant dense<0.000000e+00> : vector<2x32xf32>
    %141 = tpu.matmul %135, %139, %cst_131 {dimension_numbers = #tpu.dot_dimension_numbers<[1], [0], [0], [1], [0, 0, 1, 1], [], []>} : vector<2x32xf32>, vector<32x32xf32>, vector<2x32xf32> -> vector<2x32xf32>
    %142 = arith.addf %133, %135 : vector<2x32xf32>
    %143 = arith.addf %137, %139 : vector<32x32xf32>
    %cst_132 = arith.constant dense<0.000000e+00> : vector<2x32xf32>
    %144 = tpu.matmul %142, %143, %cst_132 {dimension_numbers = #tpu.dot_dimension_numbers<[1], [0], [0], [1], [0, 0, 1, 1], [], []>} : vector<2x32xf32>, vector<32x32xf32>, vector<2x32xf32> -> vector<2x32xf32>
    %145 = arith.subf %140, %141 : vector<2x32xf32>
    %c6_133 = arith.constant 6 : index
    %c0_134 = arith.constant 0 : index
    %c0_135 = arith.constant 0 : index
    %146 = vector.load %arg5[%c6_133, %c0_134, %c0_135] : memref<16x2x32xf32, #tpu.memory_space<vmem>>, vector<1x2x32xf32>
    %147 = vector.shape_cast %146 : vector<1x2x32xf32> to vector<2x32xf32>
    %148 = vector.shape_cast %145 : vector<2x32xf32> to vector<1x2x32xf32>
    tpu.vector_store %arg5[%c6_133, %c0_134, %c0_135], %148 {strides = array<i32>} : memref<16x2x32xf32, #tpu.memory_space<vmem>>, vector<1x2x32xf32>,
    %149 = arith.subf %144, %140 : vector<2x32xf32>
    %150 = arith.subf %149, %141 : vector<2x32xf32>
    %c6_136 = arith.constant 6 : index
    %c0_137 = arith.constant 0 : index
    %c0_138 = arith.constant 0 : index
    %151 = vector.load %arg6[%c6_136, %c0_137, %c0_138] : memref<16x2x32xf32, #tpu.memory_space<vmem>>, vector<1x2x32xf32>
    %152 = vector.shape_cast %151 : vector<1x2x32xf32> to vector<2x32xf32>
    %153 = vector.shape_cast %150 : vector<2x32xf32> to vector<1x2x32xf32>
    tpu.vector_store %arg6[%c6_136, %c0_137, %c0_138], %153 {strides = array<i32>} : memref<16x2x32xf32, #tpu.memory_space<vmem>>, vector<1x2x32xf32>,
    %c7 = arith.constant 7 : index
    %c0_139 = arith.constant 0 : index
    %c0_140 = arith.constant 0 : index
    %154 = vector.load %arg1[%c7, %c0_139, %c0_140] : memref<16x2x32xf32, #tpu.memory_space<vmem>>, vector<1x2x32xf32>
    %155 = vector.shape_cast %154 : vector<1x2x32xf32> to vector<2x32xf32>
    %c7_141 = arith.constant 7 : index
    %c0_142 = arith.constant 0 : index
    %c0_143 = arith.constant 0 : index
    %156 = vector.load %arg2[%c7_141, %c0_142, %c0_143] : memref<16x2x32xf32, #tpu.memory_space<vmem>>, vector<1x2x32xf32>
    %157 = vector.shape_cast %156 : vector<1x2x32xf32> to vector<2x32xf32>
    %c7_144 = arith.constant 7 : index
    %c0_145 = arith.constant 0 : index
    %c0_146 = arith.constant 0 : index
    %158 = vector.load %arg3[%c7_144, %c0_145, %c0_146] : memref<16x32x32xf32, #tpu.memory_space<vmem>>, vector<1x32x32xf32>
    %159 = vector.shape_cast %158 : vector<1x32x32xf32> to vector<32x32xf32>
    %c7_147 = arith.constant 7 : index
    %c0_148 = arith.constant 0 : index
    %c0_149 = arith.constant 0 : index
    %160 = vector.load %arg4[%c7_147, %c0_148, %c0_149] : memref<16x32x32xf32, #tpu.memory_space<vmem>>, vector<1x32x32xf32>
    %161 = vector.shape_cast %160 : vector<1x32x32xf32> to vector<32x32xf32>
    %cst_150 = arith.constant dense<0.000000e+00> : vector<2x32xf32>
    %162 = tpu.matmul %155, %159, %cst_150 {dimension_numbers = #tpu.dot_dimension_numbers<[1], [0], [0], [1], [0, 0, 1, 1], [], []>} : vector<2x32xf32>, vector<32x32xf32>, vector<2x32xf32> -> vector<2x32xf32>
    %cst_151 = arith.constant dense<0.000000e+00> : vector<2x32xf32>
    %163 = tpu.matmul %157, %161, %cst_151 {dimension_numbers = #tpu.dot_dimension_numbers<[1], [0], [0], [1], [0, 0, 1, 1], [], []>} : vector<2x32xf32>, vector<32x32xf32>, vector<2x32xf32> -> vector<2x32xf32>
    %164 = arith.addf %155, %157 : vector<2x32xf32>
    %165 = arith.addf %159, %161 : vector<32x32xf32>
    %cst_152 = arith.constant dense<0.000000e+00> : vector<2x32xf32>
    %166 = tpu.matmul %164, %165, %cst_152 {dimension_numbers = #tpu.dot_dimension_numbers<[1], [0], [0], [1], [0, 0, 1, 1], [], []>} : vector<2x32xf32>, vector<32x32xf32>, vector<2x32xf32> -> vector<2x32xf32>
    %167 = arith.subf %162, %163 : vector<2x32xf32>
    %c7_153 = arith.constant 7 : index
    %c0_154 = arith.constant 0 : index
    %c0_155 = arith.constant 0 : index
    %168 = vector.load %arg5[%c7_153, %c0_154, %c0_155] : memref<16x2x32xf32, #tpu.memory_space<vmem>>, vector<1x2x32xf32>
    %169 = vector.shape_cast %168 : vector<1x2x32xf32> to vector<2x32xf32>
    %170 = vector.shape_cast %167 : vector<2x32xf32> to vector<1x2x32xf32>
    tpu.vector_store %arg5[%c7_153, %c0_154, %c0_155], %170 {strides = array<i32>} : memref<16x2x32xf32, #tpu.memory_space<vmem>>, vector<1x2x32xf32>,
    %171 = arith.subf %166, %162 : vector<2x32xf32>
    %172 = arith.subf %171, %163 : vector<2x32xf32>
    %c7_156 = arith.constant 7 : index
    %c0_157 = arith.constant 0 : index
    %c0_158 = arith.constant 0 : index
    %173 = vector.load %arg6[%c7_156, %c0_157, %c0_158] : memref<16x2x32xf32, #tpu.memory_space<vmem>>, vector<1x2x32xf32>
    %174 = vector.shape_cast %173 : vector<1x2x32xf32> to vector<2x32xf32>
    %175 = vector.shape_cast %172 : vector<2x32xf32> to vector<1x2x32xf32>
    tpu.vector_store %arg6[%c7_156, %c0_157, %c0_158], %175 {strides = array<i32>} : memref<16x2x32xf32, #tpu.memory_space<vmem>>, vector<1x2x32xf32>,
    %c8 = arith.constant 8 : index
    %c0_159 = arith.constant 0 : index
    %c0_160 = arith.constant 0 : index
    %176 = vector.load %arg1[%c8, %c0_159, %c0_160] : memref<16x2x32xf32, #tpu.memory_space<vmem>>, vector<1x2x32xf32>
    %177 = vector.shape_cast %176 : vector<1x2x32xf32> to vector<2x32xf32>
    %c8_161 = arith.constant 8 : index
    %c0_162 = arith.constant 0 : index
    %c0_163 = arith.constant 0 : index
    %178 = vector.load %arg2[%c8_161, %c0_162, %c0_163] : memref<16x2x32xf32, #tpu.memory_space<vmem>>, vector<1x2x32xf32>
    %179 = vector.shape_cast %178 : vector<1x2x32xf32> to vector<2x32xf32>
    %c8_164 = arith.constant 8 : index
    %c0_165 = arith.constant 0 : index
    %c0_166 = arith.constant 0 : index
    %180 = vector.load %arg3[%c8_164, %c0_165, %c0_166] : memref<16x32x32xf32, #tpu.memory_space<vmem>>, vector<1x32x32xf32>
    %181 = vector.shape_cast %180 : vector<1x32x32xf32> to vector<32x32xf32>
    %c8_167 = arith.constant 8 : index
    %c0_168 = arith.constant 0 : index
    %c0_169 = arith.constant 0 : index
    %182 = vector.load %arg4[%c8_167, %c0_168, %c0_169] : memref<16x32x32xf32, #tpu.memory_space<vmem>>, vector<1x32x32xf32>
    %183 = vector.shape_cast %182 : vector<1x32x32xf32> to vector<32x32xf32>
    %cst_170 = arith.constant dense<0.000000e+00> : vector<2x32xf32>
    %184 = tpu.matmul %177, %181, %cst_170 {dimension_numbers = #tpu.dot_dimension_numbers<[1], [0], [0], [1], [0, 0, 1, 1], [], []>} : vector<2x32xf32>, vector<32x32xf32>, vector<2x32xf32> -> vector<2x32xf32>
    %cst_171 = arith.constant dense<0.000000e+00> : vector<2x32xf32>
    %185 = tpu.matmul %179, %183, %cst_171 {dimension_numbers = #tpu.dot_dimension_numbers<[1], [0], [0], [1], [0, 0, 1, 1], [], []>} : vector<2x32xf32>, vector<32x32xf32>, vector<2x32xf32> -> vector<2x32xf32>
    %186 = arith.addf %177, %179 : vector<2x32xf32>
    %187 = arith.addf %181, %183 : vector<32x32xf32>
    %cst_172 = arith.constant dense<0.000000e+00> : vector<2x32xf32>
    %188 = tpu.matmul %186, %187, %cst_172 {dimension_numbers = #tpu.dot_dimension_numbers<[1], [0], [0], [1], [0, 0, 1, 1], [], []>} : vector<2x32xf32>, vector<32x32xf32>, vector<2x32xf32> -> vector<2x32xf32>
    %189 = arith.subf %184, %185 : vector<2x32xf32>
    %c8_173 = arith.constant 8 : index
    %c0_174 = arith.constant 0 : index
    %c0_175 = arith.constant 0 : index
    %190 = vector.load %arg5[%c8_173, %c0_174, %c0_175] : memref<16x2x32xf32, #tpu.memory_space<vmem>>, vector<1x2x32xf32>
    %191 = vector.shape_cast %190 : vector<1x2x32xf32> to vector<2x32xf32>
    %192 = vector.shape_cast %189 : vector<2x32xf32> to vector<1x2x32xf32>
    tpu.vector_store %arg5[%c8_173, %c0_174, %c0_175], %192 {strides = array<i32>} : memref<16x2x32xf32, #tpu.memory_space<vmem>>, vector<1x2x32xf32>,
    %193 = arith.subf %188, %184 : vector<2x32xf32>
    %194 = arith.subf %193, %185 : vector<2x32xf32>
    %c8_176 = arith.constant 8 : index
    %c0_177 = arith.constant 0 : index
    %c0_178 = arith.constant 0 : index
    %195 = vector.load %arg6[%c8_176, %c0_177, %c0_178] : memref<16x2x32xf32, #tpu.memory_space<vmem>>, vector<1x2x32xf32>
    %196 = vector.shape_cast %195 : vector<1x2x32xf32> to vector<2x32xf32>
    %197 = vector.shape_cast %194 : vector<2x32xf32> to vector<1x2x32xf32>
    tpu.vector_store %arg6[%c8_176, %c0_177, %c0_178], %197 {strides = array<i32>} : memref<16x2x32xf32, #tpu.memory_space<vmem>>, vector<1x2x32xf32>,
    %c9 = arith.constant 9 : index
    %c0_179 = arith.constant 0 : index
    %c0_180 = arith.constant 0 : index
    %198 = vector.load %arg1[%c9, %c0_179, %c0_180] : memref<16x2x32xf32, #tpu.memory_space<vmem>>, vector<1x2x32xf32>
    %199 = vector.shape_cast %198 : vector<1x2x32xf32> to vector<2x32xf32>
    %c9_181 = arith.constant 9 : index
    %c0_182 = arith.constant 0 : index
    %c0_183 = arith.constant 0 : index
    %200 = vector.load %arg2[%c9_181, %c0_182, %c0_183] : memref<16x2x32xf32, #tpu.memory_space<vmem>>, vector<1x2x32xf32>
    %201 = vector.shape_cast %200 : vector<1x2x32xf32> to vector<2x32xf32>
    %c9_184 = arith.constant 9 : index
    %c0_185 = arith.constant 0 : index
    %c0_186 = arith.constant 0 : index
    %202 = vector.load %arg3[%c9_184, %c0_185, %c0_186] : memref<16x32x32xf32, #tpu.memory_space<vmem>>, vector<1x32x32xf32>
    %203 = vector.shape_cast %202 : vector<1x32x32xf32> to vector<32x32xf32>
    %c9_187 = arith.constant 9 : index
    %c0_188 = arith.constant 0 : index
    %c0_189 = arith.constant 0 : index
    %204 = vector.load %arg4[%c9_187, %c0_188, %c0_189] : memref<16x32x32xf32, #tpu.memory_space<vmem>>, vector<1x32x32xf32>
    %205 = vector.shape_cast %204 : vector<1x32x32xf32> to vector<32x32xf32>
    %cst_190 = arith.constant dense<0.000000e+00> : vector<2x32xf32>
    %206 = tpu.matmul %199, %203, %cst_190 {dimension_numbers = #tpu.dot_dimension_numbers<[1], [0], [0], [1], [0, 0, 1, 1], [], []>} : vector<2x32xf32>, vector<32x32xf32>, vector<2x32xf32> -> vector<2x32xf32>
    %cst_191 = arith.constant dense<0.000000e+00> : vector<2x32xf32>
    %207 = tpu.matmul %201, %205, %cst_191 {dimension_numbers = #tpu.dot_dimension_numbers<[1], [0], [0], [1], [0, 0, 1, 1], [], []>} : vector<2x32xf32>, vector<32x32xf32>, vector<2x32xf32> -> vector<2x32xf32>
    %208 = arith.addf %199, %201 : vector<2x32xf32>
    %209 = arith.addf %203, %205 : vector<32x32xf32>
    %cst_192 = arith.constant dense<0.000000e+00> : vector<2x32xf32>
    %210 = tpu.matmul %208, %209, %cst_192 {dimension_numbers = #tpu.dot_dimension_numbers<[1], [0], [0], [1], [0, 0, 1, 1], [], []>} : vector<2x32xf32>, vector<32x32xf32>, vector<2x32xf32> -> vector<2x32xf32>
    %211 = arith.subf %206, %207 : vector<2x32xf32>
    %c9_193 = arith.constant 9 : index
    %c0_194 = arith.constant 0 : index
    %c0_195 = arith.constant 0 : index
    %212 = vector.load %arg5[%c9_193, %c0_194, %c0_195] : memref<16x2x32xf32, #tpu.memory_space<vmem>>, vector<1x2x32xf32>
    %213 = vector.shape_cast %212 : vector<1x2x32xf32> to vector<2x32xf32>
    %214 = vector.shape_cast %211 : vector<2x32xf32> to vector<1x2x32xf32>
    tpu.vector_store %arg5[%c9_193, %c0_194, %c0_195], %214 {strides = array<i32>} : memref<16x2x32xf32, #tpu.memory_space<vmem>>, vector<1x2x32xf32>,
    %215 = arith.subf %210, %206 : vector<2x32xf32>
    %216 = arith.subf %215, %207 : vector<2x32xf32>
    %c9_196 = arith.constant 9 : index
    %c0_197 = arith.constant 0 : index
    %c0_198 = arith.constant 0 : index
    %217 = vector.load %arg6[%c9_196, %c0_197, %c0_198] : memref<16x2x32xf32, #tpu.memory_space<vmem>>, vector<1x2x32xf32>
    %218 = vector.shape_cast %217 : vector<1x2x32xf32> to vector<2x32xf32>
    %219 = vector.shape_cast %216 : vector<2x32xf32> to vector<1x2x32xf32>
    tpu.vector_store %arg6[%c9_196, %c0_197, %c0_198], %219 {strides = array<i32>} : memref<16x2x32xf32, #tpu.memory_space<vmem>>, vector<1x2x32xf32>,
    %c10 = arith.constant 10 : index
    %c0_199 = arith.constant 0 : index
    %c0_200 = arith.constant 0 : index
    %220 = vector.load %arg1[%c10, %c0_199, %c0_200] : memref<16x2x32xf32, #tpu.memory_space<vmem>>, vector<1x2x32xf32>
    %221 = vector.shape_cast %220 : vector<1x2x32xf32> to vector<2x32xf32>
    %c10_201 = arith.constant 10 : index
    %c0_202 = arith.constant 0 : index
    %c0_203 = arith.constant 0 : index
    %222 = vector.load %arg2[%c10_201, %c0_202, %c0_203] : memref<16x2x32xf32, #tpu.memory_space<vmem>>, vector<1x2x32xf32>
    %223 = vector.shape_cast %222 : vector<1x2x32xf32> to vector<2x32xf32>
    %c10_204 = arith.constant 10 : index
    %c0_205 = arith.constant 0 : index
    %c0_206 = arith.constant 0 : index
    %224 = vector.load %arg3[%c10_204, %c0_205, %c0_206] : memref<16x32x32xf32, #tpu.memory_space<vmem>>, vector<1x32x32xf32>
    %225 = vector.shape_cast %224 : vector<1x32x32xf32> to vector<32x32xf32>
    %c10_207 = arith.constant 10 : index
    %c0_208 = arith.constant 0 : index
    %c0_209 = arith.constant 0 : index
    %226 = vector.load %arg4[%c10_207, %c0_208, %c0_209] : memref<16x32x32xf32, #tpu.memory_space<vmem>>, vector<1x32x32xf32>
    %227 = vector.shape_cast %226 : vector<1x32x32xf32> to vector<32x32xf32>
    %cst_210 = arith.constant dense<0.000000e+00> : vector<2x32xf32>
    %228 = tpu.matmul %221, %225, %cst_210 {dimension_numbers = #tpu.dot_dimension_numbers<[1], [0], [0], [1], [0, 0, 1, 1], [], []>} : vector<2x32xf32>, vector<32x32xf32>, vector<2x32xf32> -> vector<2x32xf32>
    %cst_211 = arith.constant dense<0.000000e+00> : vector<2x32xf32>
    %229 = tpu.matmul %223, %227, %cst_211 {dimension_numbers = #tpu.dot_dimension_numbers<[1], [0], [0], [1], [0, 0, 1, 1], [], []>} : vector<2x32xf32>, vector<32x32xf32>, vector<2x32xf32> -> vector<2x32xf32>
    %230 = arith.addf %221, %223 : vector<2x32xf32>
    %231 = arith.addf %225, %227 : vector<32x32xf32>
    %cst_212 = arith.constant dense<0.000000e+00> : vector<2x32xf32>
    %232 = tpu.matmul %230, %231, %cst_212 {dimension_numbers = #tpu.dot_dimension_numbers<[1], [0], [0], [1], [0, 0, 1, 1], [], []>} : vector<2x32xf32>, vector<32x32xf32>, vector<2x32xf32> -> vector<2x32xf32>
    %233 = arith.subf %228, %229 : vector<2x32xf32>
    %c10_213 = arith.constant 10 : index
    %c0_214 = arith.constant 0 : index
    %c0_215 = arith.constant 0 : index
    %234 = vector.load %arg5[%c10_213, %c0_214, %c0_215] : memref<16x2x32xf32, #tpu.memory_space<vmem>>, vector<1x2x32xf32>
    %235 = vector.shape_cast %234 : vector<1x2x32xf32> to vector<2x32xf32>
    %236 = vector.shape_cast %233 : vector<2x32xf32> to vector<1x2x32xf32>
    tpu.vector_store %arg5[%c10_213, %c0_214, %c0_215], %236 {strides = array<i32>} : memref<16x2x32xf32, #tpu.memory_space<vmem>>, vector<1x2x32xf32>,
    %237 = arith.subf %232, %228 : vector<2x32xf32>
    %238 = arith.subf %237, %229 : vector<2x32xf32>
    %c10_216 = arith.constant 10 : index
    %c0_217 = arith.constant 0 : index
    %c0_218 = arith.constant 0 : index
    %239 = vector.load %arg6[%c10_216, %c0_217, %c0_218] : memref<16x2x32xf32, #tpu.memory_space<vmem>>, vector<1x2x32xf32>
    %240 = vector.shape_cast %239 : vector<1x2x32xf32> to vector<2x32xf32>
    %241 = vector.shape_cast %238 : vector<2x32xf32> to vector<1x2x32xf32>
    tpu.vector_store %arg6[%c10_216, %c0_217, %c0_218], %241 {strides = array<i32>} : memref<16x2x32xf32, #tpu.memory_space<vmem>>, vector<1x2x32xf32>,
    %c11 = arith.constant 11 : index
    %c0_219 = arith.constant 0 : index
    %c0_220 = arith.constant 0 : index
    %242 = vector.load %arg1[%c11, %c0_219, %c0_220] : memref<16x2x32xf32, #tpu.memory_space<vmem>>, vector<1x2x32xf32>
    %243 = vector.shape_cast %242 : vector<1x2x32xf32> to vector<2x32xf32>
    %c11_221 = arith.constant 11 : index
    %c0_222 = arith.constant 0 : index
    %c0_223 = arith.constant 0 : index
    %244 = vector.load %arg2[%c11_221, %c0_222, %c0_223] : memref<16x2x32xf32, #tpu.memory_space<vmem>>, vector<1x2x32xf32>
    %245 = vector.shape_cast %244 : vector<1x2x32xf32> to vector<2x32xf32>
    %c11_224 = arith.constant 11 : index
    %c0_225 = arith.constant 0 : index
    %c0_226 = arith.constant 0 : index
    %246 = vector.load %arg3[%c11_224, %c0_225, %c0_226] : memref<16x32x32xf32, #tpu.memory_space<vmem>>, vector<1x32x32xf32>
    %247 = vector.shape_cast %246 : vector<1x32x32xf32> to vector<32x32xf32>
    %c11_227 = arith.constant 11 : index
    %c0_228 = arith.constant 0 : index
    %c0_229 = arith.constant 0 : index
    %248 = vector.load %arg4[%c11_227, %c0_228, %c0_229] : memref<16x32x32xf32, #tpu.memory_space<vmem>>, vector<1x32x32xf32>
    %249 = vector.shape_cast %248 : vector<1x32x32xf32> to vector<32x32xf32>
    %cst_230 = arith.constant dense<0.000000e+00> : vector<2x32xf32>
    %250 = tpu.matmul %243, %247, %cst_230 {dimension_numbers = #tpu.dot_dimension_numbers<[1], [0], [0], [1], [0, 0, 1, 1], [], []>} : vector<2x32xf32>, vector<32x32xf32>, vector<2x32xf32> -> vector<2x32xf32>
    %cst_231 = arith.constant dense<0.000000e+00> : vector<2x32xf32>
    %251 = tpu.matmul %245, %249, %cst_231 {dimension_numbers = #tpu.dot_dimension_numbers<[1], [0], [0], [1], [0, 0, 1, 1], [], []>} : vector<2x32xf32>, vector<32x32xf32>, vector<2x32xf32> -> vector<2x32xf32>
    %252 = arith.addf %243, %245 : vector<2x32xf32>
    %253 = arith.addf %247, %249 : vector<32x32xf32>
    %cst_232 = arith.constant dense<0.000000e+00> : vector<2x32xf32>
    %254 = tpu.matmul %252, %253, %cst_232 {dimension_numbers = #tpu.dot_dimension_numbers<[1], [0], [0], [1], [0, 0, 1, 1], [], []>} : vector<2x32xf32>, vector<32x32xf32>, vector<2x32xf32> -> vector<2x32xf32>
    %255 = arith.subf %250, %251 : vector<2x32xf32>
    %c11_233 = arith.constant 11 : index
    %c0_234 = arith.constant 0 : index
    %c0_235 = arith.constant 0 : index
    %256 = vector.load %arg5[%c11_233, %c0_234, %c0_235] : memref<16x2x32xf32, #tpu.memory_space<vmem>>, vector<1x2x32xf32>
    %257 = vector.shape_cast %256 : vector<1x2x32xf32> to vector<2x32xf32>
    %258 = vector.shape_cast %255 : vector<2x32xf32> to vector<1x2x32xf32>
    tpu.vector_store %arg5[%c11_233, %c0_234, %c0_235], %258 {strides = array<i32>} : memref<16x2x32xf32, #tpu.memory_space<vmem>>, vector<1x2x32xf32>,
    %259 = arith.subf %254, %250 : vector<2x32xf32>
    %260 = arith.subf %259, %251 : vector<2x32xf32>
    %c11_236 = arith.constant 11 : index
    %c0_237 = arith.constant 0 : index
    %c0_238 = arith.constant 0 : index
    %261 = vector.load %arg6[%c11_236, %c0_237, %c0_238] : memref<16x2x32xf32, #tpu.memory_space<vmem>>, vector<1x2x32xf32>
    %262 = vector.shape_cast %261 : vector<1x2x32xf32> to vector<2x32xf32>
    %263 = vector.shape_cast %260 : vector<2x32xf32> to vector<1x2x32xf32>
    tpu.vector_store %arg6[%c11_236, %c0_237, %c0_238], %263 {strides = array<i32>} : memref<16x2x32xf32, #tpu.memory_space<vmem>>, vector<1x2x32xf32>,
    %c12 = arith.constant 12 : index
    %c0_239 = arith.constant 0 : index
    %c0_240 = arith.constant 0 : index
    %264 = vector.load %arg1[%c12, %c0_239, %c0_240] : memref<16x2x32xf32, #tpu.memory_space<vmem>>, vector<1x2x32xf32>
    %265 = vector.shape_cast %264 : vector<1x2x32xf32> to vector<2x32xf32>
    %c12_241 = arith.constant 12 : index
    %c0_242 = arith.constant 0 : index
    %c0_243 = arith.constant 0 : index
    %266 = vector.load %arg2[%c12_241, %c0_242, %c0_243] : memref<16x2x32xf32, #tpu.memory_space<vmem>>, vector<1x2x32xf32>
    %267 = vector.shape_cast %266 : vector<1x2x32xf32> to vector<2x32xf32>
    %c12_244 = arith.constant 12 : index
    %c0_245 = arith.constant 0 : index
    %c0_246 = arith.constant 0 : index
    %268 = vector.load %arg3[%c12_244, %c0_245, %c0_246] : memref<16x32x32xf32, #tpu.memory_space<vmem>>, vector<1x32x32xf32>
    %269 = vector.shape_cast %268 : vector<1x32x32xf32> to vector<32x32xf32>
    %c12_247 = arith.constant 12 : index
    %c0_248 = arith.constant 0 : index
    %c0_249 = arith.constant 0 : index
    %270 = vector.load %arg4[%c12_247, %c0_248, %c0_249] : memref<16x32x32xf32, #tpu.memory_space<vmem>>, vector<1x32x32xf32>
    %271 = vector.shape_cast %270 : vector<1x32x32xf32> to vector<32x32xf32>
    %cst_250 = arith.constant dense<0.000000e+00> : vector<2x32xf32>
    %272 = tpu.matmul %265, %269, %cst_250 {dimension_numbers = #tpu.dot_dimension_numbers<[1], [0], [0], [1], [0, 0, 1, 1], [], []>} : vector<2x32xf32>, vector<32x32xf32>, vector<2x32xf32> -> vector<2x32xf32>
    %cst_251 = arith.constant dense<0.000000e+00> : vector<2x32xf32>
    %273 = tpu.matmul %267, %271, %cst_251 {dimension_numbers = #tpu.dot_dimension_numbers<[1], [0], [0], [1], [0, 0, 1, 1], [], []>} : vector<2x32xf32>, vector<32x32xf32>, vector<2x32xf32> -> vector<2x32xf32>
    %274 = arith.addf %265, %267 : vector<2x32xf32>
    %275 = arith.addf %269, %271 : vector<32x32xf32>
    %cst_252 = arith.constant dense<0.000000e+00> : vector<2x32xf32>
    %276 = tpu.matmul %274, %275, %cst_252 {dimension_numbers = #tpu.dot_dimension_numbers<[1], [0], [0], [1], [0, 0, 1, 1], [], []>} : vector<2x32xf32>, vector<32x32xf32>, vector<2x32xf32> -> vector<2x32xf32>
    %277 = arith.subf %272, %273 : vector<2x32xf32>
    %c12_253 = arith.constant 12 : index
    %c0_254 = arith.constant 0 : index
    %c0_255 = arith.constant 0 : index
    %278 = vector.load %arg5[%c12_253, %c0_254, %c0_255] : memref<16x2x32xf32, #tpu.memory_space<vmem>>, vector<1x2x32xf32>
    %279 = vector.shape_cast %278 : vector<1x2x32xf32> to vector<2x32xf32>
    %280 = vector.shape_cast %277 : vector<2x32xf32> to vector<1x2x32xf32>
    tpu.vector_store %arg5[%c12_253, %c0_254, %c0_255], %280 {strides = array<i32>} : memref<16x2x32xf32, #tpu.memory_space<vmem>>, vector<1x2x32xf32>,
    %281 = arith.subf %276, %272 : vector<2x32xf32>
    %282 = arith.subf %281, %273 : vector<2x32xf32>
    %c12_256 = arith.constant 12 : index
    %c0_257 = arith.constant 0 : index
    %c0_258 = arith.constant 0 : index
    %283 = vector.load %arg6[%c12_256, %c0_257, %c0_258] : memref<16x2x32xf32, #tpu.memory_space<vmem>>, vector<1x2x32xf32>
    %284 = vector.shape_cast %283 : vector<1x2x32xf32> to vector<2x32xf32>
    %285 = vector.shape_cast %282 : vector<2x32xf32> to vector<1x2x32xf32>
    tpu.vector_store %arg6[%c12_256, %c0_257, %c0_258], %285 {strides = array<i32>} : memref<16x2x32xf32, #tpu.memory_space<vmem>>, vector<1x2x32xf32>,
    %c13 = arith.constant 13 : index
    %c0_259 = arith.constant 0 : index
    %c0_260 = arith.constant 0 : index
    %286 = vector.load %arg1[%c13, %c0_259, %c0_260] : memref<16x2x32xf32, #tpu.memory_space<vmem>>, vector<1x2x32xf32>
    %287 = vector.shape_cast %286 : vector<1x2x32xf32> to vector<2x32xf32>
    %c13_261 = arith.constant 13 : index
    %c0_262 = arith.constant 0 : index
    %c0_263 = arith.constant 0 : index
    %288 = vector.load %arg2[%c13_261, %c0_262, %c0_263] : memref<16x2x32xf32, #tpu.memory_space<vmem>>, vector<1x2x32xf32>
    %289 = vector.shape_cast %288 : vector<1x2x32xf32> to vector<2x32xf32>
    %c13_264 = arith.constant 13 : index
    %c0_265 = arith.constant 0 : index
    %c0_266 = arith.constant 0 : index
    %290 = vector.load %arg3[%c13_264, %c0_265, %c0_266] : memref<16x32x32xf32, #tpu.memory_space<vmem>>, vector<1x32x32xf32>
    %291 = vector.shape_cast %290 : vector<1x32x32xf32> to vector<32x32xf32>
    %c13_267 = arith.constant 13 : index
    %c0_268 = arith.constant 0 : index
    %c0_269 = arith.constant 0 : index
    %292 = vector.load %arg4[%c13_267, %c0_268, %c0_269] : memref<16x32x32xf32, #tpu.memory_space<vmem>>, vector<1x32x32xf32>
    %293 = vector.shape_cast %292 : vector<1x32x32xf32> to vector<32x32xf32>
    %cst_270 = arith.constant dense<0.000000e+00> : vector<2x32xf32>
    %294 = tpu.matmul %287, %291, %cst_270 {dimension_numbers = #tpu.dot_dimension_numbers<[1], [0], [0], [1], [0, 0, 1, 1], [], []>} : vector<2x32xf32>, vector<32x32xf32>, vector<2x32xf32> -> vector<2x32xf32>
    %cst_271 = arith.constant dense<0.000000e+00> : vector<2x32xf32>
    %295 = tpu.matmul %289, %293, %cst_271 {dimension_numbers = #tpu.dot_dimension_numbers<[1], [0], [0], [1], [0, 0, 1, 1], [], []>} : vector<2x32xf32>, vector<32x32xf32>, vector<2x32xf32> -> vector<2x32xf32>
    %296 = arith.addf %287, %289 : vector<2x32xf32>
    %297 = arith.addf %291, %293 : vector<32x32xf32>
    %cst_272 = arith.constant dense<0.000000e+00> : vector<2x32xf32>
    %298 = tpu.matmul %296, %297, %cst_272 {dimension_numbers = #tpu.dot_dimension_numbers<[1], [0], [0], [1], [0, 0, 1, 1], [], []>} : vector<2x32xf32>, vector<32x32xf32>, vector<2x32xf32> -> vector<2x32xf32>
    %299 = arith.subf %294, %295 : vector<2x32xf32>
    %c13_273 = arith.constant 13 : index
    %c0_274 = arith.constant 0 : index
    %c0_275 = arith.constant 0 : index
    %300 = vector.load %arg5[%c13_273, %c0_274, %c0_275] : memref<16x2x32xf32, #tpu.memory_space<vmem>>, vector<1x2x32xf32>
    %301 = vector.shape_cast %300 : vector<1x2x32xf32> to vector<2x32xf32>
    %302 = vector.shape_cast %299 : vector<2x32xf32> to vector<1x2x32xf32>
    tpu.vector_store %arg5[%c13_273, %c0_274, %c0_275], %302 {strides = array<i32>} : memref<16x2x32xf32, #tpu.memory_space<vmem>>, vector<1x2x32xf32>,
    %303 = arith.subf %298, %294 : vector<2x32xf32>
    %304 = arith.subf %303, %295 : vector<2x32xf32>
    %c13_276 = arith.constant 13 : index
    %c0_277 = arith.constant 0 : index
    %c0_278 = arith.constant 0 : index
    %305 = vector.load %arg6[%c13_276, %c0_277, %c0_278] : memref<16x2x32xf32, #tpu.memory_space<vmem>>, vector<1x2x32xf32>
    %306 = vector.shape_cast %305 : vector<1x2x32xf32> to vector<2x32xf32>
    %307 = vector.shape_cast %304 : vector<2x32xf32> to vector<1x2x32xf32>
    tpu.vector_store %arg6[%c13_276, %c0_277, %c0_278], %307 {strides = array<i32>} : memref<16x2x32xf32, #tpu.memory_space<vmem>>, vector<1x2x32xf32>,
    %c14 = arith.constant 14 : index
    %c0_279 = arith.constant 0 : index
    %c0_280 = arith.constant 0 : index
    %308 = vector.load %arg1[%c14, %c0_279, %c0_280] : memref<16x2x32xf32, #tpu.memory_space<vmem>>, vector<1x2x32xf32>
    %309 = vector.shape_cast %308 : vector<1x2x32xf32> to vector<2x32xf32>
    %c14_281 = arith.constant 14 : index
    %c0_282 = arith.constant 0 : index
    %c0_283 = arith.constant 0 : index
    %310 = vector.load %arg2[%c14_281, %c0_282, %c0_283] : memref<16x2x32xf32, #tpu.memory_space<vmem>>, vector<1x2x32xf32>
    %311 = vector.shape_cast %310 : vector<1x2x32xf32> to vector<2x32xf32>
    %c14_284 = arith.constant 14 : index
    %c0_285 = arith.constant 0 : index
    %c0_286 = arith.constant 0 : index
    %312 = vector.load %arg3[%c14_284, %c0_285, %c0_286] : memref<16x32x32xf32, #tpu.memory_space<vmem>>, vector<1x32x32xf32>
    %313 = vector.shape_cast %312 : vector<1x32x32xf32> to vector<32x32xf32>
    %c14_287 = arith.constant 14 : index
    %c0_288 = arith.constant 0 : index
    %c0_289 = arith.constant 0 : index
    %314 = vector.load %arg4[%c14_287, %c0_288, %c0_289] : memref<16x32x32xf32, #tpu.memory_space<vmem>>, vector<1x32x32xf32>
    %315 = vector.shape_cast %314 : vector<1x32x32xf32> to vector<32x32xf32>
    %cst_290 = arith.constant dense<0.000000e+00> : vector<2x32xf32>
    %316 = tpu.matmul %309, %313, %cst_290 {dimension_numbers = #tpu.dot_dimension_numbers<[1], [0], [0], [1], [0, 0, 1, 1], [], []>} : vector<2x32xf32>, vector<32x32xf32>, vector<2x32xf32> -> vector<2x32xf32>
    %cst_291 = arith.constant dense<0.000000e+00> : vector<2x32xf32>
    %317 = tpu.matmul %311, %315, %cst_291 {dimension_numbers = #tpu.dot_dimension_numbers<[1], [0], [0], [1], [0, 0, 1, 1], [], []>} : vector<2x32xf32>, vector<32x32xf32>, vector<2x32xf32> -> vector<2x32xf32>
    %318 = arith.addf %309, %311 : vector<2x32xf32>
    %319 = arith.addf %313, %315 : vector<32x32xf32>
    %cst_292 = arith.constant dense<0.000000e+00> : vector<2x32xf32>
    %320 = tpu.matmul %318, %319, %cst_292 {dimension_numbers = #tpu.dot_dimension_numbers<[1], [0], [0], [1], [0, 0, 1, 1], [], []>} : vector<2x32xf32>, vector<32x32xf32>, vector<2x32xf32> -> vector<2x32xf32>
    %321 = arith.subf %316, %317 : vector<2x32xf32>
    %c14_293 = arith.constant 14 : index
    %c0_294 = arith.constant 0 : index
    %c0_295 = arith.constant 0 : index
    %322 = vector.load %arg5[%c14_293, %c0_294, %c0_295] : memref<16x2x32xf32, #tpu.memory_space<vmem>>, vector<1x2x32xf32>
    %323 = vector.shape_cast %322 : vector<1x2x32xf32> to vector<2x32xf32>
    %324 = vector.shape_cast %321 : vector<2x32xf32> to vector<1x2x32xf32>
    tpu.vector_store %arg5[%c14_293, %c0_294, %c0_295], %324 {strides = array<i32>} : memref<16x2x32xf32, #tpu.memory_space<vmem>>, vector<1x2x32xf32>,
    %325 = arith.subf %320, %316 : vector<2x32xf32>
    %326 = arith.subf %325, %317 : vector<2x32xf32>
    %c14_296 = arith.constant 14 : index
    %c0_297 = arith.constant 0 : index
    %c0_298 = arith.constant 0 : index
    %327 = vector.load %arg6[%c14_296, %c0_297, %c0_298] : memref<16x2x32xf32, #tpu.memory_space<vmem>>, vector<1x2x32xf32>
    %328 = vector.shape_cast %327 : vector<1x2x32xf32> to vector<2x32xf32>
    %329 = vector.shape_cast %326 : vector<2x32xf32> to vector<1x2x32xf32>
    tpu.vector_store %arg6[%c14_296, %c0_297, %c0_298], %329 {strides = array<i32>} : memref<16x2x32xf32, #tpu.memory_space<vmem>>, vector<1x2x32xf32>,
    %c15 = arith.constant 15 : index
    %c0_299 = arith.constant 0 : index
    %c0_300 = arith.constant 0 : index
    %330 = vector.load %arg1[%c15, %c0_299, %c0_300] : memref<16x2x32xf32, #tpu.memory_space<vmem>>, vector<1x2x32xf32>
    %331 = vector.shape_cast %330 : vector<1x2x32xf32> to vector<2x32xf32>
    %c15_301 = arith.constant 15 : index
    %c0_302 = arith.constant 0 : index
    %c0_303 = arith.constant 0 : index
    %332 = vector.load %arg2[%c15_301, %c0_302, %c0_303] : memref<16x2x32xf32, #tpu.memory_space<vmem>>, vector<1x2x32xf32>
    %333 = vector.shape_cast %332 : vector<1x2x32xf32> to vector<2x32xf32>
    %c15_304 = arith.constant 15 : index
    %c0_305 = arith.constant 0 : index
    %c0_306 = arith.constant 0 : index
    %334 = vector.load %arg3[%c15_304, %c0_305, %c0_306] : memref<16x32x32xf32, #tpu.memory_space<vmem>>, vector<1x32x32xf32>
    %335 = vector.shape_cast %334 : vector<1x32x32xf32> to vector<32x32xf32>
    %c15_307 = arith.constant 15 : index
    %c0_308 = arith.constant 0 : index
    %c0_309 = arith.constant 0 : index
    %336 = vector.load %arg4[%c15_307, %c0_308, %c0_309] : memref<16x32x32xf32, #tpu.memory_space<vmem>>, vector<1x32x32xf32>
    %337 = vector.shape_cast %336 : vector<1x32x32xf32> to vector<32x32xf32>
    %cst_310 = arith.constant dense<0.000000e+00> : vector<2x32xf32>
    %338 = tpu.matmul %331, %335, %cst_310 {dimension_numbers = #tpu.dot_dimension_numbers<[1], [0], [0], [1], [0, 0, 1, 1], [], []>} : vector<2x32xf32>, vector<32x32xf32>, vector<2x32xf32> -> vector<2x32xf32>
    %cst_311 = arith.constant dense<0.000000e+00> : vector<2x32xf32>
    %339 = tpu.matmul %333, %337, %cst_311 {dimension_numbers = #tpu.dot_dimension_numbers<[1], [0], [0], [1], [0, 0, 1, 1], [], []>} : vector<2x32xf32>, vector<32x32xf32>, vector<2x32xf32> -> vector<2x32xf32>
    %340 = arith.addf %331, %333 : vector<2x32xf32>
    %341 = arith.addf %335, %337 : vector<32x32xf32>
    %cst_312 = arith.constant dense<0.000000e+00> : vector<2x32xf32>
    %342 = tpu.matmul %340, %341, %cst_312 {dimension_numbers = #tpu.dot_dimension_numbers<[1], [0], [0], [1], [0, 0, 1, 1], [], []>} : vector<2x32xf32>, vector<32x32xf32>, vector<2x32xf32> -> vector<2x32xf32>
    %343 = arith.subf %338, %339 : vector<2x32xf32>
    %c15_313 = arith.constant 15 : index
    %c0_314 = arith.constant 0 : index
    %c0_315 = arith.constant 0 : index
    %344 = vector.load %arg5[%c15_313, %c0_314, %c0_315] : memref<16x2x32xf32, #tpu.memory_space<vmem>>, vector<1x2x32xf32>
    %345 = vector.shape_cast %344 : vector<1x2x32xf32> to vector<2x32xf32>
    %346 = vector.shape_cast %343 : vector<2x32xf32> to vector<1x2x32xf32>
    tpu.vector_store %arg5[%c15_313, %c0_314, %c0_315], %346 {strides = array<i32>} : memref<16x2x32xf32, #tpu.memory_space<vmem>>, vector<1x2x32xf32>,
    %347 = arith.subf %342, %338 : vector<2x32xf32>
    %348 = arith.subf %347, %339 : vector<2x32xf32>
    %c15_316 = arith.constant 15 : index
    %c0_317 = arith.constant 0 : index
    %c0_318 = arith.constant 0 : index
    %349 = vector.load %arg6[%c15_316, %c0_317, %c0_318] : memref<16x2x32xf32, #tpu.memory_space<vmem>>, vector<1x2x32xf32>
    %350 = vector.shape_cast %349 : vector<1x2x32xf32> to vector<2x32xf32>
    %351 = vector.shape_cast %348 : vector<2x32xf32> to vector<1x2x32xf32>
    tpu.vector_store %arg6[%c15_316, %c0_317, %c0_318], %351 {strides = array<i32>} : memref<16x2x32xf32, #tpu.memory_space<vmem>>, vector<1x2x32xf32>,
    return
  }
  func.func @transform_0(%arg0: i32) -> (i32, i32, i32) {
    %c0_i32 = arith.constant 0 : i32
    %c0_i32_0 = arith.constant 0 : i32
    %c0_i32_1 = arith.constant 0 : i32
    return %arg0, %c0_i32, %c0_i32_0 : i32, i32, i32
  }
  func.func @transform_1(%arg0: i32) -> (i32, i32, i32) {
    %c0_i32 = arith.constant 0 : i32
    %c0_i32_0 = arith.constant 0 : i32
    %c0_i32_1 = arith.constant 0 : i32
    return %arg0, %c0_i32, %c0_i32_0 : i32, i32, i32
  }
  func.func @transform_2(%arg0: i32) -> (i32, i32, i32) {
    %c0_i32 = arith.constant 0 : i32
    %c0_i32_0 = arith.constant 0 : i32
    %c0_i32_1 = arith.constant 0 : i32
    return %arg0, %c0_i32, %c0_i32_0 : i32, i32, i32
  }
  func.func @transform_3(%arg0: i32) -> (i32, i32, i32) {
    %c0_i32 = arith.constant 0 : i32
    %c0_i32_0 = arith.constant 0 : i32
    %c0_i32_1 = arith.constant 0 : i32
    return %arg0, %c0_i32, %c0_i32_0 : i32, i32, i32
  }
  func.func @transform_4(%arg0: i32) -> (i32, i32, i32) {
    %c0_i32 = arith.constant 0 : i32
    %c0_i32_0 = arith.constant 0 : i32
    %c0_i32_1 = arith.constant 0 : i32
    return %arg0, %c0_i32, %c0_i32_0 : i32, i32, i32
  }
  func.func @transform_5(%arg0: i32) -> (i32, i32, i32) {
    %c0_i32 = arith.constant 0 : i32
    %c0_i32_0 = arith.constant 0 : i32
    %c0_i32_1 = arith.constant 0 : i32
    return %arg0, %c0_i32, %c0_i32_0 : i32, i32, i32
  }
}

module attributes {stable_mosaic.version = 11 : i64} {
  func.func @_pw_res_kernel(%arg0: i32, %arg1: memref<128x128xf32, #tpu.memory_space<vmem>>, %arg2: memref<128x128xf32, #tpu.memory_space<vmem>>, %arg3: memref<128x128xf32, #tpu.memory_space<vmem>>, %arg4: memref<1x128xf32, #tpu.memory_space<vmem>>, %arg5: memref<1x128xf32, #tpu.memory_space<vmem>>, %arg6: memref<128x128xf32, #tpu.memory_space<vmem>>) attributes {dimension_semantics = [#tpu.dimension_semantics<parallel>], iteration_bounds = array<i64: 1>, scalar_prefetch = 0 : i64, scratch_operands = 0 : i64, tpu.core_type = #tpu.core_type<tc>, window_params = [{transform_indices = @transform_0, window_bounds = array<i64: 128, 128>}, {pipeline_mode = #tpu.pipeline_mode<synchronous>, transform_indices = @transform_1, window_bounds = array<i64: 128, 128>}, {transform_indices = @transform_2, window_bounds = array<i64: 128, 128>}, {pipeline_mode = #tpu.pipeline_mode<synchronous>, transform_indices = @transform_3, window_bounds = array<i64: 1, 128>}, {pipeline_mode = #tpu.pipeline_mode<synchronous>, transform_indices = @transform_4, window_bounds = array<i64: 1, 128>}, {transform_indices = @transform_5, window_bounds = array<i64: 128, 128>}]} {
    %c0 = arith.constant 0 : index
    %c0_0 = arith.constant 0 : index
    %0 = vector.load %arg1[%c0, %c0_0] : memref<128x128xf32, #tpu.memory_space<vmem>>, vector<128x128xf32>
    %c0_1 = arith.constant 0 : index
    %c0_2 = arith.constant 0 : index
    %1 = vector.load %arg2[%c0_1, %c0_2] : memref<128x128xf32, #tpu.memory_space<vmem>>, vector<128x128xf32>
    %cst = arith.constant dense<0.000000e+00> : vector<128x128xf32>
    %2 = tpu.matmul %0, %1, %cst {dimension_numbers = #tpu.dot_dimension_numbers<[1], [0], [0], [1], [0, 0, 1, 1], [], []>} : vector<128x128xf32>, vector<128x128xf32>, vector<128x128xf32> -> vector<128x128xf32>
    %c0_3 = arith.constant 0 : index
    %c0_4 = arith.constant 0 : index
    %3 = vector.load %arg3[%c0_3, %c0_4] : memref<128x128xf32, #tpu.memory_space<vmem>>, vector<128x128xf32>
    %c0_5 = arith.constant 0 : index
    %c0_6 = arith.constant 0 : index
    %4 = vector.load %arg4[%c0_5, %c0_6] : memref<1x128xf32, #tpu.memory_space<vmem>>, vector<1x128xf32>
    %5 = vector.broadcast %4 : vector<1x128xf32> to vector<128x128xf32>
    %6 = arith.mulf %3, %5 : vector<128x128xf32>
    %7 = arith.addf %2, %6 : vector<128x128xf32>
    %c0_7 = arith.constant 0 : index
    %c0_8 = arith.constant 0 : index
    %8 = vector.load %arg5[%c0_7, %c0_8] : memref<1x128xf32, #tpu.memory_space<vmem>>, vector<1x128xf32>
    %9 = vector.broadcast %8 : vector<1x128xf32> to vector<128x128xf32>
    %10 = arith.addf %7, %9 : vector<128x128xf32>
    %cst_9 = arith.constant 0.000000e+00 : f32
    %11 = vector.broadcast %cst_9 : f32 to vector<128x128xf32>
    %12 = arith.maximumf %10, %11 : vector<128x128xf32>
    %c0_10 = arith.constant 0 : index
    %c0_11 = arith.constant 0 : index
    %13 = vector.load %arg6[%c0_10, %c0_11] : memref<128x128xf32, #tpu.memory_space<vmem>>, vector<128x128xf32>
    tpu.vector_store %arg6[%c0_10, %c0_11], %12 {strides = array<i32>} : memref<128x128xf32, #tpu.memory_space<vmem>>, vector<128x128xf32>,
    return
  }
  func.func @transform_0(%arg0: i32) -> (i32, i32) {
    %c0_i32 = arith.constant 0 : i32
    %c0_i32_0 = arith.constant 0 : i32
    return %arg0, %c0_i32 : i32, i32
  }
  func.func @transform_1(%arg0: i32) -> (i32, i32) {
    %c0_i32 = arith.constant 0 : i32
    %c0_i32_0 = arith.constant 0 : i32
    %c0_i32_1 = arith.constant 0 : i32
    return %c0_i32, %c0_i32_0 : i32, i32
  }
  func.func @transform_2(%arg0: i32) -> (i32, i32) {
    %c0_i32 = arith.constant 0 : i32
    %c0_i32_0 = arith.constant 0 : i32
    return %arg0, %c0_i32 : i32, i32
  }
  func.func @transform_3(%arg0: i32) -> (i32, i32) {
    %c0_i32 = arith.constant 0 : i32
    %c0_i32_0 = arith.constant 0 : i32
    %c0_i32_1 = arith.constant 0 : i32
    return %c0_i32, %c0_i32_0 : i32, i32
  }
  func.func @transform_4(%arg0: i32) -> (i32, i32) {
    %c0_i32 = arith.constant 0 : i32
    %c0_i32_0 = arith.constant 0 : i32
    %c0_i32_1 = arith.constant 0 : i32
    return %c0_i32, %c0_i32_0 : i32, i32
  }
  func.func @transform_5(%arg0: i32) -> (i32, i32) {
    %c0_i32 = arith.constant 0 : i32
    %c0_i32_0 = arith.constant 0 : i32
    return %arg0, %c0_i32 : i32, i32
  }
}

module attributes {stable_mosaic.version = 11 : i64} {
  func.func @_head_kernel(%arg0: i32, %arg1: memref<128x128xf32, #tpu.memory_space<vmem>>, %arg2: memref<128x128xf32, #tpu.memory_space<vmem>>, %arg3: memref<128x128xf32, #tpu.memory_space<vmem>>, %arg4: memref<1x128xf32, #tpu.memory_space<vmem>>, %arg5: memref<1x128xf32, #tpu.memory_space<vmem>>, %arg6: memref<128x512xf32, #tpu.memory_space<vmem>>, %arg7: memref<1x512xf32, #tpu.memory_space<vmem>>, %arg8: memref<512x4xf32, #tpu.memory_space<vmem>>, %arg9: memref<1x4xf32, #tpu.memory_space<vmem>>, %arg10: memref<128x4xf32, #tpu.memory_space<vmem>>) attributes {dimension_semantics = [#tpu.dimension_semantics<parallel>], iteration_bounds = array<i64: 1>, scalar_prefetch = 0 : i64, scratch_operands = 0 : i64, tpu.core_type = #tpu.core_type<tc>, window_params = [{transform_indices = @transform_0, window_bounds = array<i64: 128, 128>}, {transform_indices = @transform_1, window_bounds = array<i64: 128, 128>}, {pipeline_mode = #tpu.pipeline_mode<synchronous>, transform_indices = @transform_2, window_bounds = array<i64: 128, 128>}, {pipeline_mode = #tpu.pipeline_mode<synchronous>, transform_indices = @transform_3, window_bounds = array<i64: 1, 128>}, {pipeline_mode = #tpu.pipeline_mode<synchronous>, transform_indices = @transform_4, window_bounds = array<i64: 1, 128>}, {pipeline_mode = #tpu.pipeline_mode<synchronous>, transform_indices = @transform_5, window_bounds = array<i64: 128, 512>}, {pipeline_mode = #tpu.pipeline_mode<synchronous>, transform_indices = @transform_6, window_bounds = array<i64: 1, 512>}, {pipeline_mode = #tpu.pipeline_mode<synchronous>, transform_indices = @transform_7, window_bounds = array<i64: 512, 4>}, {pipeline_mode = #tpu.pipeline_mode<synchronous>, transform_indices = @transform_8, window_bounds = array<i64: 1, 4>}, {transform_indices = @transform_9, window_bounds = array<i64: 128, 4>}]} {
    %c0 = arith.constant 0 : index
    %c0_0 = arith.constant 0 : index
    %0 = vector.load %arg1[%c0, %c0_0] : memref<128x128xf32, #tpu.memory_space<vmem>>, vector<128x128xf32>
    %c0_1 = arith.constant 0 : index
    %c0_2 = arith.constant 0 : index
    %1 = vector.load %arg3[%c0_1, %c0_2] : memref<128x128xf32, #tpu.memory_space<vmem>>, vector<128x128xf32>
    %cst = arith.constant dense<0.000000e+00> : vector<128x128xf32>
    %2 = tpu.matmul %0, %1, %cst {dimension_numbers = #tpu.dot_dimension_numbers<[1], [0], [0], [1], [0, 0, 1, 1], [], []>} : vector<128x128xf32>, vector<128x128xf32>, vector<128x128xf32> -> vector<128x128xf32>
    %c0_3 = arith.constant 0 : index
    %c0_4 = arith.constant 0 : index
    %3 = vector.load %arg2[%c0_3, %c0_4] : memref<128x128xf32, #tpu.memory_space<vmem>>, vector<128x128xf32>
    %c0_5 = arith.constant 0 : index
    %c0_6 = arith.constant 0 : index
    %4 = vector.load %arg4[%c0_5, %c0_6] : memref<1x128xf32, #tpu.memory_space<vmem>>, vector<1x128xf32>
    %5 = vector.broadcast %4 : vector<1x128xf32> to vector<128x128xf32>
    %6 = arith.mulf %3, %5 : vector<128x128xf32>
    %7 = arith.addf %2, %6 : vector<128x128xf32>
    %c0_7 = arith.constant 0 : index
    %c0_8 = arith.constant 0 : index
    %8 = vector.load %arg5[%c0_7, %c0_8] : memref<1x128xf32, #tpu.memory_space<vmem>>, vector<1x128xf32>
    %9 = vector.broadcast %8 : vector<1x128xf32> to vector<128x128xf32>
    %10 = arith.addf %7, %9 : vector<128x128xf32>
    %c0_9 = arith.constant 0 : index
    %c0_10 = arith.constant 0 : index
    %11 = vector.load %arg6[%c0_9, %c0_10] : memref<128x512xf32, #tpu.memory_space<vmem>>, vector<128x512xf32>
    %cst_11 = arith.constant dense<0.000000e+00> : vector<128x512xf32>
    %12 = tpu.matmul %10, %11, %cst_11 {dimension_numbers = #tpu.dot_dimension_numbers<[1], [0], [0], [1], [0, 0, 1, 1], [], []>} : vector<128x128xf32>, vector<128x512xf32>, vector<128x512xf32> -> vector<128x512xf32>
    %c0_12 = arith.constant 0 : index
    %c0_13 = arith.constant 0 : index
    %13 = vector.load %arg7[%c0_12, %c0_13] : memref<1x512xf32, #tpu.memory_space<vmem>>, vector<1x512xf32>
    %14 = vector.broadcast %13 : vector<1x512xf32> to vector<128x512xf32>
    %15 = arith.addf %12, %14 : vector<128x512xf32>
    %cst_14 = arith.constant 0.000000e+00 : f32
    %16 = vector.broadcast %cst_14 : f32 to vector<128x512xf32>
    %17 = arith.maximumf %15, %16 : vector<128x512xf32>
    %c0_15 = arith.constant 0 : index
    %c0_16 = arith.constant 0 : index
    %18 = vector.load %arg8[%c0_15, %c0_16] : memref<512x4xf32, #tpu.memory_space<vmem>>, vector<512x4xf32>
    %cst_17 = arith.constant dense<0.000000e+00> : vector<128x4xf32>
    %19 = tpu.matmul %17, %18, %cst_17 {dimension_numbers = #tpu.dot_dimension_numbers<[1], [0], [0], [1], [0, 0, 1, 1], [], []>} : vector<128x512xf32>, vector<512x4xf32>, vector<128x4xf32> -> vector<128x4xf32>
    %c0_18 = arith.constant 0 : index
    %c0_19 = arith.constant 0 : index
    %20 = vector.load %arg9[%c0_18, %c0_19] : memref<1x4xf32, #tpu.memory_space<vmem>>, vector<1x4xf32>
    %21 = vector.broadcast %20 : vector<1x4xf32> to vector<128x4xf32>
    %22 = arith.addf %19, %21 : vector<128x4xf32>
    %c0_20 = arith.constant 0 : index
    %c0_21 = arith.constant 0 : index
    %23 = vector.load %arg10[%c0_20, %c0_21] : memref<128x4xf32, #tpu.memory_space<vmem>>, vector<128x4xf32>
    tpu.vector_store %arg10[%c0_20, %c0_21], %22 {strides = array<i32>} : memref<128x4xf32, #tpu.memory_space<vmem>>, vector<128x4xf32>,
    return
  }
  func.func @transform_0(%arg0: i32) -> (i32, i32) {
    %c0_i32 = arith.constant 0 : i32
    %c0_i32_0 = arith.constant 0 : i32
    return %arg0, %c0_i32 : i32, i32
  }
  func.func @transform_1(%arg0: i32) -> (i32, i32) {
    %c0_i32 = arith.constant 0 : i32
    %c0_i32_0 = arith.constant 0 : i32
    return %arg0, %c0_i32 : i32, i32
  }
  func.func @transform_2(%arg0: i32) -> (i32, i32) {
    %c0_i32 = arith.constant 0 : i32
    %c0_i32_0 = arith.constant 0 : i32
    %c0_i32_1 = arith.constant 0 : i32
    return %c0_i32, %c0_i32_0 : i32, i32
  }
  func.func @transform_3(%arg0: i32) -> (i32, i32) {
    %c0_i32 = arith.constant 0 : i32
    %c0_i32_0 = arith.constant 0 : i32
    %c0_i32_1 = arith.constant 0 : i32
    return %c0_i32, %c0_i32_0 : i32, i32
  }
  func.func @transform_4(%arg0: i32) -> (i32, i32) {
    %c0_i32 = arith.constant 0 : i32
    %c0_i32_0 = arith.constant 0 : i32
    %c0_i32_1 = arith.constant 0 : i32
    return %c0_i32, %c0_i32_0 : i32, i32
  }
  func.func @transform_5(%arg0: i32) -> (i32, i32) {
    %c0_i32 = arith.constant 0 : i32
    %c0_i32_0 = arith.constant 0 : i32
    %c0_i32_1 = arith.constant 0 : i32
    return %c0_i32, %c0_i32_0 : i32, i32
  }
  func.func @transform_6(%arg0: i32) -> (i32, i32) {
    %c0_i32 = arith.constant 0 : i32
    %c0_i32_0 = arith.constant 0 : i32
    %c0_i32_1 = arith.constant 0 : i32
    return %c0_i32, %c0_i32_0 : i32, i32
  }
  func.func @transform_7(%arg0: i32) -> (i32, i32) {
    %c0_i32 = arith.constant 0 : i32
    %c0_i32_0 = arith.constant 0 : i32
    %c0_i32_1 = arith.constant 0 : i32
    return %c0_i32, %c0_i32_0 : i32, i32
  }
  func.func @transform_8(%arg0: i32) -> (i32, i32) {
    %c0_i32 = arith.constant 0 : i32
    %c0_i32_0 = arith.constant 0 : i32
    %c0_i32_1 = arith.constant 0 : i32
    return %c0_i32, %c0_i32_0 : i32, i32
  }
  func.func @transform_9(%arg0: i32) -> (i32, i32) {
    %c0_i32 = arith.constant 0 : i32
    %c0_i32_0 = arith.constant 0 : i32
    return %arg0, %c0_i32 : i32, i32
  }
}

</mosaic_0001>

<bundles_post_ra>
// kernel: tile.86
= control target key start
LH: loop header
LB: loop body
LE: loop exit
PB: predicated region body
PF: predicated region fallthrough
CT: control target
= control target key end

     0   :  { %s22_s0 = inlined_call_operand.vmem [shape: f32[32], index: 0, kind: input, shape index: {}]   ;;  %s23_s1 = inlined_call_operand.vmem [shape: f32[4,32], index: 1, kind: output, shape index: {}]  }
   0x1   :  { %v4_v0 = vld [vmem:[%s22_s0] ss:$0 sm:$0xff] }
   0x2   :  { %5 = vst [vmem:[%s23_s1] sm:$0xf] %v4_v0 }

// kernel: tile.87
= control target key start
LH: loop header
LB: loop body
LE: loop exit
PB: predicated region body
PF: predicated region fallthrough
CT: control target
= control target key end

     0   :  { %vm8_vm0 = vcmask 261120   ;;  %s40_s8 = smov 32   ;;  %s41_s9 = smov 64   ;;  %vm14_vm1 = vcmask 1048320   ;;  %vm20_vm2 = vcmask 785920   ;;  %vm26_vm3 = vcmask 523520   ;;  %s58_s0 = inlined_call_operand.vmem [shape: f32[4,32], index: 0, kind: input, shape index: {}]   ;;  %s59_s1 = inlined_call_operand.vmem [shape: f32[1,128], index: 1, kind: output, shape index: {}]  }
   0x1   :  { %v5_v0 = vld [vmem:[%s58_s0] sm:$0xf]  ;;  %s39_s0 = smov 96  }
   0x2   :  { %6 = vst [vmem:[#allocation1] sm:$0xf] %v5_v0 }
   0x9   :  { %v11_v1 = vld [vmem:[#allocation1 + $0x3] sm:$0x1]   ;;  %v23_v2 = vld [vmem:[#allocation1 + $0x1] sm:$0x1]   ;;  %v7_v3 = vld [vmem:[#allocation1] sm:$0x1]  }
   0xa   :  { %12 = vrot.lane.b32.xlu0 %v11_v1, %s39_s0  ;;  %24 = vrot.lane.b32.xlu1 %v23_v2, %s40_s8  ;;  %v17_v4 = vld [vmem:[#allocation1 + $0x2] sm:$0x1]   ;;  %9 = vst.msk [vmem:[#allocation0] sm:$0x1] %vm8_vm0, %v7_v3  }
   0xe   :  { %18 = vrot.lane.b32.xlu0 %v17_v4, %s41_s9 }
  0x7c   :  { %v13_v5 = vpop.permute.xlu0 %12   ;;  %v25_v6 = vpop.permute.xlu1 %24  }
  0x7d   :  { %15 = vst.msk [vmem:[#allocation0] sm:$0x1] %vm14_vm1, %v13_v5  }
  0x80   :  { %v19_v7 = vpop.permute.xlu0 %18  }
  0x81   :  { %21 = vst.msk [vmem:[#allocation0] sm:$0x1] %vm20_vm2, %v19_v7  }
  0x82   :  { %27 = vst.msk [vmem:[#allocation0] sm:$0x1] %vm26_vm3, %v25_v6  }
  0x89   :  { %v32_v8 = vld [vmem:[#allocation0] sm:$0x1] }
  0x8a   :  { %35 = vst [vmem:[%s59_s1] sm:$0x1] %v32_v8 }

// kernel: fno2d_forward.9
= control target key start
LH: loop header
LB: loop body
LE: loop exit
PB: predicated region body
PF: predicated region fallthrough
CT: control target
= control target key end

     0   :  { %vm43_vm0 = vcmask 392192   ;;  %s497_s1 = inlined_call_operand.vmem [shape: f32[48,128], index: 1, kind: input, shape index: {}]   ;;  %s498_s0 = inlined_call_operand.vmem [shape: f32[128,48], index: 0, kind: input, shape index: {}]   ;;  %s499_s2 = inlined_call_operand.vmem [shape: f32[1,128], index: 2, kind: input, shape index: {}]   ;;  %s500_s3 = inlined_call_operand.vmem [shape: f32[128,128], index: 3, kind: output, shape index: {}]  }
   0x1   :  { %v35_v0 = vld [vmem:[%s497_s1 + $0x28] sm:$0xff]  ;;  %v34_v1 = vld [vmem:[%s497_s1 + $0x20] sm:$0xff]  ;;  %v33_v2 = vld [vmem:[%s497_s1 + $0x18] sm:$0xff] }
   0x2   :  { %296 = vmatprep.subr.mxu0 %v35_v0  ;;  %332 = vmatprep.subr.mxu1 %v35_v0  ;;  %v32_v3 = vld [vmem:[%s497_s1 + $0x10] sm:$0xff]  ;;  %v31_v4 = vld [vmem:[%s497_s1 + $0x8] sm:$0xff]  ;;  %v30_v5 = vld [vmem:[%s497_s1] sm:$0xff] }
   0x3   :  { %297 = vmatpush3.msra.mxu0 %v35_v0  ;;  %338 = vmatpush3.msra.mxu1 %v35_v0  ;;  %v14_v6 = vld [vmem:[%s498_s0] sm:$0xff]  ;;  %v15_v8 = vld [vmem:[%s498_s0 + $0x8] sm:$0xff]  ;;  %v16_v10 = vld [vmem:[%s498_s0 + $0x10] sm:$0xff] }
   0x4   :  { %298 = vmatprep.subr.mxu0 %v34_v1  ;;  %333 = vmatprep.subr.mxu1 %v34_v1  ;;  %v22_v7 = vld [vmem:[%s498_s0 + $0x40] sm:$0xff]  ;;  %v23_v9 = vld [vmem:[%s498_s0 + $0x48] sm:$0xff]  ;;  %v24_v11 = vld [vmem:[%s498_s0 + $0x50] sm:$0xff] }
   0x5   :  { %299 = vmatpush3.msra.mxu0 %v34_v1  ;;  %339 = vmatpush3.msra.mxu1 %v34_v1  ;;  %v17_v12 = vld [vmem:[%s498_s0 + $0x18] sm:$0xff]  ;;  %v18_v14 = vld [vmem:[%s498_s0 + $0x20] sm:$0xff]  ;;  %v19_v16 = vld [vmem:[%s498_s0 + $0x28] sm:$0xff] }
   0x6   :  { %300 = vmatprep.subr.mxu0 %v33_v2  ;;  %334 = vmatprep.subr.mxu1 %v33_v2  ;;  %v25_v13 = vld [vmem:[%s498_s0 + $0x58] sm:$0xff]  ;;  %v26_v15 = vld [vmem:[%s498_s0 + $0x60] sm:$0xff]  ;;  %v27_v17 = vld [vmem:[%s498_s0 + $0x68] sm:$0xff] }
   0x7   :  { %301 = vmatpush3.msra.mxu0 %v33_v2  ;;  %340 = vmatpush3.msra.mxu1 %v33_v2  ;;  %v20_v18 = vld [vmem:[%s498_s0 + $0x30] sm:$0xff]  ;;  %v21_v20 = vld [vmem:[%s498_s0 + $0x38] sm:$0xff]  ;;  %v257_v22 = vld [vmem:[%s499_s2] ss:$0 sm:$0xff] }
   0x8   :  { %302 = vmatprep.subr.mxu0 %v32_v3  ;;  %335 = vmatprep.subr.mxu1 %v32_v3  ;;  %v28_v19 = vld [vmem:[%s498_s0 + $0x70] sm:$0xff]  ;;  %v29_v21 = vld [vmem:[%s498_s0 + $0x78] sm:$0xff] }
   0x9   :  { %303 = vmatpush3.msra.mxu0 %v32_v3  ;;  %341 = vmatpush3.msra.mxu1 %v32_v3 }
   0xa   :  { %304 = vmatprep.subr.mxu0 %v31_v4  ;;  %336 = vmatprep.subr.mxu1 %v31_v4 }
   0xb   :  { %305 = vmatpush3.msra.mxu0 %v31_v4  ;;  %342 = vmatpush3.msra.mxu1 %v31_v4 }
   0xc   :  { %306 = vmatprep.subr.mxu0 %v30_v5  ;;  %337 = vmatprep.subr.mxu1 %v30_v5 }
   0xd   :  { %307 = vmatpush3.msra.mxu0 %v30_v5  ;;  %343 = vmatpush3.msra.mxu1 %v30_v5 }
   0xe   :  { %308 = vmatprep.mubr.msk.f32.mxu0 %vm43_vm0, %v14_v6  ;;  %320 = vmatprep.mubr.msk.f32.mxu1 %vm43_vm0, %v22_v7 }
   0xf   :  { %309 = vmatmul.mubr.msk.f32.vlgmr.msra.gmra.mxu0 %vm43_vm0, %v15_v8  ;;  %321 = vmatmul.mubr.msk.f32.vlgmr.msra.gmra.mxu1 %vm43_vm0, %v23_v9 }
  0x10   :  { %311 = vmatprep.mubr.msk.f32.mxu0 %vm43_vm0, %v16_v10  ;;  %323 = vmatprep.mubr.msk.f32.mxu1 %vm43_vm0, %v24_v11 }
  0x13   :  { %312 = vmatmul.mubr.msk.f32.gmra.mxu0 %vm43_vm0, %v17_v12  ;;  %324 = vmatmul.mubr.msk.f32.gmra.mxu1 %vm43_vm0, %v25_v13 }
  0x14   :  { %314 = vmatprep.mubr.msk.f32.mxu0 %vm43_vm0, %v18_v14  ;;  %326 = vmatprep.mubr.msk.f32.mxu1 %vm43_vm0, %v26_v15 }
  0x17   :  { %315 = vmatmul.mubr.msk.f32.gmra.mxu0 %vm43_vm0, %v19_v16  ;;  %327 = vmatmul.mubr.msk.f32.gmra.mxu1 %vm43_vm0, %v27_v17 }
  0x18   :  { %317 = vmatprep.mubr.msk.f32.mxu0 %vm43_vm0, %v20_v18  ;;  %329 = vmatprep.mubr.msk.f32.mxu1 %vm43_vm0, %v28_v19 }
  0x1b   :  { %318 = vmatmul.mubr.msk.f32.gmra.mxu0 %vm43_vm0, %v21_v20  ;;  %330 = vmatmul.mubr.msk.f32.gmra.mxu1 %vm43_vm0, %v29_v21 }
  0xcf   :  { %v310_v23 = vpop.f32.mrf.mxu0  ;;  %v322_v24 = vpop.f32.mrf.mxu1 }
  0xd0   :  { %v164_v25 = vadd.f32 %v310_v23, %v257_v22  ;;  %v204_v26 = vadd.f32 %v322_v24, %v257_v22 }
  0xd1   :  { %v158_v27 = vpop.f32.mrf.mxu0  ;;  %v198_v28 = vpop.f32.mrf.mxu1 }
  0xd2   :  { %238 = vst [vmem:[%s500_s3 + $0x8] sm:$0xff] %v164_v25  ;;  %246 = vst [vmem:[%s500_s3 + $0x48] sm:$0xff] %v204_v26  ;;  %v159_v29 = vadd.f32 %v257_v22, %v158_v27  ;;  %v199_v30 = vadd.f32 %v257_v22, %v198_v28 }
  0xd3   :  { %v313_v31 = vpop.f32.mrf.mxu0  ;;  %v325_v32 = vpop.f32.mrf.mxu1 }
  0xd4   :  { %237 = vst [vmem:[%s500_s3] sm:$0xff] %v159_v29  ;;  %245 = vst [vmem:[%s500_s3 + $0x40] sm:$0xff] %v199_v30  ;;  %v174_v33 = vadd.f32 %v313_v31, %v257_v22  ;;  %v214_v34 = vadd.f32 %v325_v32, %v257_v22 }
  0xd5   :  { %v168_v35 = vpop.f32.mrf.mxu0  ;;  %v208_v36 = vpop.f32.mrf.mxu1 }
  0xd6   :  { %240 = vst [vmem:[%s500_s3 + $0x18] sm:$0xff] %v174_v33  ;;  %248 = vst [vmem:[%s500_s3 + $0x58] sm:$0xff] %v214_v34  ;;  %v169_v37 = vadd.f32 %v257_v22, %v168_v35  ;;  %v209_v38 = vadd.f32 %v257_v22, %v208_v36 }
  0xd7   :  { %v316_v39 = vpop.f32.mrf.mxu0  ;;  %v328_v40 = vpop.f32.mrf.mxu1 }
  0xd8   :  { %239 = vst [vmem:[%s500_s3 + $0x10] sm:$0xff] %v169_v37  ;;  %247 = vst [vmem:[%s500_s3 + $0x50] sm:$0xff] %v209_v38  ;;  %v184_v41 = vadd.f32 %v316_v39, %v257_v22  ;;  %v224_v42 = vadd.f32 %v328_v40, %v257_v22 }
  0xd9   :  { %v178_v43 = vpop.f32.mrf.mxu0  ;;  %v218_v44 = vpop.f32.mrf.mxu1 }
  0xda   :  { %242 = vst [vmem:[%s500_s3 + $0x28] sm:$0xff] %v184_v41  ;;  %250 = vst [vmem:[%s500_s3 + $0x68] sm:$0xff] %v224_v42  ;;  %v179_v45 = vadd.f32 %v257_v22, %v178_v43  ;;  %v219_v46 = vadd.f32 %v257_v22, %v218_v44 }
  0xdb   :  { %v319_v47 = vpop.f32.mrf.mxu0  ;;  %v331_v48 = vpop.f32.mrf.mxu1 }
  0xdc   :  { %241 = vst [vmem:[%s500_s3 + $0x20] sm:$0xff] %v179_v45  ;;  %249 = vst [vmem:[%s500_s3 + $0x60] sm:$0xff] %v219_v46  ;;  %v194_v49 = vadd.f32 %v319_v47, %v257_v22  ;;  %v234_v50 = vadd.f32 %v331_v48, %v257_v22 }
  0xdd   :  { %v188_v51 = vpop.f32.mrf.mxu0  ;;  %v228_v52 = vpop.f32.mrf.mxu1 }
  0xde   :  { %244 = vst [vmem:[%s500_s3 + $0x38] sm:$0xff] %v194_v49  ;;  %252 = vst [vmem:[%s500_s3 + $0x78] sm:$0xff] %v234_v50  ;;  %v189_v53 = vadd.f32 %v257_v22, %v188_v51  ;;  %v229_v54 = vadd.f32 %v257_v22, %v228_v52 }
  0xe0   :  { %243 = vst [vmem:[%s500_s3 + $0x30] sm:$0xff] %v189_v53  ;;  %251 = vst [vmem:[%s500_s3 + $0x70] sm:$0xff] %v229_v54 }

// kernel: reverse.8
= control target key start
LH: loop header
LB: loop body
LE: loop exit
PB: predicated region body
PF: predicated region fallthrough
CT: control target
= control target key end

     0   :  { %s344_s0 = inlined_call_operand.vmem [shape: f32[2,32,16,7], index: 0, kind: input, shape index: {}]   ;;  %s345_s1 = inlined_call_operand.vmem [shape: f32[2,32,16,7], index: 1, kind: output, shape index: {}]  }
   0x1   :  { %v112_v0 = vld [vmem:[%s344_s0 + $0x60] sm:$0xff]  ;;  %v113_v1 = vld [vmem:[%s344_s0 + $0xd0] sm:$0xff]  ;;  %v138_v14 = vld [vmem:[%s344_s0 + $0x68] sm:$0xff] }
   0x2   :  { %v115_v2 = vld [vmem:[%s344_s0 + $0x50] sm:$0xff]  ;;  %4 = vst [vmem:[%s345_s1] sm:$0xff] %v112_v0  ;;  %114 = vst [vmem:[%s345_s1 + $0x70] sm:$0xff] %v113_v1  ;;  %v117_v3 = vld [vmem:[%s344_s0 + $0xc0] sm:$0xff] }
   0x3   :  { %116 = vst [vmem:[%s345_s1 + $0x10] sm:$0xff] %v115_v2  ;;  %v119_v4 = vld [vmem:[%s344_s0 + $0x40] sm:$0xff]  ;;  %v121_v5 = vld [vmem:[%s344_s0 + $0xb0] sm:$0xff]  ;;  %118 = vst [vmem:[%s345_s1 + $0x80] sm:$0xff] %v117_v3 }
   0x4   :  { %120 = vst [vmem:[%s345_s1 + $0x20] sm:$0xff] %v119_v4  ;;  %122 = vst [vmem:[%s345_s1 + $0x90] sm:$0xff] %v121_v5  ;;  %v123_v6 = vld [vmem:[%s344_s0 + $0x30] sm:$0xff]  ;;  %v125_v7 = vld [vmem:[%s344_s0 + $0xa0] sm:$0xff] }
   0x5   :  { %v127_v8 = vld [vmem:[%s344_s0 + $0x20] sm:$0xff]  ;;  %124 = vst [vmem:[%s345_s1 + $0x30] sm:$0xff] %v123_v6  ;;  %126 = vst [vmem:[%s345_s1 + $0xa0] sm:$0xff] %v125_v7  ;;  %v129_v9 = vld [vmem:[%s344_s0 + $0x90] sm:$0xff] }
   0x6   :  { %128 = vst [vmem:[%s345_s1 + $0x40] sm:$0xff] %v127_v8  ;;  %v131_v10 = vld [vmem:[%s344_s0 + $0x10] sm:$0xff]  ;;  %v133_v11 = vld [vmem:[%s344_s0 + $0x80] sm:$0xff]  ;;  %130 = vst [vmem:[%s345_s1 + $0xb0] sm:$0xff] %v129_v9 }
   0x7   :  { %132 = vst [vmem:[%s345_s1 + $0x50] sm:$0xff] %v131_v10  ;;  %134 = vst [vmem:[%s345_s1 + $0xc0] sm:$0xff] %v133_v11  ;;  %v49_v12 = vld [vmem:[%s344_s0] sm:$0xff]  ;;  %v136_v13 = vld [vmem:[%s344_s0 + $0x70] sm:$0xff] }
   0x8   :  { %135 = vst [vmem:[%s345_s1 + $0x60] sm:$0xff] %v49_v12  ;;  %137 = vst [vmem:[%s345_s1 + $0xd0] sm:$0xff] %v136_v13  ;;  %v140_v15 = vld [vmem:[%s344_s0 + $0xd8] sm:$0xff]  ;;  %v144_v17 = vld [vmem:[%s344_s0 + $0xc8] sm:$0xff] }
   0x9   :  { %139 = vst [vmem:[%s345_s1 + $0x8] sm:$0xff] %v138_v14  ;;  %v142_v16 = vld [vmem:[%s344_s0 + $0x58] sm:$0xff]  ;;  %141 = vst [vmem:[%s345_s1 + $0x78] sm:$0xff] %v140_v15  ;;  %v146_v18 = vld [vmem:[%s344_s0 + $0x48] sm:$0xff] }
   0xa   :  { %143 = vst [vmem:[%s345_s1 + $0x18] sm:$0xff] %v142_v16  ;;  %145 = vst [vmem:[%s345_s1 + $0x88] sm:$0xff] %v144_v17  ;;  %v148_v19 = vld [vmem:[%s344_s0 + $0xb8] sm:$0xff]  ;;  %v152_v21 = vld [vmem:[%s344_s0 + $0xa8] sm:$0xff] }
   0xb   :  { %v150_v20 = vld [vmem:[%s344_s0 + $0x38] sm:$0xff]  ;;  %147 = vst [vmem:[%s345_s1 + $0x28] sm:$0xff] %v146_v18  ;;  %149 = vst [vmem:[%s345_s1 + $0x98] sm:$0xff] %v148_v19  ;;  %v154_v22 = vld [vmem:[%s344_s0 + $0x28] sm:$0xff] }
   0xc   :  { %151 = vst [vmem:[%s345_s1 + $0x38] sm:$0xff] %v150_v20  ;;  %v156_v23 = vld [vmem:[%s344_s0 + $0x98] sm:$0xff]  ;;  %153 = vst [vmem:[%s345_s1 + $0xa8] sm:$0xff] %v152_v21  ;;  %v160_v25 = vld [vmem:[%s344_s0 + $0x88] sm:$0xff] }
   0xd   :  { %155 = vst [vmem:[%s345_s1 + $0x48] sm:$0xff] %v154_v22  ;;  %157 = vst [vmem:[%s345_s1 + $0xb8] sm:$0xff] %v156_v23  ;;  %v158_v24 = vld [vmem:[%s344_s0 + $0x18] sm:$0xff]  ;;  %v162_v26 = vld [vmem:[%s344_s0 + $0x8] sm:$0xff] }
   0xe   :  { %159 = vst [vmem:[%s345_s1 + $0x58] sm:$0xff] %v158_v24  ;;  %161 = vst [vmem:[%s345_s1 + $0xc8] sm:$0xff] %v160_v25  ;;  %v164_v27 = vld [vmem:[%s344_s0 + $0x78] sm:$0xff] }
   0xf   :  { %163 = vst [vmem:[%s345_s1 + $0x68] sm:$0xff] %v162_v26  ;;  %165 = vst [vmem:[%s345_s1 + $0xd8] sm:$0xff] %v164_v27 }

// kernel: fno2d_forward.10
= control target key start
LH: loop header
LB: loop body
LE: loop exit
PB: predicated region body
PF: predicated region fallthrough
CT: control target
= control target key end

     0   :  { %s5425_s18 = smov 0   ;;  %s6032_s0 = inlined_call_operand.vmem [shape: f32[32,2,32], index: 0, kind: input, shape index: {}]   ;;  %s6033_s1 = inlined_call_operand.vmem [shape: f32[32,2,32], index: 1, kind: input, shape index: {}]   ;;  %s6034_s2 = inlined_call_operand.vmem [shape: f32[32,32,32], index: 2, kind: input, shape index: {}]   ;;  %s6035_s3 = inlined_call_operand.vmem [shape: f32[32,32,32], index: 3, kind: input, shape index: {}]   ;;  %s6036_s4 = inlined_call_operand.vmem [shape: f32[32,2,32], index: 4, kind: output, shape index: {0}]   ;;  %s6037_s5 = inlined_call_operand.vmem [shape: f32[32,2,32], index: 5, kind: output, shape index: {1}]  }
   0x1 LB: > { %s4356_s19 = sadd.s32 4294967295, %s5391_s18   ;;  %p4360_p0 = scmp.ge.s32.totalorder %s5391_s18, 1  ;;  %s5391_s18 = sphi %s5425_s18, %s16_s18  }
   0x2   : > { %p226_p1 = scmp.lt.s32.totalorder %s5391_s18, 3 }
   0x4   : > { %p227_p2 = pnand %p4360_p0, %p226_p1 }
   0x5   : > { %s4361_s20 = sshll.u32 (!%p227_p2), %s4356_s19, 4 }
   0x6   : > { %230 = sbr.rel (%p227_p2) target bundleno = 451 (0x1c3), region = 36  ;;  %p277_p3 = scmp.lt.s32.totalorder (!%p227_p2), %s4361_s20, 31 }
   0xb   : > { %v5393_v0 = vmov 0.0   ;;  %vm5394_vm0 = vmmov 0   ;;  %s6039_s20 = smov (!%p277_p3, %s4361_s20), 31  ;;  %vm324_vm1 = vcmask 261120   ;;  %vm550_vm2 = vcmask 254976  }
   0xc   : > { %4847 = vmatprep.subr.mxu0 %v5393_v0  ;;  %4858 = vmatprep.subr.mxu1 %v5393_v0  ;;  %s4605_s21 = sshll.u32 %s6039_s20, 5  ;;  %s5439_s22 = sshll.u32 %s6039_s20, 1 }
   0xd   : > { %4866 = vmatprep.mubr.msk.f32.mxu1 %vm5394_vm0, %v5393_v0  ;;  %4855 = vmatprep.mubr.msk.f32.mxu0 %vm5394_vm0, %v5393_v0  ;;  %s5444_s25 = scalar_lea.vmem %s6034_s2, %s4605_s21  ;;  %s5449_s28 = scalar_lea.vmem %s6035_s3, %s4605_s21 }
   0xe   : > { %v319_v1 = vld [vmem:[%s5444_s25 + $0x18] sm:$0xff]  ;;  %v318_v3 = vld [vmem:[%s5444_s25 + $0x10] sm:$0xff]  ;;  %v317_v5 = vld [vmem:[%s5444_s25 + $0x8] sm:$0xff]  ;;  %s5463_s6 = scalar_lea.vmem %s6033_s1, %s5439_s22  ;;  %s5469_s9 = scalar_lea.vmem %s6032_s0, %s5439_s22 }
   0xf   : > { %v323_v2 = vld [vmem:[%s5449_s28 + $0x18] sm:$0xff]  ;;  %4848 = vmatpush3.msra.mxu0 %v319_v1  ;;  %v322_v4 = vld [vmem:[%s5449_s28 + $0x10] sm:$0xff]  ;;  %v321_v6 = vld [vmem:[%s5449_s28 + $0x8] sm:$0xff]  ;;  %s5885_s12 = scalar_lea.vmem %s6036_s4, %s5439_s22  ;;  %s5913_s15 = scalar_lea.vmem %s6037_s5, %s5439_s22 }
  0x10   : > { %4859 = vmatpush3.msra.mxu1 %v323_v2  ;;  %4849 = vmatprep.subr.mxu0 %v5393_v0  ;;  %v316_v7 = vld [vmem:[%s5444_s25] sm:$0xff]  ;;  %v475_v10 = vadd.f32 %v323_v2, %v319_v1  ;;  %v4383_v12 = vld [vmem:[%s5444_s25 + $0x38] sm:$0xff]  ;;  %v474_v13 = vadd.f32 %v322_v4, %v318_v3  ;;  %v4382_v14 = vld [vmem:[%s5444_s25 + $0x30] sm:$0xff]  ;;  %v473_v15 = vadd.f32 %v321_v6, %v317_v5 }
  0x11   : > { %4860 = vmatprep.subr.mxu1 %v5393_v0  ;;  %4850 = vmatpush3.msra.mxu0 %v318_v3  ;;  %v320_v8 = vld [vmem:[%s5449_s28] sm:$0xff]  ;;  %v4381_v16 = vld [vmem:[%s5444_s25 + $0x28] sm:$0xff]  ;;  %v4387_v18 = vld [vmem:[%s5449_s28 + $0x38] sm:$0xff] }
  0x12   : > { %4861 = vmatpush3.msra.mxu1 %v322_v4  ;;  %4851 = vmatprep.subr.mxu0 %v5393_v0  ;;  %v315_v9 = vld [vmem:[%s5463_s6] sm:$0x3]  ;;  %v472_v17 = vadd.f32 %v320_v8, %v316_v7  ;;  %v4378_v21 = vld [vmem:[%s5469_s9 + $0x2] sm:$0x3]  ;;  %v4386_v22 = vld [vmem:[%s5449_s28 + $0x30] sm:$0xff]  ;;  %v719_v23 = vadd.f32 %v4387_v18, %v4383_v12 }
  0x13   : > { %4862 = vmatprep.subr.mxu1 %v5393_v0  ;;  %4852 = vmatpush3.msra.mxu0 %v317_v5  ;;  %v314_v11 = vld [vmem:[%s5469_s9] sm:$0x3]  ;;  %v4385_v24 = vld [vmem:[%s5449_s28 + $0x28] sm:$0xff]  ;;  %v718_v25 = vadd.f32 %v4386_v22, %v4382_v14  ;;  %v4379_v28 = vld [vmem:[%s5463_s6 + $0x2] sm:$0x3] }
  0x14   : > { %4863 = vmatpush3.msra.mxu1 %v321_v6  ;;  %4853 = vmatprep.subr.mxu0 %v5393_v0  ;;  %v471_v19 = vadd.f32 %v315_v9, %v314_v11  ;;  %v4380_v20 = vld [vmem:[%s5444_s25 + $0x20] sm:$0xff]  ;;  %v717_v26 = vadd.f32 %v4385_v24, %v4381_v16  ;;  %v715_v30 = vadd.f32 %v4379_v28, %v4378_v21  ;;  %v4398_v31 = vld [vmem:[%s5444_s25 + $0x58] sm:$0xff]  ;;  %v4397_v33 = vld [vmem:[%s5444_s25 + $0x50] sm:$0xff] }
  0x15   : > { %4864 = vmatprep.subr.mxu1 %v5393_v0  ;;  %4854 = vmatpush3.msra.mxu0 %v316_v7  ;;  %v4384_v27 = vld [vmem:[%s5449_s28 + $0x20] sm:$0xff]  ;;  %v4402_v32 = vld [vmem:[%s5449_s28 + $0x58] sm:$0xff]  ;;  %v4401_v34 = vld [vmem:[%s5449_s28 + $0x50] sm:$0xff] }
  0x16   : > { %4865 = vmatpush3.msra.mxu1 %v320_v8  ;;  %4869 = vmatprep.subr.mxu0 %v5393_v0  ;;  %v716_v29 = vadd.f32 %v4384_v27, %v4380_v20  ;;  %v4396_v35 = vld [vmem:[%s5444_s25 + $0x48] sm:$0xff]  ;;  %v4395_v37 = vld [vmem:[%s5444_s25 + $0x40] sm:$0xff]  ;;  %v964_v40 = vadd.f32 %v4402_v32, %v4398_v31  ;;  %v4413_v42 = vld [vmem:[%s5444_s25 + $0x78] sm:$0xff]  ;;  %v963_v43 = vadd.f32 %v4401_v34, %v4397_v33 }
  0x17   : > { %4867 = vmatmul.mubr.msk.f32.vlgmr.msra.gmra.mxu1 %vm324_vm1, %v315_v9  ;;  %4880 = vmatprep.subr.mxu1 %v5393_v0  ;;  %v4400_v36 = vld [vmem:[%s5449_s28 + $0x48] sm:$0xff]  ;;  %v4399_v38 = vld [vmem:[%s5449_s28 + $0x40] sm:$0xff]  ;;  %v4412_v44 = vld [vmem:[%s5444_s25 + $0x70] sm:$0xff] }
  0x18   : > { %4856 = vmatmul.mubr.msk.f32.vlgmr.msra.gmra.mxu0 %vm324_vm1, %v314_v11  ;;  %4881 = vmatpush3.msra.mxu1 %v4383_v12  ;;  %v4394_v39 = vld [vmem:[%s5463_s6 + $0x4] sm:$0x3]  ;;  %v962_v45 = vadd.f32 %v4400_v36, %v4396_v35  ;;  %v4411_v46 = vld [vmem:[%s5444_s25 + $0x68] sm:$0xff]  ;;  %v961_v47 = vadd.f32 %v4399_v38, %v4395_v37  ;;  %v4417_v48 = vld [vmem:[%s5449_s28 + $0x78] sm:$0xff] }
  0x19   : > { %4870 = vmatpush3.msra.mxu0 %v475_v10  ;;  %4882 = vmatprep.subr.mxu1 %v5393_v0  ;;  %v4393_v41 = vld [vmem:[%s5469_s9 + $0x4] sm:$0x3]  ;;  %v4408_v51 = vld [vmem:[%s5469_s9 + $0x6] sm:$0x3]  ;;  %v4416_v52 = vld [vmem:[%s5449_s28 + $0x70] sm:$0xff]  ;;  %v1209_v53 = vadd.f32 %v4417_v48, %v4413_v42 }
  0x1a   : > { %4871 = vmatprep.subr.mxu0 %v5393_v0  ;;  %4883 = vmatpush3.msra.mxu1 %v4382_v14  ;;  %v960_v49 = vadd.f32 %v4394_v39, %v4393_v41  ;;  %v4410_v50 = vld [vmem:[%s5444_s25 + $0x60] sm:$0xff]  ;;  %v4415_v54 = vld [vmem:[%s5449_s28 + $0x68] sm:$0xff]  ;;  %v1208_v55 = vadd.f32 %v4416_v52, %v4412_v44  ;;  %v4428_v61 = vld [vmem:[%s5444_s25 + $0x98] sm:$0xff] }
  0x1b   : > { %4872 = vmatpush3.msra.mxu0 %v474_v13  ;;  %4884 = vmatprep.subr.mxu1 %v5393_v0  ;;  %v1207_v56 = vadd.f32 %v4415_v54, %v4411_v46  ;;  %v4414_v57 = vld [vmem:[%s5449_s28 + $0x60] sm:$0xff]  ;;  %v4432_v62 = vld [vmem:[%s5449_s28 + $0x98] sm:$0xff]  ;;  %v4427_v63 = vld [vmem:[%s5444_s25 + $0x90] sm:$0xff] }
  0x1c   : > { %4873 = vmatprep.subr.mxu0 %v5393_v0  ;;  %4885 = vmatpush3.msra.mxu1 %v4381_v16  ;;  %v4409_v58 = vld [vmem:[%s5463_s6 + $0x6] sm:$0x3]  ;;  %v1206_v59 = vadd.f32 %v4414_v57, %v4410_v50  ;;  %v4431_v1 = vld [vmem:[%s5449_s28 + $0x90] sm:$0xff]  ;;  %v4426_v2 = vld [vmem:[%s5444_s25 + $0x88] sm:$0xff]  ;;  %v1454_v7 = vadd.f32 %v4432_v62, %v4428_v61 }
  0x1d   : > { %4874 = vmatpush3.msra.mxu0 %v473_v15  ;;  %4886 = vmatprep.subr.mxu1 %v5393_v0  ;;  %v1205_v60 = vadd.f32 %v4409_v58, %v4408_v51  ;;  %v4430_v3 = vld [vmem:[%s5449_s28 + $0x88] sm:$0xff]  ;;  %v4425_v4 = vld [vmem:[%s5444_s25 + $0x80] sm:$0xff]  ;;  %v4443_v9 = vld [vmem:[%s5444_s25 + $0xb8] sm:$0xff]  ;;  %v1453_v10 = vadd.f32 %v4431_v1, %v4427_v63 }
  0x1e   : > { %4875 = vmatprep.subr.mxu0 %v5393_v0  ;;  %4877 = vmatprep.mubr.msk.f32.mxu0 %vm5394_vm0, %v5393_v0  ;;  %v4429_v5 = vld [vmem:[%s5449_s28 + $0x80] sm:$0xff]  ;;  %v4424_v6 = vld [vmem:[%s5463_s6 + $0x8] sm:$0x3]  ;;  %v4442_v11 = vld [vmem:[%s5444_s25 + $0xb0] sm:$0xff]  ;;  %v1452_v12 = vadd.f32 %v4430_v3, %v4426_v2 }
  0x1f   : > { %4876 = vmatpush3.msra.mxu0 %v472_v17  ;;  %4887 = vmatpush3.msra.mxu1 %v4380_v20  ;;  %v4423_v8 = vld [vmem:[%s5469_s9 + $0x8] sm:$0x3]  ;;  %v1451_v14 = vadd.f32 %v4429_v5, %v4425_v4  ;;  %v4447_v15 = vld [vmem:[%s5449_s28 + $0xb8] sm:$0xff]  ;;  %v4440_v17 = vld [vmem:[%s5444_s25 + $0xa0] sm:$0xff] }
  0x20   : > { %4888 = vmatprep.mubr.msk.f32.mxu1 %vm5394_vm0, %v5393_v0  ;;  %4878 = vmatmul.mubr.msk.f32.vlgmr.msra.gmra.mxu0 %vm324_vm1, %v471_v19  ;;  %v4441_v13 = vld [vmem:[%s5444_s25 + $0xa8] sm:$0xff]  ;;  %v1450_v16 = vadd.f32 %v4424_v6, %v4423_v8  ;;  %v4446_v19 = vld [vmem:[%s5449_s28 + $0xb0] sm:$0xff]  ;;  %v1699_v20 = vadd.f32 %v4447_v15, %v4443_v9 }
  0x21   : > { %4889 = vmatmul.mubr.msk.f32.vlgmr.msra.gmra.mxu1 %vm324_vm1, %v4378_v21  ;;  %4891 = vmatprep.subr.mxu0 %v5393_v0  ;;  %v4445_v21 = vld [vmem:[%s5449_s28 + $0xa8] sm:$0xff] }
  0x22   : > { %4902 = vmatprep.subr.mxu1 %v5393_v0  ;;  %4892 = vmatpush3.msra.mxu0 %v4387_v18  ;;  %v4438_v18 = vld [vmem:[%s5469_s9 + $0xa] sm:$0x3] }
  0x23   : > { %4903 = vmatpush3.msra.mxu1 %v719_v23  ;;  %4893 = vmatprep.subr.mxu0 %v5393_v0  ;;  %v1697_v23 = vadd.f32 %v4445_v21, %v4441_v13 }
  0x24   : > { %4904 = vmatprep.subr.mxu1 %v5393_v0  ;;  %4894 = vmatpush3.msra.mxu0 %v4386_v22  ;;  %v1698_v22 = vadd.f32 %v4446_v19, %v4442_v11 }
  0x25   : > { %4905 = vmatpush3.msra.mxu1 %v718_v25  ;;  %4895 = vmatprep.subr.mxu0 %v5393_v0  ;;  %v4439_v25 = vld [vmem:[%s5463_s6 + $0xa] sm:$0x3] }
  0x26   : > { %4906 = vmatprep.subr.mxu1 %v5393_v0  ;;  %4896 = vmatpush3.msra.mxu0 %v4385_v24  ;;  %v4444_v24 = vld [vmem:[%s5449_s28 + $0xa0] sm:$0xff] }
  0x27   : > { %4907 = vmatpush3.msra.mxu1 %v717_v26  ;;  %4897 = vmatprep.subr.mxu0 %v5393_v0  ;;  %v1696_v26 = vadd.f32 %v4444_v24, %v4440_v17 }
  0x28   : > { %4908 = vmatprep.subr.mxu1 %v5393_v0  ;;  %4898 = vmatpush3.msra.mxu0 %v4384_v27  ;;  %v1695_v27 = vadd.f32 %v4439_v25, %v4438_v18 }
  0x29   : > { %4899 = vmatprep.mubr.msk.f32.mxu0 %vm5394_vm0, %v5393_v0  ;;  %4909 = vmatpush3.msra.mxu1 %v716_v29  ;;  %v4462_v29 = vld [vmem:[%s5449_s28 + $0xd8] sm:$0xff] }
  0x2a   : > { %4910 = vmatprep.mubr.msk.f32.mxu1 %vm5394_vm0, %v5393_v0  ;;  %4900 = vmatmul.mubr.msk.f32.vlgmr.msra.gmra.mxu0 %vm324_vm1, %v4379_v28  ;;  %v4458_v28 = vld [vmem:[%s5444_s25 + $0xd8] sm:$0xff] }
  0x2b   : > { %4911 = vmatmul.mubr.msk.f32.vlgmr.msra.gmra.mxu1 %vm324_vm1, %v715_v30  ;;  %4913 = vmatprep.subr.mxu0 %v5393_v0  ;;  %v4457_v30 = vld [vmem:[%s5444_s25 + $0xd0] sm:$0xff] }
  0x2c   : > { %4924 = vmatprep.subr.mxu1 %v5393_v0  ;;  %4914 = vmatpush3.msra.mxu0 %v4398_v31  ;;  %v4461_v31 = vld [vmem:[%s5449_s28 + $0xd0] sm:$0xff] }
  0x2d   : > { %4925 = vmatpush3.msra.mxu1 %v4402_v32  ;;  %4915 = vmatprep.subr.mxu0 %v5393_v0  ;;  %v4456_v32 = vld [vmem:[%s5444_s25 + $0xc8] sm:$0xff] }
  0x2e   : > { %4926 = vmatprep.subr.mxu1 %v5393_v0  ;;  %4916 = vmatpush3.msra.mxu0 %v4397_v33  ;;  %v4460_v33 = vld [vmem:[%s5449_s28 + $0xc8] sm:$0xff] }
  0x2f   : > { %4927 = vmatpush3.msra.mxu1 %v4401_v34  ;;  %4917 = vmatprep.subr.mxu0 %v5393_v0  ;;  %v4455_v34 = vld [vmem:[%s5444_s25 + $0xc0] sm:$0xff] }
  0x30   : > { %4928 = vmatprep.subr.mxu1 %v5393_v0  ;;  %4918 = vmatpush3.msra.mxu0 %v4396_v35  ;;  %v4459_v35 = vld [vmem:[%s5449_s28 + $0xc0] sm:$0xff] }
  0x31   : > { %4929 = vmatpush3.msra.mxu1 %v4400_v36  ;;  %4919 = vmatprep.subr.mxu0 %v5393_v0  ;;  %v4454_v36 = vld [vmem:[%s5463_s6 + $0xc] sm:$0x3] }
  0x32   : > { %4930 = vmatprep.subr.mxu1 %v5393_v0  ;;  %4920 = vmatpush3.msra.mxu0 %v4395_v37  ;;  %v1944_v37 = vadd.f32 %v4462_v29, %v4458_v28 }
  0x33   : > { %4931 = vmatpush3.msra.mxu1 %v4399_v38  ;;  %4932 = vmatprep.mubr.msk.f32.mxu1 %vm5394_vm0, %v5393_v0  ;;  %v4453_v38 = vld [vmem:[%s5469_s9 + $0xc] sm:$0x3] }
  0x34   : > { %4921 = vmatprep.mubr.msk.f32.mxu0 %vm5394_vm0, %v5393_v0  ;;  %4933 = vmatmul.mubr.msk.f32.vlgmr.msra.gmra.mxu1 %vm324_vm1, %v4394_v39  ;;  %v4473_v39 = vld [vmem:[%s5444_s25 + $0xf8] sm:$0xff] }
  0x35   : > { %4935 = vmatprep.subr.mxu0 %v5393_v0  ;;  %4946 = vmatprep.subr.mxu1 %v5393_v0 }
  0x36   : > { %4922 = vmatmul.mubr.msk.f32.vlgmr.msra.gmra.mxu0 %vm324_vm1, %v4393_v41  ;;  %4947 = vmatpush3.msra.mxu1 %v4413_v42  ;;  %v4472_v41 = vld [vmem:[%s5444_s25 + $0xf0] sm:$0xff]  ;;  %v1942_v42 = vadd.f32 %v4460_v33, %v4456_v32 }
  0x37   : > { %4936 = vmatpush3.msra.mxu0 %v964_v40  ;;  %4948 = vmatprep.subr.mxu1 %v5393_v0  ;;  %v1943_v40 = vadd.f32 %v4461_v31, %v4457_v30 }
  0x38   : > { %4937 = vmatprep.subr.mxu0 %v5393_v0  ;;  %4949 = vmatpush3.msra.mxu1 %v4412_v44  ;;  %v1941_v44 = vadd.f32 %v4459_v35, %v4455_v34 }
  0x39   : > { %4938 = vmatpush3.msra.mxu0 %v963_v43  ;;  %4950 = vmatprep.subr.mxu1 %v5393_v0  ;;  %v4471_v43 = vld [vmem:[%s5444_s25 + $0xe8] sm:$0xff] }
  0x3a   : > { %4939 = vmatprep.subr.mxu0 %v5393_v0  ;;  %4951 = vmatpush3.msra.mxu1 %v4411_v46  ;;  %v1940_v46 = vadd.f32 %v4454_v36, %v4453_v38 }
  0x3b   : > { %4940 = vmatpush3.msra.mxu0 %v962_v45  ;;  %4952 = vmatprep.subr.mxu1 %v5393_v0  ;;  %v4477_v45 = vld [vmem:[%s5449_s28 + $0xf8] sm:$0xff] }
  0x3c   : > { %4941 = vmatprep.subr.mxu0 %v5393_v0  ;;  %4943 = vmatprep.mubr.msk.f32.mxu0 %vm5394_vm0, %v5393_v0 }
  0x3d   : > { %4942 = vmatpush3.msra.mxu0 %v961_v47  ;;  %4953 = vmatpush3.msra.mxu1 %v4410_v50  ;;  %v4470_v47 = vld [vmem:[%s5444_s25 + $0xe0] sm:$0xff]  ;;  %v2189_v50 = vadd.f32 %v4477_v45, %v4473_v39 }
  0x3e   : > { %4954 = vmatprep.mubr.msk.f32.mxu1 %vm5394_vm0, %v5393_v0  ;;  %4944 = vmatmul.mubr.msk.f32.vlgmr.msra.gmra.mxu0 %vm324_vm1, %v960_v49  ;;  %v4476_v49 = vld [vmem:[%s5449_s28 + $0xf0] sm:$0xff] }
  0x3f   : > { %4955 = vmatmul.mubr.msk.f32.vlgmr.msra.gmra.mxu1 %vm324_vm1, %v4408_v51  ;;  %4957 = vmatprep.subr.mxu0 %v5393_v0  ;;  %v4475_v51 = vld [vmem:[%s5449_s28 + $0xe8] sm:$0xff] }
  0x40   : > { %4968 = vmatprep.subr.mxu1 %v5393_v0  ;;  %4958 = vmatpush3.msra.mxu0 %v4417_v48  ;;  %v4468_v48 = vld [vmem:[%s5469_s9 + $0xe] sm:$0x3] }
  0x41   : > { %4969 = vmatpush3.msra.mxu1 %v1209_v53  ;;  %4959 = vmatprep.subr.mxu0 %v5393_v0  ;;  %v2187_v53 = vadd.f32 %v4475_v51, %v4471_v43 }
  0x42   : > { %4970 = vmatprep.subr.mxu1 %v5393_v0  ;;  %4960 = vmatpush3.msra.mxu0 %v4416_v52  ;;  %v2188_v52 = vadd.f32 %v4476_v49, %v4472_v41 }
  0x43   : > { %4971 = vmatpush3.msra.mxu1 %v1208_v55  ;;  %4961 = vmatprep.subr.mxu0 %v5393_v0  ;;  %v4469_v55 = vld [vmem:[%s5463_s6 + $0xe] sm:$0x3] }
  0x44   : > { %4972 = vmatprep.subr.mxu1 %v5393_v0  ;;  %4962 = vmatpush3.msra.mxu0 %v4415_v54  ;;  %v4474_v54 = vld [vmem:[%s5449_s28 + $0xe0] sm:$0xff] }
  0x45   : > { %4973 = vmatpush3.msra.mxu1 %v1207_v56  ;;  %4963 = vmatprep.subr.mxu0 %v5393_v0  ;;  %v2186_v56 = vadd.f32 %v4474_v54, %v4470_v47 }
  0x46   : > { %4974 = vmatprep.subr.mxu1 %v5393_v0  ;;  %4964 = vmatpush3.msra.mxu0 %v4414_v57  ;;  %v2185_v57 = vadd.f32 %v4469_v55, %v4468_v48 }
  0x47   : > { %4965 = vmatprep.mubr.msk.f32.mxu0 %vm5394_vm0, %v5393_v0  ;;  %4975 = vmatpush3.msra.mxu1 %v1206_v59  ;;  %v4492_v59 = vld [vmem:[%s5449_s28 + $0x118] sm:$0xff] }
  0x48   : > { %4976 = vmatprep.mubr.msk.f32.mxu1 %vm5394_vm0, %v5393_v0  ;;  %4966 = vmatmul.mubr.msk.f32.vlgmr.msra.gmra.mxu0 %vm324_vm1, %v4409_v58  ;;  %v4488_v58 = vld [vmem:[%s5444_s25 + $0x118] sm:$0xff] }
  0x49   : > { %4977 = vmatmul.mubr.msk.f32.vlgmr.msra.gmra.mxu1 %vm324_vm1, %v1205_v60  ;;  %4979 = vmatprep.subr.mxu0 %v5393_v0  ;;  %v4487_v60 = vld [vmem:[%s5444_s25 + $0x110] sm:$0xff] }
  0x4a   : > { %4990 = vmatprep.subr.mxu1 %v5393_v0  ;;  %4980 = vmatpush3.msra.mxu0 %v4428_v61  ;;  %v4491_v61 = vld [vmem:[%s5449_s28 + $0x110] sm:$0xff] }
  0x4b   : > { %4991 = vmatpush3.msra.mxu1 %v4432_v62  ;;  %4981 = vmatprep.subr.mxu0 %v5393_v0  ;;  %v4486_v62 = vld [vmem:[%s5444_s25 + $0x108] sm:$0xff] }
  0x4c   : > { %4992 = vmatprep.subr.mxu1 %v5393_v0  ;;  %4982 = vmatpush3.msra.mxu0 %v4427_v63  ;;  %v4490_v63 = vld [vmem:[%s5449_s28 + $0x108] sm:$0xff] }
  0x4d   : > { %4993 = vmatpush3.msra.mxu1 %v4431_v1  ;;  %4983 = vmatprep.subr.mxu0 %v5393_v0  ;;  %v4485_v1 = vld [vmem:[%s5444_s25 + $0x100] sm:$0xff] }
  0x4e   : > { %4994 = vmatprep.subr.mxu1 %v5393_v0  ;;  %4984 = vmatpush3.msra.mxu0 %v4426_v2  ;;  %v4489_v2 = vld [vmem:[%s5449_s28 + $0x100] sm:$0xff] }
  0x4f   : > { %4995 = vmatpush3.msra.mxu1 %v4430_v3  ;;  %4985 = vmatprep.subr.mxu0 %v5393_v0  ;;  %v4484_v3 = vld [vmem:[%s5463_s6 + $0x10] sm:$0x3] }
  0x50   : > { %4996 = vmatprep.subr.mxu1 %v5393_v0  ;;  %4986 = vmatpush3.msra.mxu0 %v4425_v4  ;;  %v2434_v4 = vadd.f32 %v4492_v59, %v4488_v58 }
  0x51   : > { %4997 = vmatpush3.msra.mxu1 %v4429_v5  ;;  %4998 = vmatprep.mubr.msk.f32.mxu1 %vm5394_vm0, %v5393_v0  ;;  %v4483_v5 = vld [vmem:[%s5469_s9 + $0x10] sm:$0x3] }
  0x52   : > { %4987 = vmatprep.mubr.msk.f32.mxu0 %vm5394_vm0, %v5393_v0  ;;  %4999 = vmatmul.mubr.msk.f32.vlgmr.msra.gmra.mxu1 %vm324_vm1, %v4424_v6  ;;  %v4503_v6 = vld [vmem:[%s5444_s25 + $0x138] sm:$0xff] }
  0x53   : > { %5001 = vmatprep.subr.mxu0 %v5393_v0  ;;  %5012 = vmatprep.subr.mxu1 %v5393_v0 }
  0x54   : > { %4988 = vmatmul.mubr.msk.f32.vlgmr.msra.gmra.mxu0 %vm324_vm1, %v4423_v8  ;;  %5013 = vmatpush3.msra.mxu1 %v4443_v9  ;;  %v4502_v8 = vld [vmem:[%s5444_s25 + $0x130] sm:$0xff]  ;;  %v2432_v9 = vadd.f32 %v4490_v63, %v4486_v62 }
  0x55   : > { %5002 = vmatpush3.msra.mxu0 %v1454_v7  ;;  %5014 = vmatprep.subr.mxu1 %v5393_v0  ;;  %v2433_v7 = vadd.f32 %v4491_v61, %v4487_v60 }
  0x56   : > { %5003 = vmatprep.subr.mxu0 %v5393_v0  ;;  %5015 = vmatpush3.msra.mxu1 %v4442_v11  ;;  %v2431_v11 = vadd.f32 %v4489_v2, %v4485_v1 }
  0x57   : > { %5004 = vmatpush3.msra.mxu0 %v1453_v10  ;;  %5016 = vmatprep.subr.mxu1 %v5393_v0  ;;  %v4501_v10 = vld [vmem:[%s5444_s25 + $0x128] sm:$0xff] }
  0x58   : > { %5005 = vmatprep.subr.mxu0 %v5393_v0  ;;  %5017 = vmatpush3.msra.mxu1 %v4441_v13  ;;  %v2430_v13 = vadd.f32 %v4484_v3, %v4483_v5 }
  0x59   : > { %5006 = vmatpush3.msra.mxu0 %v1452_v12  ;;  %5018 = vmatprep.subr.mxu1 %v5393_v0  ;;  %v4507_v12 = vld [vmem:[%s5449_s28 + $0x138] sm:$0xff] }
  0x5a   : > { %5007 = vmatprep.subr.mxu0 %v5393_v0  ;;  %5009 = vmatprep.mubr.msk.f32.mxu0 %vm5394_vm0, %v5393_v0 }
  0x5b   : > { %5008 = vmatpush3.msra.mxu0 %v1451_v14  ;;  %5019 = vmatpush3.msra.mxu1 %v4440_v17  ;;  %v4500_v14 = vld [vmem:[%s5444_s25 + $0x120] sm:$0xff]  ;;  %v2679_v17 = vadd.f32 %v4507_v12, %v4503_v6 }
  0x5c   : > { %5020 = vmatprep.mubr.msk.f32.mxu1 %vm5394_vm0, %v5393_v0  ;;  %5010 = vmatmul.mubr.msk.f32.vlgmr.msra.gmra.mxu0 %vm324_vm1, %v1450_v16  ;;  %v4506_v16 = vld [vmem:[%s5449_s28 + $0x130] sm:$0xff] }
  0x5d   : > { %5021 = vmatmul.mubr.msk.f32.vlgmr.msra.gmra.mxu1 %vm324_vm1, %v4438_v18  ;;  %5023 = vmatprep.subr.mxu0 %v5393_v0  ;;  %v4505_v18 = vld [vmem:[%s5449_s28 + $0x128] sm:$0xff] }
  0x5e   : > { %5034 = vmatprep.subr.mxu1 %v5393_v0  ;;  %5024 = vmatpush3.msra.mxu0 %v4447_v15  ;;  %v4498_v15 = vld [vmem:[%s5469_s9 + $0x12] sm:$0x3] }
  0x5f   : > { %5035 = vmatpush3.msra.mxu1 %v1699_v20  ;;  %5025 = vmatprep.subr.mxu0 %v5393_v0  ;;  %v2677_v20 = vadd.f32 %v4505_v18, %v4501_v10 }
  0x60   : > { %5036 = vmatprep.subr.mxu1 %v5393_v0  ;;  %5026 = vmatpush3.msra.mxu0 %v4446_v19  ;;  %v2678_v19 = vadd.f32 %v4506_v16, %v4502_v8 }
  0x61   : > { %5037 = vmatpush3.msra.mxu1 %v1698_v22  ;;  %5027 = vmatprep.subr.mxu0 %v5393_v0  ;;  %v4499_v22 = vld [vmem:[%s5463_s6 + $0x12] sm:$0x3] }
  0x62   : > { %5038 = vmatprep.subr.mxu1 %v5393_v0  ;;  %5028 = vmatpush3.msra.mxu0 %v4445_v21  ;;  %v4504_v21 = vld [vmem:[%s5449_s28 + $0x120] sm:$0xff] }
  0x63   : > { %5039 = vmatpush3.msra.mxu1 %v1697_v23  ;;  %5029 = vmatprep.subr.mxu0 %v5393_v0  ;;  %v2676_v23 = vadd.f32 %v4504_v21, %v4500_v14 }
  0x64   : > { %5040 = vmatprep.subr.mxu1 %v5393_v0  ;;  %5030 = vmatpush3.msra.mxu0 %v4444_v24  ;;  %v2675_v24 = vadd.f32 %v4499_v22, %v4498_v15 }
  0x65   : > { %5031 = vmatprep.mubr.msk.f32.mxu0 %vm5394_vm0, %v5393_v0  ;;  %5041 = vmatpush3.msra.mxu1 %v1696_v26  ;;  %v4522_v26 = vld [vmem:[%s5449_s28 + $0x158] sm:$0xff] }
  0x66   : > { %5042 = vmatprep.mubr.msk.f32.mxu1 %vm5394_vm0, %v5393_v0  ;;  %5032 = vmatmul.mubr.msk.f32.vlgmr.msra.gmra.mxu0 %vm324_vm1, %v4439_v25  ;;  %v4518_v25 = vld [vmem:[%s5444_s25 + $0x158] sm:$0xff] }
  0x67   : > { %5043 = vmatmul.mubr.msk.f32.vlgmr.msra.gmra.mxu1 %vm324_vm1, %v1695_v27  ;;  %5045 = vmatprep.subr.mxu0 %v5393_v0  ;;  %v4517_v27 = vld [vmem:[%s5444_s25 + $0x150] sm:$0xff] }
  0x68   : > { %5056 = vmatprep.subr.mxu1 %v5393_v0  ;;  %5046 = vmatpush3.msra.mxu0 %v4458_v28  ;;  %v4521_v28 = vld [vmem:[%s5449_s28 + $0x150] sm:$0xff] }
  0x69   : > { %5057 = vmatpush3.msra.mxu1 %v4462_v29  ;;  %5047 = vmatprep.subr.mxu0 %v5393_v0  ;;  %v4516_v29 = vld [vmem:[%s5444_s25 + $0x148] sm:$0xff] }
  0x6a   : > { %5058 = vmatprep.subr.mxu1 %v5393_v0  ;;  %5048 = vmatpush3.msra.mxu0 %v4457_v30  ;;  %v4520_v30 = vld [vmem:[%s5449_s28 + $0x148] sm:$0xff] }
  0x6b   : > { %5059 = vmatpush3.msra.mxu1 %v4461_v31  ;;  %5049 = vmatprep.subr.mxu0 %v5393_v0  ;;  %v4515_v31 = vld [vmem:[%s5444_s25 + $0x140] sm:$0xff] }
  0x6c   : > { %5060 = vmatprep.subr.mxu1 %v5393_v0  ;;  %5050 = vmatpush3.msra.mxu0 %v4456_v32  ;;  %v4519_v32 = vld [vmem:[%s5449_s28 + $0x140] sm:$0xff] }
  0x6d   : > { %5061 = vmatpush3.msra.mxu1 %v4460_v33  ;;  %5051 = vmatprep.subr.mxu0 %v5393_v0  ;;  %v4514_v33 = vld [vmem:[%s5463_s6 + $0x14] sm:$0x3] }
  0x6e   : > { %5062 = vmatprep.subr.mxu1 %v5393_v0  ;;  %5052 = vmatpush3.msra.mxu0 %v4455_v34  ;;  %v2924_v34 = vadd.f32 %v4522_v26, %v4518_v25 }
  0x6f   : > { %5063 = vmatpush3.msra.mxu1 %v4459_v35  ;;  %5064 = vmatprep.mubr.msk.f32.mxu1 %vm5394_vm0, %v5393_v0  ;;  %v4513_v35 = vld [vmem:[%s5469_s9 + $0x14] sm:$0x3] }
  0x70   : > { %5053 = vmatprep.mubr.msk.f32.mxu0 %vm5394_vm0, %v5393_v0  ;;  %5065 = vmatmul.mubr.msk.f32.vlgmr.msra.gmra.mxu1 %vm324_vm1, %v4454_v36  ;;  %v4533_v36 = vld [vmem:[%s5444_s25 + $0x178] sm:$0xff] }
  0x71   : > { %5067 = vmatprep.subr.mxu0 %v5393_v0  ;;  %5078 = vmatprep.subr.mxu1 %v5393_v0 }
  0x72   : > { %5054 = vmatmul.mubr.msk.f32.vlgmr.msra.gmra.mxu0 %vm324_vm1, %v4453_v38  ;;  %5079 = vmatpush3.msra.mxu1 %v4473_v39  ;;  %v4532_v38 = vld [vmem:[%s5444_s25 + $0x170] sm:$0xff]  ;;  %v2922_v39 = vadd.f32 %v4520_v30, %v4516_v29 }
  0x73   : > { %5068 = vmatpush3.msra.mxu0 %v1944_v37  ;;  %5080 = vmatprep.subr.mxu1 %v5393_v0  ;;  %v2923_v37 = vadd.f32 %v4521_v28, %v4517_v27 }
  0x74   : > { %5069 = vmatprep.subr.mxu0 %v5393_v0  ;;  %5081 = vmatpush3.msra.mxu1 %v4472_v41  ;;  %v2921_v41 = vadd.f32 %v4519_v32, %v4515_v31 }
  0x75   : > { %5070 = vmatpush3.msra.mxu0 %v1943_v40  ;;  %5082 = vmatprep.subr.mxu1 %v5393_v0  ;;  %v4531_v40 = vld [vmem:[%s5444_s25 + $0x168] sm:$0xff] }
  0x76   : > { %5071 = vmatprep.subr.mxu0 %v5393_v0  ;;  %5083 = vmatpush3.msra.mxu1 %v4471_v43  ;;  %v2920_v43 = vadd.f32 %v4514_v33, %v4513_v35 }
  0x77   : > { %5072 = vmatpush3.msra.mxu0 %v1942_v42  ;;  %5084 = vmatprep.subr.mxu1 %v5393_v0  ;;  %v4537_v42 = vld [vmem:[%s5449_s28 + $0x178] sm:$0xff] }
  0x78   : > { %5073 = vmatprep.subr.mxu0 %v5393_v0  ;;  %5075 = vmatprep.mubr.msk.f32.mxu0 %vm5394_vm0, %v5393_v0 }
  0x79   : > { %5074 = vmatpush3.msra.mxu0 %v1941_v44  ;;  %5085 = vmatpush3.msra.mxu1 %v4470_v47  ;;  %v4530_v44 = vld [vmem:[%s5444_s25 + $0x160] sm:$0xff]  ;;  %v3169_v47 = vadd.f32 %v4537_v42, %v4533_v36 }
  0x7a   : > { %5086 = vmatprep.mubr.msk.f32.mxu1 %vm5394_vm0, %v5393_v0  ;;  %5076 = vmatmul.mubr.msk.f32.vlgmr.msra.gmra.mxu0 %vm324_vm1, %v1940_v46  ;;  %v4536_v46 = vld [vmem:[%s5449_s28 + $0x170] sm:$0xff] }
  0x7b   : > { %5087 = vmatmul.mubr.msk.f32.vlgmr.msra.gmra.mxu1 %vm324_vm1, %v4468_v48  ;;  %5089 = vmatprep.subr.mxu0 %v5393_v0  ;;  %v4535_v48 = vld [vmem:[%s5449_s28 + $0x168] sm:$0xff] }
  0x7c   : > { %5100 = vmatprep.subr.mxu1 %v5393_v0  ;;  %5090 = vmatpush3.msra.mxu0 %v4477_v45  ;;  %v4528_v45 = vld [vmem:[%s5469_s9 + $0x16] sm:$0x3] }
  0x7d   : > { %5101 = vmatpush3.msra.mxu1 %v2189_v50  ;;  %5091 = vmatprep.subr.mxu0 %v5393_v0  ;;  %v3167_v50 = vadd.f32 %v4535_v48, %v4531_v40 }
  0x7e   : > { %5102 = vmatprep.subr.mxu1 %v5393_v0  ;;  %5092 = vmatpush3.msra.mxu0 %v4476_v49  ;;  %v3168_v49 = vadd.f32 %v4536_v46, %v4532_v38 }
  0x7f   : > { %5103 = vmatpush3.msra.mxu1 %v2188_v52  ;;  %5093 = vmatprep.subr.mxu0 %v5393_v0  ;;  %v4529_v52 = vld [vmem:[%s5463_s6 + $0x16] sm:$0x3] }
  0x80   : > { %5104 = vmatprep.subr.mxu1 %v5393_v0  ;;  %5094 = vmatpush3.msra.mxu0 %v4475_v51  ;;  %v4534_v51 = vld [vmem:[%s5449_s28 + $0x160] sm:$0xff] }
  0x81   : > { %5105 = vmatpush3.msra.mxu1 %v2187_v53  ;;  %5095 = vmatprep.subr.mxu0 %v5393_v0  ;;  %v3166_v53 = vadd.f32 %v4534_v51, %v4530_v44 }
  0x82   : > { %5106 = vmatprep.subr.mxu1 %v5393_v0  ;;  %5096 = vmatpush3.msra.mxu0 %v4474_v54  ;;  %v3165_v54 = vadd.f32 %v4529_v52, %v4528_v45 }
  0x83   : > { %5097 = vmatprep.mubr.msk.f32.mxu0 %vm5394_vm0, %v5393_v0  ;;  %5107 = vmatpush3.msra.mxu1 %v2186_v56  ;;  %v4552_v56 = vld [vmem:[%s5449_s28 + $0x198] sm:$0xff] }
  0x84   : > { %5108 = vmatprep.mubr.msk.f32.mxu1 %vm5394_vm0, %v5393_v0  ;;  %5098 = vmatmul.mubr.msk.f32.vlgmr.msra.gmra.mxu0 %vm324_vm1, %v4469_v55  ;;  %v4548_v55 = vld [vmem:[%s5444_s25 + $0x198] sm:$0xff] }
  0x85   : > { %5109 = vmatmul.mubr.msk.f32.vlgmr.msra.gmra.mxu1 %vm324_vm1, %v2185_v57  ;;  %5111 = vmatprep.subr.mxu0 %v5393_v0  ;;  %v4547_v57 = vld [vmem:[%s5444_s25 + $0x190] sm:$0xff] }
  0x86   : > { %5122 = vmatprep.subr.mxu1 %v5393_v0  ;;  %5112 = vmatpush3.msra.mxu0 %v4488_v58  ;;  %v4551_v58 = vld [vmem:[%s5449_s28 + $0x190] sm:$0xff] }
  0x87   : > { %5123 = vmatpush3.msra.mxu1 %v4492_v59  ;;  %5113 = vmatprep.subr.mxu0 %v5393_v0  ;;  %v4546_v59 = vld [vmem:[%s5444_s25 + $0x188] sm:$0xff] }
  0x88   : > { %5124 = vmatprep.subr.mxu1 %v5393_v0  ;;  %5114 = vmatpush3.msra.mxu0 %v4487_v60  ;;  %v4550_v60 = vld [vmem:[%s5449_s28 + $0x188] sm:$0xff] }
  0x89   : > { %5125 = vmatpush3.msra.mxu1 %v4491_v61  ;;  %5115 = vmatprep.subr.mxu0 %v5393_v0  ;;  %v4545_v61 = vld [vmem:[%s5444_s25 + $0x180] sm:$0xff] }
  0x8a   : > { %5126 = vmatprep.subr.mxu1 %v5393_v0  ;;  %5116 = vmatpush3.msra.mxu0 %v4486_v62  ;;  %v4549_v62 = vld [vmem:[%s5449_s28 + $0x180] sm:$0xff] }
  0x8b   : > { %5127 = vmatpush3.msra.mxu1 %v4490_v63  ;;  %5117 = vmatprep.subr.mxu0 %v5393_v0  ;;  %v4544_v63 = vld [vmem:[%s5463_s6 + $0x18] sm:$0x3] }
  0x8c   : > { %5128 = vmatprep.subr.mxu1 %v5393_v0  ;;  %5118 = vmatpush3.msra.mxu0 %v4485_v1  ;;  %v3414_v1 = vadd.f32 %v4552_v56, %v4548_v55 }
  0x8d   : > { %5129 = vmatpush3.msra.mxu1 %v4489_v2  ;;  %5130 = vmatprep.mubr.msk.f32.mxu1 %vm5394_vm0, %v5393_v0  ;;  %v4543_v2 = vld [vmem:[%s5469_s9 + $0x18] sm:$0x3] }
  0x8e   : > { %5119 = vmatprep.mubr.msk.f32.mxu0 %vm5394_vm0, %v5393_v0  ;;  %5131 = vmatmul.mubr.msk.f32.vlgmr.msra.gmra.mxu1 %vm324_vm1, %v4484_v3  ;;  %v4563_v3 = vld [vmem:[%s5444_s25 + $0x1b8] sm:$0xff] }
  0x8f   : > { %5133 = vmatprep.subr.mxu0 %v5393_v0  ;;  %5144 = vmatprep.subr.mxu1 %v5393_v0 }
  0x90   : > { %5120 = vmatmul.mubr.msk.f32.vlgmr.msra.gmra.mxu0 %vm324_vm1, %v4483_v5  ;;  %5145 = vmatpush3.msra.mxu1 %v4503_v6  ;;  %v4562_v5 = vld [vmem:[%s5444_s25 + $0x1b0] sm:$0xff]  ;;  %v3412_v6 = vadd.f32 %v4550_v60, %v4546_v59 }
  0x91   : > { %5134 = vmatpush3.msra.mxu0 %v2434_v4  ;;  %5146 = vmatprep.subr.mxu1 %v5393_v0  ;;  %v3413_v4 = vadd.f32 %v4551_v58, %v4547_v57 }
  0x92   : > { %5135 = vmatprep.subr.mxu0 %v5393_v0  ;;  %5147 = vmatpush3.msra.mxu1 %v4502_v8  ;;  %v3411_v8 = vadd.f32 %v4549_v62, %v4545_v61 }
  0x93   : > { %5136 = vmatpush3.msra.mxu0 %v2433_v7  ;;  %5148 = vmatprep.subr.mxu1 %v5393_v0  ;;  %v4561_v7 = vld [vmem:[%s5444_s25 + $0x1a8] sm:$0xff] }
  0x94   : > { %5137 = vmatprep.subr.mxu0 %v5393_v0  ;;  %5149 = vmatpush3.msra.mxu1 %v4501_v10  ;;  %v3410_v10 = vadd.f32 %v4544_v63, %v4543_v2 }
  0x95   : > { %5138 = vmatpush3.msra.mxu0 %v2432_v9  ;;  %5150 = vmatprep.subr.mxu1 %v5393_v0  ;;  %v4567_v9 = vld [vmem:[%s5449_s28 + $0x1b8] sm:$0xff] }
  0x96   : > { %5139 = vmatprep.subr.mxu0 %v5393_v0  ;;  %5141 = vmatprep.mubr.msk.f32.mxu0 %vm5394_vm0, %v5393_v0 }
  0x97   : > { %5140 = vmatpush3.msra.mxu0 %v2431_v11  ;;  %5151 = vmatpush3.msra.mxu1 %v4500_v14  ;;  %v4560_v11 = vld [vmem:[%s5444_s25 + $0x1a0] sm:$0xff]  ;;  %v3659_v14 = vadd.f32 %v4567_v9, %v4563_v3 }
  0x98   : > { %5152 = vmatprep.mubr.msk.f32.mxu1 %vm5394_vm0, %v5393_v0  ;;  %5142 = vmatmul.mubr.msk.f32.vlgmr.msra.gmra.mxu0 %vm324_vm1, %v2430_v13  ;;  %v4566_v13 = vld [vmem:[%s5449_s28 + $0x1b0] sm:$0xff] }
  0x99   : > { %5153 = vmatmul.mubr.msk.f32.vlgmr.msra.gmra.mxu1 %vm324_vm1, %v4498_v15  ;;  %5155 = vmatprep.subr.mxu0 %v5393_v0  ;;  %v4565_v15 = vld [vmem:[%s5449_s28 + $0x1a8] sm:$0xff] }
  0x9a   : > { %5166 = vmatprep.subr.mxu1 %v5393_v0  ;;  %5156 = vmatpush3.msra.mxu0 %v4507_v12  ;;  %v4558_v12 = vld [vmem:[%s5469_s9 + $0x1a] sm:$0x3] }
  0x9b   : > { %5167 = vmatpush3.msra.mxu1 %v2679_v17  ;;  %5157 = vmatprep.subr.mxu0 %v5393_v0  ;;  %v3657_v17 = vadd.f32 %v4565_v15, %v4561_v7 }
  0x9c   : > { %5168 = vmatprep.subr.mxu1 %v5393_v0  ;;  %5158 = vmatpush3.msra.mxu0 %v4506_v16  ;;  %v3658_v16 = vadd.f32 %v4566_v13, %v4562_v5 }
  0x9d   : > { %5169 = vmatpush3.msra.mxu1 %v2678_v19  ;;  %5159 = vmatprep.subr.mxu0 %v5393_v0 }
  0x9e   : > { %5170 = vmatprep.subr.mxu1 %v5393_v0  ;;  %5160 = vmatpush3.msra.mxu0 %v4505_v18  ;;  %v4564_v18 = vld [vmem:[%s5449_s28 + $0x1a0] sm:$0xff] }
  0x9f   : > { %5171 = vmatpush3.msra.mxu1 %v2677_v20  ;;  %5161 = vmatprep.subr.mxu0 %v5393_v0  ;;  %v4559_v20 = vld [vmem:[%s5463_s6 + $0x1a] sm:$0x3] }
  0xa0   : > { %5172 = vmatprep.subr.mxu1 %v5393_v0  ;;  %5162 = vmatpush3.msra.mxu0 %v4504_v21 }
  0xa1   : > { %5163 = vmatprep.mubr.msk.f32.mxu0 %vm5394_vm0, %v5393_v0  ;;  %5173 = vmatpush3.msra.mxu1 %v2676_v23 }
  0xa2   : > { %5174 = vmatprep.mubr.msk.f32.mxu1 %vm5394_vm0, %v5393_v0  ;;  %5164 = vmatmul.mubr.msk.f32.vlgmr.msra.gmra.mxu0 %vm324_vm1, %v4499_v22 }
  0xa3   : > { %5175 = vmatmul.mubr.msk.f32.vlgmr.msra.gmra.mxu1 %vm324_vm1, %v2675_v24  ;;  %5177 = vmatprep.subr.mxu0 %v5393_v0  ;;  %v3656_v24 = vadd.f32 %v4564_v18, %v4560_v11 }
  0xa4   : > { %5188 = vmatprep.subr.mxu1 %v5393_v0  ;;  %5178 = vmatpush3.msra.mxu0 %v4518_v25 }
  0xa5   : > { %5189 = vmatpush3.msra.mxu1 %v4522_v26  ;;  %5179 = vmatprep.subr.mxu0 %v5393_v0  ;;  %v3655_v26 = vadd.f32 %v4559_v20, %v4558_v12 }
  0xa6   : > { %5190 = vmatprep.subr.mxu1 %v5393_v0  ;;  %5180 = vmatpush3.msra.mxu0 %v4517_v27  ;;  %v4578_v27 = vld [vmem:[%s5444_s25 + $0x1d8] sm:$0xff] }
  0xa7   : > { %5191 = vmatpush3.msra.mxu1 %v4521_v28  ;;  %5181 = vmatprep.subr.mxu0 %v5393_v0  ;;  %v4582_v28 = vld [vmem:[%s5449_s28 + $0x1d8] sm:$0xff] }
  0xa8   : > { %5192 = vmatprep.subr.mxu1 %v5393_v0  ;;  %5182 = vmatpush3.msra.mxu0 %v4516_v29  ;;  %v4577_v29 = vld [vmem:[%s5444_s25 + $0x1d0] sm:$0xff] }
  0xa9   : > { %5193 = vmatpush3.msra.mxu1 %v4520_v30  ;;  %5183 = vmatprep.subr.mxu0 %v5393_v0  ;;  %v4581_v30 = vld [vmem:[%s5449_s28 + $0x1d0] sm:$0xff] }
  0xaa   : > { %5194 = vmatprep.subr.mxu1 %v5393_v0  ;;  %5184 = vmatpush3.msra.mxu0 %v4515_v31 }
  0xab   : > { %5195 = vmatpush3.msra.mxu1 %v4519_v32  ;;  %5196 = vmatprep.mubr.msk.f32.mxu1 %vm5394_vm0, %v5393_v0 }
  0xac   : > { %5185 = vmatprep.mubr.msk.f32.mxu0 %vm5394_vm0, %v5393_v0  ;;  %5197 = vmatmul.mubr.msk.f32.vlgmr.msra.gmra.mxu1 %vm324_vm1, %v4514_v33  ;;  %v4576_v33 = vld [vmem:[%s5444_s25 + $0x1c8] sm:$0xff] }
  0xad   : > { %5199 = vmatprep.subr.mxu0 %v5393_v0  ;;  %5210 = vmatprep.subr.mxu1 %v5393_v0 }
  0xae   : > { %5186 = vmatmul.mubr.msk.f32.vlgmr.msra.gmra.mxu0 %vm324_vm1, %v4513_v35  ;;  %5211 = vmatpush3.msra.mxu1 %v4533_v36 }
  0xaf   : > { %5200 = vmatpush3.msra.mxu0 %v2924_v34  ;;  %5212 = vmatprep.subr.mxu1 %v5393_v0  ;;  %v4580_v34 = vld [vmem:[%s5449_s28 + $0x1c8] sm:$0xff] }
  0xb0   : > { %5201 = vmatprep.subr.mxu0 %v5393_v0  ;;  %5213 = vmatpush3.msra.mxu1 %v4532_v38  ;;  %v4575_v38 = vld [vmem:[%s5444_s25 + $0x1c0] sm:$0xff] }
  0xb1   : > { %5202 = vmatpush3.msra.mxu0 %v2923_v37  ;;  %5214 = vmatprep.subr.mxu1 %v5393_v0 }
  0xb2   : > { %5203 = vmatprep.subr.mxu0 %v5393_v0  ;;  %5215 = vmatpush3.msra.mxu1 %v4531_v40 }
  0xb3   : > { %5204 = vmatpush3.msra.mxu0 %v2922_v39  ;;  %5216 = vmatprep.subr.mxu1 %v5393_v0  ;;  %v4579_v39 = vld [vmem:[%s5449_s28 + $0x1c0] sm:$0xff] }
  0xb4   : > { %5205 = vmatprep.subr.mxu0 %v5393_v0  ;;  %5207 = vmatprep.mubr.msk.f32.mxu0 %vm5394_vm0, %v5393_v0 }
  0xb5   : > { %5206 = vmatpush3.msra.mxu0 %v2921_v41  ;;  %5217 = vmatpush3.msra.mxu1 %v4530_v44  ;;  %v4574_v41 = vld [vmem:[%s5463_s6 + $0x1c] sm:$0x3] }
  0xb6   : > { %5218 = vmatprep.mubr.msk.f32.mxu1 %vm5394_vm0, %v5393_v0  ;;  %5208 = vmatmul.mubr.msk.f32.vlgmr.msra.gmra.mxu0 %vm324_vm1, %v2920_v43  ;;  %v4573_v43 = vld [vmem:[%s5469_s9 + $0x1c] sm:$0x3] }
  0xb7   : > { %5219 = vmatmul.mubr.msk.f32.vlgmr.msra.gmra.mxu1 %vm324_vm1, %v4528_v45  ;;  %5221 = vmatprep.subr.mxu0 %v5393_v0  ;;  %v4593_v44 = vld [vmem:[%s5444_s25 + $0x1f8] sm:$0xff]  ;;  %v3903_v45 = vadd.f32 %v4581_v30, %v4577_v29 }
  0xb8   : > { %5232 = vmatprep.subr.mxu1 %v5393_v0  ;;  %5222 = vmatpush3.msra.mxu0 %v4537_v42  ;;  %v3904_v42 = vadd.f32 %v4582_v28, %v4578_v27 }
  0xb9   : > { %5233 = vmatpush3.msra.mxu1 %v3169_v47  ;;  %5223 = vmatprep.subr.mxu0 %v5393_v0  ;;  %v3902_v47 = vadd.f32 %v4580_v34, %v4576_v33 }
  0xba   : > { %5234 = vmatprep.subr.mxu1 %v5393_v0  ;;  %5224 = vmatpush3.msra.mxu0 %v4536_v46  ;;  %v4592_v46 = vld [vmem:[%s5444_s25 + $0x1f0] sm:$0xff] }
  0xbb   : > { %5235 = vmatpush3.msra.mxu1 %v3168_v49  ;;  %5225 = vmatprep.subr.mxu0 %v5393_v0 }
  0xbc   : > { %5236 = vmatprep.subr.mxu1 %v5393_v0  ;;  %5226 = vmatpush3.msra.mxu0 %v4535_v48 }
  0xbd   : > { %5237 = vmatpush3.msra.mxu1 %v3167_v50  ;;  %5227 = vmatprep.subr.mxu0 %v5393_v0  ;;  %v4591_v50 = vld [vmem:[%s5444_s25 + $0x1e8] sm:$0xff] }
  0xbe   : > { %5238 = vmatprep.subr.mxu1 %v5393_v0  ;;  %5228 = vmatpush3.msra.mxu0 %v4534_v51 }
  0xbf   : > { %5229 = vmatprep.mubr.msk.f32.mxu0 %vm5394_vm0, %v5393_v0  ;;  %5239 = vmatpush3.msra.mxu1 %v3166_v53  ;;  %v3901_v53 = vadd.f32 %v4579_v39, %v4575_v38 }
  0xc0   : > { %5240 = vmatprep.mubr.msk.f32.mxu1 %vm5394_vm0, %v5393_v0  ;;  %5230 = vmatmul.mubr.msk.f32.vlgmr.msra.gmra.mxu0 %vm324_vm1, %v4529_v52 }
  0xc1   : > { %5241 = vmatmul.mubr.msk.f32.vlgmr.msra.gmra.mxu1 %vm324_vm1, %v3165_v54  ;;  %5243 = vmatprep.subr.mxu0 %v5393_v0 }
  0xc2   : > { %5254 = vmatprep.subr.mxu1 %v5393_v0  ;;  %5244 = vmatpush3.msra.mxu0 %v4548_v55 }
  0xc3   : > { %5255 = vmatpush3.msra.mxu1 %v4552_v56  ;;  %5245 = vmatprep.subr.mxu0 %v5393_v0  ;;  %v4597_v56 = vld [vmem:[%s5449_s28 + $0x1f8] sm:$0xff] }
  0xc4   : > { %5256 = vmatprep.subr.mxu1 %v5393_v0  ;;  %5246 = vmatpush3.msra.mxu0 %v4547_v57 }
  0xc5   : > { %5257 = vmatpush3.msra.mxu1 %v4551_v58  ;;  %5247 = vmatprep.subr.mxu0 %v5393_v0  ;;  %v3900_v58 = vadd.f32 %v4574_v41, %v4573_v43 }
  0xc6   : > { %5258 = vmatprep.subr.mxu1 %v5393_v0  ;;  %5248 = vmatpush3.msra.mxu0 %v4546_v59  ;;  %v4590_v59 = vld [vmem:[%s5444_s25 + $0x1e0] sm:$0xff] }
  0xc7   : > { %5259 = vmatpush3.msra.mxu1 %v4550_v60  ;;  %5249 = vmatprep.subr.mxu0 %v5393_v0  ;;  %v4588_v60 = vld [vmem:[%s5469_s9 + $0x1e] sm:$0x3] }
  0xc8   : > { %5260 = vmatprep.subr.mxu1 %v5393_v0  ;;  %5250 = vmatpush3.msra.mxu0 %v4545_v61  ;;  %v4596_v61 = vld [vmem:[%s5449_s28 + $0x1f0] sm:$0xff] }
  0xc9   : > { %5261 = vmatpush3.msra.mxu1 %v4549_v62  ;;  %5262 = vmatprep.mubr.msk.f32.mxu1 %vm5394_vm0, %v5393_v0  ;;  %v4149_v62 = vadd.f32 %v4597_v56, %v4593_v44 }
  0xca   : > { %5251 = vmatprep.mubr.msk.f32.mxu0 %vm5394_vm0, %v5393_v0  ;;  %5263 = vmatmul.mubr.msk.f32.vlgmr.msra.gmra.mxu1 %vm324_vm1, %v4544_v63  ;;  %v4595_v63 = vld [vmem:[%s5449_s28 + $0x1e8] sm:$0xff] }
  0xcb   : > { %5265 = vmatprep.subr.mxu0 %v5393_v0  ;;  %5276 = vmatprep.subr.mxu1 %v5393_v0 }
  0xcc   : > { %5252 = vmatmul.mubr.msk.f32.vlgmr.msra.gmra.mxu0 %vm324_vm1, %v4543_v2  ;;  %5277 = vmatpush3.msra.mxu1 %v4563_v3  ;;  %v4147_v2 = vadd.f32 %v4595_v63, %v4591_v50  ;;  %v4594_v3 = vld [vmem:[%s5449_s28 + $0x1e0] sm:$0xff] }
  0xcd   : > { %5266 = vmatpush3.msra.mxu0 %v3414_v1  ;;  %5278 = vmatprep.subr.mxu1 %v5393_v0  ;;  %v4148_v1 = vadd.f32 %v4596_v61, %v4592_v46 }
  0xce   : > { %5267 = vmatprep.subr.mxu0 %v5393_v0  ;;  %5279 = vmatpush3.msra.mxu1 %v4562_v5  ;;  %v4589_v5 = vld [vmem:[%s5463_s6 + $0x1e] sm:$0x3] }
  0xcf   : > { %5268 = vmatpush3.msra.mxu0 %v3413_v4  ;;  %5280 = vmatprep.subr.mxu1 %v5393_v0 }
  0xd0   : > { %5269 = vmatprep.subr.mxu0 %v5393_v0  ;;  %5281 = vmatpush3.msra.mxu1 %v4561_v7 }
  0xd1   : > { %5270 = vmatpush3.msra.mxu0 %v3412_v6  ;;  %5282 = vmatprep.subr.mxu1 %v5393_v0 }
  0xd2   : > { %5271 = vmatprep.subr.mxu0 %v5393_v0  ;;  %5273 = vmatprep.mubr.msk.f32.mxu0 %vm5394_vm0, %v5393_v0 }
  0xd3   : > { %5272 = vmatpush3.msra.mxu0 %v3411_v8  ;;  %5283 = vmatpush3.msra.mxu1 %v4560_v11  ;;  %v4145_v11 = vadd.f32 %v4589_v5, %v4588_v60 }
  0xd4   : > { %5284 = vmatprep.mubr.msk.f32.mxu1 %vm5394_vm0, %v5393_v0  ;;  %5274 = vmatmul.mubr.msk.f32.vlgmr.msra.gmra.mxu0 %vm324_vm1, %v3410_v10 }
  0xd5   : > { %5285 = vmatmul.mubr.msk.f32.vlgmr.msra.gmra.mxu1 %vm324_vm1, %v4558_v12  ;;  %5287 = vmatprep.subr.mxu0 %v5393_v0 }
  0xd6   : > { %5298 = vmatprep.subr.mxu1 %v5393_v0  ;;  %5288 = vmatpush3.msra.mxu0 %v4567_v9  ;;  %v4146_v9 = vadd.f32 %v4594_v3, %v4590_v59 }
  0xd7   : > { %5299 = vmatpush3.msra.mxu1 %v3659_v14  ;;  %v467_v19 = vpop.f32.mrf.mxu1  ;;  %5289 = vmatprep.subr.mxu0 %v5393_v0 }
  0xd8   : > { %5300 = vmatprep.subr.mxu1 %v5393_v0  ;;  %v394_v21 = vpop.f32.mrf.mxu0  ;;  %5290 = vmatpush3.msra.mxu0 %v4566_v13 }
  0xd9   : > { %5301 = vmatpush3.msra.mxu1 %v3658_v16  ;;  %v549_v22 = vsub.f32 %v394_v21, %v467_v19  ;;  %v4868_v23 = vpop.f32.mrf.mxu1  ;;  %5291 = vmatprep.subr.mxu0 %v5393_v0 }
  0xda   : > { %5302 = vmatprep.subr.mxu1 %v5393_v0  ;;  %v4857_v25 = vpop.f32.mrf.mxu0  ;;  %5292 = vmatpush3.msra.mxu0 %v4565_v15 }
  0xdb   : > { %5303 = vmatpush3.msra.mxu1 %v3657_v17  ;;  %551 = vst.msk [vmem:[%s5885_s12] sm:$0x3] %vm550_vm2, %v549_v22  ;;  %5293 = vmatprep.subr.mxu0 %v5393_v0 }
  0xdc   : > { %5304 = vmatprep.subr.mxu1 %v5393_v0  ;;  %5294 = vmatpush3.msra.mxu0 %v4564_v18 }
  0xdd   : > { %5295 = vmatprep.mubr.msk.f32.mxu0 %vm5394_vm0, %v5393_v0  ;;  %5305 = vmatpush3.msra.mxu1 %v3656_v24 }
  0xde   : > { %5306 = vmatprep.mubr.msk.f32.mxu1 %vm5394_vm0, %v5393_v0  ;;  %5296 = vmatmul.mubr.msk.f32.vlgmr.msra.gmra.mxu0 %vm324_vm1, %v4559_v20 }
  0xdf   : > { %5307 = vmatmul.mubr.msk.f32.vlgmr.msra.gmra.mxu1 %vm324_vm1, %v3655_v26  ;;  %5309 = vmatprep.subr.mxu0 %v5393_v0 }
  0xe0   : > { %5320 = vmatprep.subr.mxu1 %v5393_v0  ;;  %5310 = vmatpush3.msra.mxu0 %v4578_v27  ;;  %v545_v31 = vpop.f32.mrf.mxu0 }
  0xe1   : > { %5321 = vmatpush3.msra.mxu1 %v4582_v28  ;;  %v638_v32 = vpop.f32.mrf.mxu1  ;;  %5311 = vmatprep.subr.mxu0 %v5393_v0  ;;  %v552_v35 = vsub.f32 %v545_v31, %v394_v21 }
  0xe2   : > { %5322 = vmatprep.subr.mxu1 %v5393_v0  ;;  %5312 = vmatpush3.msra.mxu0 %v4577_v29  ;;  %v4879_v37 = vpop.f32.mrf.mxu0 }
  0xe3   : > { %5323 = vmatpush3.msra.mxu1 %v4581_v30  ;;  %v4890_v36 = vpop.f32.mrf.mxu1  ;;  %5313 = vmatprep.subr.mxu0 %v5393_v0  ;;  %v553_v40 = vsub.f32 %v552_v35, %v467_v19 }
  0xe4   : > { %5324 = vmatprep.subr.mxu1 %v5393_v0  ;;  %5314 = vmatpush3.msra.mxu0 %v4576_v33 }
  0xe5   : > { %5325 = vmatpush3.msra.mxu1 %v4580_v34  ;;  %5315 = vmatprep.subr.mxu0 %v5393_v0  ;;  %554 = vst.msk [vmem:[%s5913_s15] sm:$0x3] %vm550_vm2, %v553_v40 }
  0xe6   : > { %5326 = vmatprep.subr.mxu1 %v5393_v0  ;;  %5316 = vmatpush3.msra.mxu0 %v4575_v38 }
  0xe7   : > { %5327 = vmatpush3.msra.mxu1 %v4579_v39  ;;  %5328 = vmatprep.mubr.msk.f32.mxu1 %vm5394_vm0, %v5393_v0 }
  0xe8   : > { %5317 = vmatprep.mubr.msk.f32.mxu0 %vm5394_vm0, %v5393_v0  ;;  %5329 = vmatmul.mubr.msk.f32.vlgmr.msra.gmra.mxu1 %vm324_vm1, %v4574_v41 }
  0xe9   : > { %5331 = vmatprep.subr.mxu0 %v5393_v0  ;;  %5342 = vmatprep.subr.mxu1 %v5393_v0 }
  0xea   : > { %5318 = vmatmul.mubr.msk.f32.vlgmr.msra.gmra.mxu0 %vm324_vm1, %v4573_v43  ;;  %5343 = vmatpush3.msra.mxu1 %v4593_v44  ;;  %v711_v48 = vpop.f32.mrf.mxu0 }
  0xeb   : > { %5332 = vmatpush3.msra.mxu0 %v3904_v42  ;;  %v789_v49 = vpop.f32.mrf.mxu1  ;;  %5344 = vmatprep.subr.mxu1 %v5393_v0  ;;  %v793_v51 = vsub.f32 %v638_v32, %v711_v48 }
  0xec   : > { %5333 = vmatprep.subr.mxu0 %v5393_v0  ;;  %v796_v52 = vsub.f32 %v789_v49, %v638_v32  ;;  %5345 = vmatpush3.msra.mxu1 %v4592_v46  ;;  %v4901_v55 = vpop.f32.mrf.mxu0 }
  0xed   : > { %5334 = vmatpush3.msra.mxu0 %v3903_v45  ;;  %v4912_v54 = vpop.f32.mrf.mxu1  ;;  %5346 = vmatprep.subr.mxu1 %v5393_v0  ;;  %4391 = vst.msk [vmem:[%s5885_s12 + $0x2] sm:$0x3] %vm550_vm2, %v793_v51 }
  0xee   : > { %5335 = vmatprep.subr.mxu0 %v5393_v0  ;;  %v797_v57 = vsub.f32 %v796_v52, %v711_v48  ;;  %5347 = vmatpush3.msra.mxu1 %v4591_v50 }
  0xef   : > { %5336 = vmatpush3.msra.mxu0 %v3902_v47  ;;  %5348 = vmatprep.subr.mxu1 %v5393_v0 }
  0xf0   : > { %5337 = vmatprep.subr.mxu0 %v5393_v0  ;;  %4392 = vst.msk [vmem:[%s5913_s15 + $0x2] sm:$0x3] %vm550_vm2, %v797_v57  ;;  %5339 = vmatprep.mubr.msk.f32.mxu0 %vm5394_vm0, %v5393_v0 }
  0xf1   : > { %5338 = vmatpush3.msra.mxu0 %v3901_v53  ;;  %5349 = vmatpush3.msra.mxu1 %v4590_v59 }
  0xf2   : > { %5350 = vmatprep.mubr.msk.f32.mxu1 %vm5394_vm0, %v5393_v0  ;;  %5340 = vmatmul.mubr.msk.f32.vlgmr.msra.gmra.mxu0 %vm324_vm1, %v3900_v58 }
  0xf3   : > { %5351 = vmatmul.mubr.msk.f32.vlgmr.msra.gmra.mxu1 %vm324_vm1, %v4588_v60  ;;  %5353 = vmatprep.subr.mxu0 %v5393_v0 }
  0xf4   : > { %5364 = vmatprep.subr.mxu1 %v5393_v0  ;;  %5354 = vmatpush3.msra.mxu0 %v4597_v56  ;;  %v956_v4 = vpop.f32.mrf.mxu1 }
  0xf5   : > { %5365 = vmatpush3.msra.mxu1 %v4149_v62  ;;  %5355 = vmatprep.subr.mxu0 %v5393_v0 }
  0xf6   : > { %5366 = vmatprep.subr.mxu1 %v5393_v0  ;;  %v883_v6 = vpop.f32.mrf.mxu0  ;;  %5356 = vmatpush3.msra.mxu0 %v4596_v61  ;;  %v4934_v8 = vpop.f32.mrf.mxu1 }
  0xf7   : > { %5367 = vmatpush3.msra.mxu1 %v4148_v1  ;;  %v1038_v7 = vsub.f32 %v883_v6, %v956_v4  ;;  %5357 = vmatprep.subr.mxu0 %v5393_v0 }
  0xf8   : > { %5368 = vmatprep.subr.mxu1 %v5393_v0  ;;  %v4923_v10 = vpop.f32.mrf.mxu0  ;;  %5358 = vmatpush3.msra.mxu0 %v4595_v63 }
  0xf9   : > { %5369 = vmatpush3.msra.mxu1 %v4147_v2  ;;  %4406 = vst.msk [vmem:[%s5885_s12 + $0x4] sm:$0x3] %vm550_vm2, %v1038_v7  ;;  %5359 = vmatprep.subr.mxu0 %v5393_v0 }
  0xfa   : > { %5370 = vmatprep.subr.mxu1 %v5393_v0  ;;  %5360 = vmatpush3.msra.mxu0 %v4594_v3 }
  0xfb   : > { %5361 = vmatprep.mubr.msk.f32.mxu0 %vm5394_vm0, %v5393_v0  ;;  %5371 = vmatpush3.msra.mxu1 %v4146_v9 }
  0xfc   : > { %5372 = vmatprep.mubr.msk.f32.mxu1 %vm5394_vm0, %v5393_v0  ;;  %5362 = vmatmul.mubr.msk.f32.vlgmr.msra.gmra.mxu0 %vm324_vm1, %v4589_v5 }
  0xfd   : > { %5373 = vmatmul.mubr.msk.f32.vlgmr.msra.gmra.mxu1 %vm324_vm1, %v4145_v11 }
  0xfe   : > { %v1034_v12 = vpop.f32.mrf.mxu0 }
  0xff   : > { %v1128_v13 = vpop.f32.mrf.mxu1  ;;  %v1041_v14 = vsub.f32 %v1034_v12, %v883_v6 }
 0x100   : > { %v4945_v16 = vpop.f32.mrf.mxu0 }
 0x101   : > { %v4956_v15 = vpop.f32.mrf.mxu1  ;;  %v1042_v17 = vsub.f32 %v1041_v14, %v956_v4 }
 0x103   : > { %4407 = vst.msk [vmem:[%s5913_s15 + $0x4] sm:$0x3] %vm550_vm2, %v1042_v17 }
 0x108   : > { %v1201_v18 = vpop.f32.mrf.mxu0 }
 0x109   : > { %v1279_v19 = vpop.f32.mrf.mxu1  ;;  %v1283_v20 = vsub.f32 %v1128_v13, %v1201_v18 }
 0x10a   : > { %v1286_v21 = vsub.f32 %v1279_v19, %v1128_v13  ;;  %v4967_v22 = vpop.f32.mrf.mxu0 }
 0x10b   : > { %v4978_v0 = vpop.f32.mrf.mxu1  ;;  %4421 = vst.msk [vmem:[%s5885_s12 + $0x6] sm:$0x3] %vm550_vm2, %v1283_v20 }
 0x10c   : > { %v1287_v23 = vsub.f32 %v1286_v21, %v1201_v18 }
 0x10e   : > { %4422 = vst.msk [vmem:[%s5913_s15 + $0x6] sm:$0x3] %vm550_vm2, %v1287_v23 }
 0x112   : > { %v1446_v24 = vpop.f32.mrf.mxu1 }
 0x114   : > { %v1373_v25 = vpop.f32.mrf.mxu0  ;;  %v5000_v27 = vpop.f32.mrf.mxu1 }
 0x115   : > { %v1528_v26 = vsub.f32 %v1373_v25, %v1446_v24 }
 0x116   : > { %v4989_v28 = vpop.f32.mrf.mxu0 }
 0x117   : > { %4436 = vst.msk [vmem:[%s5885_s12 + $0x8] sm:$0x3] %vm550_vm2, %v1528_v26 }
 0x11c   : > { %v1524_v29 = vpop.f32.mrf.mxu0 }
 0x11d   : > { %v1618_v30 = vpop.f32.mrf.mxu1  ;;  %v1531_v31 = vsub.f32 %v1524_v29, %v1373_v25 }
 0x11e   : > { %v5011_v33 = vpop.f32.mrf.mxu0 }
 0x11f   : > { %v5022_v32 = vpop.f32.mrf.mxu1  ;;  %v1532_v34 = vsub.f32 %v1531_v31, %v1446_v24 }
 0x121   : > { %4437 = vst.msk [vmem:[%s5913_s15 + $0x8] sm:$0x3] %vm550_vm2, %v1532_v34 }
 0x126   : > { %v1691_v35 = vpop.f32.mrf.mxu0 }
 0x127   : > { %v1769_v36 = vpop.f32.mrf.mxu1  ;;  %v1773_v37 = vsub.f32 %v1618_v30, %v1691_v35 }
 0x128   : > { %v1776_v38 = vsub.f32 %v1769_v36, %v1618_v30  ;;  %v5033_v40 = vpop.f32.mrf.mxu0 }
 0x129   : > { %v5044_v39 = vpop.f32.mrf.mxu1  ;;  %4451 = vst.msk [vmem:[%s5885_s12 + $0xa] sm:$0x3] %vm550_vm2, %v1773_v37 }
 0x12a   : > { %v1777_v41 = vsub.f32 %v1776_v38, %v1691_v35 }
 0x12c   : > { %4452 = vst.msk [vmem:[%s5913_s15 + $0xa] sm:$0x3] %vm550_vm2, %v1777_v41 }
 0x130   : > { %v1936_v42 = vpop.f32.mrf.mxu1 }
 0x132   : > { %v1863_v43 = vpop.f32.mrf.mxu0  ;;  %v5066_v45 = vpop.f32.mrf.mxu1 }
 0x133   : > { %v2018_v44 = vsub.f32 %v1863_v43, %v1936_v42 }
 0x134   : > { %v5055_v46 = vpop.f32.mrf.mxu0 }
 0x135   : > { %4466 = vst.msk [vmem:[%s5885_s12 + $0xc] sm:$0x3] %vm550_vm2, %v2018_v44 }
 0x13a   : > { %v2014_v47 = vpop.f32.mrf.mxu0 }
 0x13b   : > { %v2108_v48 = vpop.f32.mrf.mxu1  ;;  %v2021_v49 = vsub.f32 %v2014_v47, %v1863_v43 }
 0x13c   : > { %v5077_v51 = vpop.f32.mrf.mxu0 }
 0x13d   : > { %v5088_v50 = vpop.f32.mrf.mxu1  ;;  %v2022_v52 = vsub.f32 %v2021_v49, %v1936_v42 }
 0x13f   : > { %4467 = vst.msk [vmem:[%s5913_s15 + $0xc] sm:$0x3] %vm550_vm2, %v2022_v52 }
 0x144   : > { %v2181_v53 = vpop.f32.mrf.mxu0 }
 0x145   : > { %v2259_v54 = vpop.f32.mrf.mxu1  ;;  %v2263_v55 = vsub.f32 %v2108_v48, %v2181_v53 }
 0x146   : > { %v2266_v56 = vsub.f32 %v2259_v54, %v2108_v48  ;;  %v5099_v58 = vpop.f32.mrf.mxu0 }
 0x147   : > { %v5110_v57 = vpop.f32.mrf.mxu1  ;;  %4481 = vst.msk [vmem:[%s5885_s12 + $0xe] sm:$0x3] %vm550_vm2, %v2263_v55 }
 0x148   : > { %v2267_v59 = vsub.f32 %v2266_v56, %v2181_v53 }
 0x14a   : > { %4482 = vst.msk [vmem:[%s5913_s15 + $0xe] sm:$0x3] %vm550_vm2, %v2267_v59 }
 0x14e   : > { %v2426_v60 = vpop.f32.mrf.mxu1 }
 0x150   : > { %v2353_v61 = vpop.f32.mrf.mxu0  ;;  %v5132_v63 = vpop.f32.mrf.mxu1 }
 0x151   : > { %v2508_v62 = vsub.f32 %v2353_v61, %v2426_v60 }
 0x152   : > { %v5121_v1 = vpop.f32.mrf.mxu0 }
 0x153   : > { %4496 = vst.msk [vmem:[%s5885_s12 + $0x10] sm:$0x3] %vm550_vm2, %v2508_v62 }
 0x158   : > { %v2504_v2 = vpop.f32.mrf.mxu0 }
 0x159   : > { %v2598_v3 = vpop.f32.mrf.mxu1  ;;  %v2511_v4 = vsub.f32 %v2504_v2, %v2353_v61 }
 0x15a   : > { %v5143_v6 = vpop.f32.mrf.mxu0 }
 0x15b   : > { %v5154_v5 = vpop.f32.mrf.mxu1  ;;  %v2512_v7 = vsub.f32 %v2511_v4, %v2426_v60 }
 0x15d   : > { %4497 = vst.msk [vmem:[%s5913_s15 + $0x10] sm:$0x3] %vm550_vm2, %v2512_v7 }
 0x162   : > { %v2671_v8 = vpop.f32.mrf.mxu0 }
 0x163   : > { %v2749_v9 = vpop.f32.mrf.mxu1  ;;  %v2753_v10 = vsub.f32 %v2598_v3, %v2671_v8 }
 0x164   : > { %v2756_v11 = vsub.f32 %v2749_v9, %v2598_v3  ;;  %v5165_v13 = vpop.f32.mrf.mxu0 }
 0x165   : > { %v5176_v12 = vpop.f32.mrf.mxu1  ;;  %4511 = vst.msk [vmem:[%s5885_s12 + $0x12] sm:$0x3] %vm550_vm2, %v2753_v10 }
 0x166   : > { %v2757_v14 = vsub.f32 %v2756_v11, %v2671_v8 }
 0x168   : > { %4512 = vst.msk [vmem:[%s5913_s15 + $0x12] sm:$0x3] %vm550_vm2, %v2757_v14 }
 0x16c   : > { %v2916_v15 = vpop.f32.mrf.mxu1 }
 0x16e   : > { %v2843_v16 = vpop.f32.mrf.mxu0  ;;  %v5198_v18 = vpop.f32.mrf.mxu1 }
 0x16f   : > { %v2998_v17 = vsub.f32 %v2843_v16, %v2916_v15 }
 0x170   : > { %v5187_v19 = vpop.f32.mrf.mxu0 }
 0x171   : > { %4526 = vst.msk [vmem:[%s5885_s12 + $0x14] sm:$0x3] %vm550_vm2, %v2998_v17 }
 0x176   : > { %v2994_v20 = vpop.f32.mrf.mxu0 }
 0x177   : > { %v3088_v21 = vpop.f32.mrf.mxu1  ;;  %v3001_v0 = vsub.f32 %v2994_v20, %v2843_v16 }
 0x178   : > { %v5209_v23 = vpop.f32.mrf.mxu0 }
 0x179   : > { %v5220_v22 = vpop.f32.mrf.mxu1  ;;  %v3002_v24 = vsub.f32 %v3001_v0, %v2916_v15 }
 0x17b   : > { %4527 = vst.msk [vmem:[%s5913_s15 + $0x14] sm:$0x3] %vm550_vm2, %v3002_v24 }
 0x180   : > { %v3161_v25 = vpop.f32.mrf.mxu0 }
 0x181   : > { %v3239_v26 = vpop.f32.mrf.mxu1  ;;  %v3243_v27 = vsub.f32 %v3088_v21, %v3161_v25 }
 0x182   : > { %v3246_v28 = vsub.f32 %v3239_v26, %v3088_v21  ;;  %v5231_v30 = vpop.f32.mrf.mxu0 }
 0x183   : > { %v5242_v29 = vpop.f32.mrf.mxu1  ;;  %4541 = vst.msk [vmem:[%s5885_s12 + $0x16] sm:$0x3] %vm550_vm2, %v3243_v27 }
 0x184   : > { %v3247_v31 = vsub.f32 %v3246_v28, %v3161_v25 }
 0x186   : > { %4542 = vst.msk [vmem:[%s5913_s15 + $0x16] sm:$0x3] %vm550_vm2, %v3247_v31 }
 0x18a   : > { %v3406_v32 = vpop.f32.mrf.mxu1 }
 0x18c   : > { %v3333_v33 = vpop.f32.mrf.mxu0  ;;  %v5264_v35 = vpop.f32.mrf.mxu1 }
 0x18d   : > { %v3488_v34 = vsub.f32 %v3333_v33, %v3406_v32 }
 0x18e   : > { %v5253_v36 = vpop.f32.mrf.mxu0 }
 0x18f   : > { %4556 = vst.msk [vmem:[%s5885_s12 + $0x18] sm:$0x3] %vm550_vm2, %v3488_v34 }
 0x194   : > { %v3484_v37 = vpop.f32.mrf.mxu0 }
 0x195   : > { %v3578_v38 = vpop.f32.mrf.mxu1  ;;  %v3491_v39 = vsub.f32 %v3484_v37, %v3333_v33 }
 0x196   : > { %v5275_v41 = vpop.f32.mrf.mxu0 }
 0x197   : > { %v5286_v40 = vpop.f32.mrf.mxu1  ;;  %v3492_v42 = vsub.f32 %v3491_v39, %v3406_v32 }
 0x199   : > { %4557 = vst.msk [vmem:[%s5913_s15 + $0x18] sm:$0x3] %vm550_vm2, %v3492_v42 }
 0x19e   : > { %v3651_v43 = vpop.f32.mrf.mxu0 }
 0x19f   : > { %v3729_v44 = vpop.f32.mrf.mxu1  ;;  %v3733_v45 = vsub.f32 %v3578_v38, %v3651_v43 }
 0x1a0   : > { %v3736_v46 = vsub.f32 %v3729_v44, %v3578_v38  ;;  %v5297_v48 = vpop.f32.mrf.mxu0 }
 0x1a1   : > { %v5308_v47 = vpop.f32.mrf.mxu1  ;;  %4571 = vst.msk [vmem:[%s5885_s12 + $0x1a] sm:$0x3] %vm550_vm2, %v3733_v45 }
 0x1a2   : > { %v3737_v49 = vsub.f32 %v3736_v46, %v3651_v43 }
 0x1a4   : > { %4572 = vst.msk [vmem:[%s5913_s15 + $0x1a] sm:$0x3] %vm550_vm2, %v3737_v49 }
 0x1a8   : > { %v3896_v50 = vpop.f32.mrf.mxu1 }
 0x1aa   : > { %v3823_v51 = vpop.f32.mrf.mxu0  ;;  %v5330_v53 = vpop.f32.mrf.mxu1 }
 0x1ab   : > { %v3978_v52 = vsub.f32 %v3823_v51, %v3896_v50 }
 0x1ac   : > { %v5319_v54 = vpop.f32.mrf.mxu0 }
 0x1ad   : > { %4586 = vst.msk [vmem:[%s5885_s12 + $0x1c] sm:$0x3] %vm550_vm2, %v3978_v52 }
 0x1b2   : > { %v3974_v55 = vpop.f32.mrf.mxu0 }
 0x1b3   : > { %v4068_v56 = vpop.f32.mrf.mxu1  ;;  %v3981_v57 = vsub.f32 %v3974_v55, %v3823_v51 }
 0x1b4   : > { %v5341_v59 = vpop.f32.mrf.mxu0 }
 0x1b5   : > { %v5352_v58 = vpop.f32.mrf.mxu1  ;;  %v3982_v60 = vsub.f32 %v3981_v57, %v3896_v50 }
 0x1b7   : > { %4587 = vst.msk [vmem:[%s5913_s15 + $0x1c] sm:$0x3] %vm550_vm2, %v3982_v60 }
 0x1bc   : > { %v4141_v61 = vpop.f32.mrf.mxu0 }
 0x1bd   : > { %v4219_v62 = vpop.f32.mrf.mxu1  ;;  %v4223_v63 = vsub.f32 %v4068_v56, %v4141_v61 }
 0x1be   : > { %v4226_v1 = vsub.f32 %v4219_v62, %v4068_v56  ;;  %v5363_v2 = vpop.f32.mrf.mxu0 }
 0x1bf   : > { %v5374_v3 = vpop.f32.mrf.mxu1  ;;  %4601 = vst.msk [vmem:[%s5885_s12 + $0x1e] sm:$0x3] %vm550_vm2, %v4223_v63 }
 0x1c0   : > { %v4227_v4 = vsub.f32 %v4226_v1, %v4141_v61 }
 0x1c2   : > { %4602 = vst.msk [vmem:[%s5913_s15 + $0x1e] sm:$0x3] %vm550_vm2, %v4227_v4 }
 0x1c3 PF: > { %s16_s18 = sadd.s32 1, %s5391_s18  }
 0x1c4   : > { %p13_p4 = scmp.ge.s32.totalorder %s16_s18, 4  }
 0x1c6   :  { %15 = sbr.rel (!%p13_p4) target bundleno = 1 (0x1), region = 177 }

// kernel: mul.93
= control target key start
LH: loop header
LB: loop body
LE: loop exit
PB: predicated region body
PF: predicated region fallthrough
CT: control target
= control target key end

     0   :  { %vm8_vm0 = vcmask 261120   ;;  %s40_s8 = smov 32   ;;  %s41_s9 = smov 64   ;;  %vm14_vm1 = vcmask 1048320   ;;  %vm20_vm2 = vcmask 785920   ;;  %vm26_vm3 = vcmask 523520   ;;  %s58_s0 = inlined_call_operand.vmem [shape: f32[4,32], index: 0, kind: input, shape index: {}]   ;;  %s59_s1 = inlined_call_operand.vmem [shape: f32[128], index: 1, kind: output, shape index: {}]  }
   0x1   :  { %v5_v0 = vld [vmem:[%s58_s0] sm:$0xf]  ;;  %s39_s0 = smov 96  }
   0x2   :  { %6 = vst [vmem:[#allocation1] sm:$0xf] %v5_v0 }
   0x9   :  { %v11_v1 = vld [vmem:[#allocation1 + $0x3] sm:$0x1]   ;;  %v23_v2 = vld [vmem:[#allocation1 + $0x1] sm:$0x1]   ;;  %v7_v3 = vld [vmem:[#allocation1] sm:$0x1]  }
   0xa   :  { %12 = vrot.lane.b32.xlu0 %v11_v1, %s39_s0  ;;  %24 = vrot.lane.b32.xlu1 %v23_v2, %s40_s8  ;;  %v17_v4 = vld [vmem:[#allocation1 + $0x2] sm:$0x1]   ;;  %9 = vst.msk [vmem:[#allocation0] sm:$0x1] %vm8_vm0, %v7_v3  }
   0xe   :  { %18 = vrot.lane.b32.xlu0 %v17_v4, %s41_s9 }
  0x7c   :  { %v13_v5 = vpop.permute.xlu0 %12   ;;  %v25_v6 = vpop.permute.xlu1 %24  }
  0x7d   :  { %15 = vst.msk [vmem:[#allocation0] sm:$0x1] %vm14_vm1, %v13_v5  }
  0x80   :  { %v19_v7 = vpop.permute.xlu0 %18  }
  0x81   :  { %21 = vst.msk [vmem:[#allocation0] sm:$0x1] %vm20_vm2, %v19_v7  }
  0x82   :  { %27 = vst.msk [vmem:[#allocation0] sm:$0x1] %vm26_vm3, %v25_v6  }
  0x89   :  { %v32_v8 = vld [vmem:[#allocation0] sm:$0x1] }
  0x8a   :  { %35 = vst [vmem:[%s59_s1] sm:$0x1] %v32_v8 }

// kernel: fno2d_forward.11
= control target key start
LH: loop header
LB: loop body
LE: loop exit
PB: predicated region body
PF: predicated region fallthrough
CT: control target
= control target key end

     0   :  { %s681_s1 = inlined_call_operand.vmem [shape: f32[128,128], index: 1, kind: input, shape index: {}]   ;;  %s682_s0 = inlined_call_operand.vmem [shape: f32[128,128], index: 0, kind: input, shape index: {}]   ;;  %s683_s2 = inlined_call_operand.vmem [shape: f32[128,128], index: 2, kind: input, shape index: {}]   ;;  %s684_s3 = inlined_call_operand.vmem [shape: f32[1,128], index: 3, kind: input, shape index: {}]   ;;  %s685_s4 = inlined_call_operand.vmem [shape: f32[1,128], index: 4, kind: input, shape index: {}]   ;;  %s686_s5 = inlined_call_operand.vmem [shape: f32[128,128], index: 5, kind: output, shape index: {}]  }
   0x1   :  { %v51_v0 = vld [vmem:[%s681_s1 + $0x78] sm:$0xff]  ;;  %v50_v1 = vld [vmem:[%s681_s1 + $0x70] sm:$0xff]  ;;  %v49_v2 = vld [vmem:[%s681_s1 + $0x68] sm:$0xff] }
   0x2   :  { %329 = vmatprep.subr.mxu0 %v51_v0  ;;  %385 = vmatprep.subr.mxu1 %v51_v0  ;;  %v48_v3 = vld [vmem:[%s681_s1 + $0x60] sm:$0xff]  ;;  %v47_v4 = vld [vmem:[%s681_s1 + $0x58] sm:$0xff]  ;;  %v46_v5 = vld [vmem:[%s681_s1 + $0x50] sm:$0xff] }
   0x3   :  { %330 = vmatpush3.msra.mxu0 %v51_v0  ;;  %401 = vmatpush3.msra.mxu1 %v51_v0  ;;  %v45_v6 = vld [vmem:[%s681_s1 + $0x48] sm:$0xff]  ;;  %v44_v7 = vld [vmem:[%s681_s1 + $0x40] sm:$0xff]  ;;  %v43_v8 = vld [vmem:[%s681_s1 + $0x38] sm:$0xff] }
   0x4   :  { %331 = vmatprep.subr.mxu0 %v50_v1  ;;  %386 = vmatprep.subr.mxu1 %v50_v1  ;;  %v42_v9 = vld [vmem:[%s681_s1 + $0x30] sm:$0xff]  ;;  %v41_v10 = vld [vmem:[%s681_s1 + $0x28] sm:$0xff]  ;;  %v40_v11 = vld [vmem:[%s681_s1 + $0x20] sm:$0xff] }
   0x5   :  { %332 = vmatpush3.msra.mxu0 %v50_v1  ;;  %402 = vmatpush3.msra.mxu1 %v50_v1  ;;  %v39_v12 = vld [vmem:[%s681_s1 + $0x18] sm:$0xff]  ;;  %v38_v13 = vld [vmem:[%s681_s1 + $0x10] sm:$0xff]  ;;  %v37_v14 = vld [vmem:[%s681_s1 + $0x8] sm:$0xff] }
   0x6   :  { %333 = vmatprep.subr.mxu0 %v49_v2  ;;  %387 = vmatprep.subr.mxu1 %v49_v2  ;;  %v36_v15 = vld [vmem:[%s681_s1] sm:$0xff]  ;;  %v21_v18 = vld [vmem:[%s682_s0 + $0x8] sm:$0xff]  ;;  %v22_v20 = vld [vmem:[%s682_s0 + $0x10] sm:$0xff] }
   0x7   :  { %334 = vmatpush3.msra.mxu0 %v49_v2  ;;  %403 = vmatpush3.msra.mxu1 %v49_v2  ;;  %v20_v16 = vld [vmem:[%s682_s0] sm:$0xff]  ;;  %v29_v19 = vld [vmem:[%s682_s0 + $0x48] sm:$0xff]  ;;  %v30_v21 = vld [vmem:[%s682_s0 + $0x50] sm:$0xff] }
   0x8   :  { %335 = vmatprep.subr.mxu0 %v48_v3  ;;  %388 = vmatprep.subr.mxu1 %v48_v3  ;;  %v28_v17 = vld [vmem:[%s682_s0 + $0x40] sm:$0xff]  ;;  %v23_v22 = vld [vmem:[%s682_s0 + $0x18] sm:$0xff]  ;;  %v25_v26 = vld [vmem:[%s682_s0 + $0x28] sm:$0xff] }
   0x9   :  { %336 = vmatpush3.msra.mxu0 %v48_v3  ;;  %404 = vmatpush3.msra.mxu1 %v48_v3  ;;  %v31_v23 = vld [vmem:[%s682_s0 + $0x58] sm:$0xff]  ;;  %v24_v24 = vld [vmem:[%s682_s0 + $0x20] sm:$0xff]  ;;  %v33_v27 = vld [vmem:[%s682_s0 + $0x68] sm:$0xff] }
   0xa   :  { %337 = vmatprep.subr.mxu0 %v47_v4  ;;  %389 = vmatprep.subr.mxu1 %v47_v4  ;;  %v32_v25 = vld [vmem:[%s682_s0 + $0x60] sm:$0xff]  ;;  %v26_v28 = vld [vmem:[%s682_s0 + $0x30] sm:$0xff]  ;;  %v27_v30 = vld [vmem:[%s682_s0 + $0x38] sm:$0xff] }
   0xb   :  { %338 = vmatpush3.msra.mxu0 %v47_v4  ;;  %405 = vmatpush3.msra.mxu1 %v47_v4  ;;  %v34_v29 = vld [vmem:[%s682_s0 + $0x70] sm:$0xff]  ;;  %v35_v31 = vld [vmem:[%s682_s0 + $0x78] sm:$0xff]  ;;  %v53_v32 = vld [vmem:[%s683_s2 + $0x8] sm:$0xff] }
   0xc   :  { %339 = vmatprep.subr.mxu0 %v46_v5  ;;  %390 = vmatprep.subr.mxu1 %v46_v5  ;;  %v549_v33 = vld [vmem:[%s684_s3] ss:$0 sm:$0xff]  ;;  %v61_v34 = vld [vmem:[%s683_s2 + $0x48] sm:$0xff]  ;;  %v55_v39 = vld [vmem:[%s683_s2 + $0x18] sm:$0xff] }
   0xd   :  { %340 = vmatpush3.msra.mxu0 %v46_v5  ;;  %406 = vmatpush3.msra.mxu1 %v46_v5  ;;  %v52_v35 = vld [vmem:[%s683_s2] sm:$0xff]  ;;  %v76_v37 = vmul.f32 %v549_v33, %v53_v32  ;;  %v84_v38 = vmul.f32 %v549_v33, %v61_v34  ;;  %v63_v42 = vld [vmem:[%s683_s2 + $0x58] sm:$0xff]  ;;  %v54_v43 = vld [vmem:[%s683_s2 + $0x10] sm:$0xff]  ;;  %v78_v54 = vmul.f32 %v549_v33, %v55_v39 }
   0xe   :  { %341 = vmatprep.subr.mxu0 %v45_v6  ;;  %391 = vmatprep.subr.mxu1 %v45_v6  ;;  %v60_v36 = vld [vmem:[%s683_s2 + $0x40] sm:$0xff]  ;;  %v75_v40 = vmul.f32 %v549_v33, %v52_v35  ;;  %v62_v44 = vld [vmem:[%s683_s2 + $0x50] sm:$0xff]  ;;  %v57_v50 = vld [vmem:[%s683_s2 + $0x28] sm:$0xff]  ;;  %v86_v55 = vmul.f32 %v549_v33, %v63_v42  ;;  %v77_v56 = vmul.f32 %v549_v33, %v54_v43 }
   0xf   :  { %342 = vmatpush3.msra.mxu0 %v45_v6  ;;  %407 = vmatpush3.msra.mxu1 %v45_v6  ;;  %v83_v41 = vmul.f32 %v549_v33, %v60_v36  ;;  %v579_v46 = vld [vmem:[%s685_s4] ss:$0 sm:$0xff]  ;;  %v65_v51 = vld [vmem:[%s683_s2 + $0x68] sm:$0xff]  ;;  %v85_v57 = vmul.f32 %v549_v33, %v62_v44  ;;  %v80_v2 = vmul.f32 %v549_v33, %v57_v50 }
  0x10   :  { %343 = vmatprep.subr.mxu0 %v44_v7  ;;  %392 = vmatprep.subr.mxu1 %v44_v7  ;;  %v56_v62 = vld [vmem:[%s683_s2 + $0x20] sm:$0xff]  ;;  %v88_v3 = vmul.f32 %v549_v33, %v65_v51 }
  0x11   :  { %344 = vmatpush3.msra.mxu0 %v44_v7  ;;  %408 = vmatpush3.msra.mxu1 %v44_v7  ;;  %v64_v63 = vld [vmem:[%s683_s2 + $0x60] sm:$0xff] }
  0x12   :  { %345 = vmatprep.subr.mxu0 %v43_v8  ;;  %393 = vmatprep.subr.mxu1 %v43_v8 }
  0x13   :  { %346 = vmatpush3.msra.mxu0 %v43_v8  ;;  %409 = vmatpush3.msra.mxu1 %v43_v8  ;;  %v59_v8 = vld [vmem:[%s683_s2 + $0x38] sm:$0xff] }
  0x14   :  { %347 = vmatprep.subr.mxu0 %v42_v9  ;;  %394 = vmatprep.subr.mxu1 %v42_v9 }
  0x15   :  { %348 = vmatpush3.msra.mxu0 %v42_v9  ;;  %410 = vmatpush3.msra.mxu1 %v42_v9  ;;  %v67_v9 = vld [vmem:[%s683_s2 + $0x78] sm:$0xff] }
  0x16   :  { %349 = vmatprep.subr.mxu0 %v41_v10  ;;  %395 = vmatprep.subr.mxu1 %v41_v10 }
  0x17   :  { %350 = vmatpush3.msra.mxu0 %v41_v10  ;;  %411 = vmatpush3.msra.mxu1 %v41_v10 }
  0x18   :  { %351 = vmatprep.subr.mxu0 %v40_v11  ;;  %396 = vmatprep.subr.mxu1 %v40_v11 }
  0x19   :  { %352 = vmatpush3.msra.mxu0 %v40_v11  ;;  %412 = vmatpush3.msra.mxu1 %v40_v11 }
  0x1a   :  { %353 = vmatprep.subr.mxu0 %v39_v12  ;;  %397 = vmatprep.subr.mxu1 %v39_v12 }
  0x1b   :  { %354 = vmatpush3.msra.mxu0 %v39_v12  ;;  %413 = vmatpush3.msra.mxu1 %v39_v12 }
  0x1c   :  { %355 = vmatprep.subr.mxu0 %v38_v13  ;;  %398 = vmatprep.subr.mxu1 %v38_v13 }
  0x1d   :  { %356 = vmatpush3.msra.mxu0 %v38_v13  ;;  %414 = vmatpush3.msra.mxu1 %v38_v13 }
  0x1e   :  { %357 = vmatprep.subr.mxu0 %v37_v14  ;;  %399 = vmatprep.subr.mxu1 %v37_v14 }
  0x1f   :  { %358 = vmatpush3.msra.mxu0 %v37_v14  ;;  %415 = vmatpush3.msra.mxu1 %v37_v14  ;;  %v79_v14 = vmul.f32 %v549_v33, %v56_v62 }
  0x20   :  { %359 = vmatprep.subr.mxu0 %v36_v15  ;;  %400 = vmatprep.subr.mxu1 %v36_v15 }
  0x21   :  { %360 = vmatpush3.msra.mxu0 %v36_v15  ;;  %416 = vmatpush3.msra.mxu1 %v36_v15  ;;  %v87_v15 = vmul.f32 %v549_v33, %v64_v63 }
  0x22   :  { %361 = vmatprep.mubr.f32.mxu0 %v20_v16  ;;  %373 = vmatprep.mubr.f32.mxu1 %v28_v17 }
  0x23   :  { %362 = vmatmul.mubr.f32.vlgmr.msra.gmra.mxu0 %v21_v18  ;;  %374 = vmatmul.mubr.f32.vlgmr.msra.gmra.mxu1 %v29_v19 }
  0x24   :  { %364 = vmatprep.mubr.f32.mxu0 %v22_v20  ;;  %376 = vmatprep.mubr.f32.mxu1 %v30_v21  ;;  %v58_v20 = vld [vmem:[%s683_s2 + $0x30] sm:$0xff] }
  0x25   :  { %v66_v21 = vld [vmem:[%s683_s2 + $0x70] sm:$0xff] }
  0x27   :  { %365 = vmatmul.mubr.f32.gmra.mxu0 %v23_v22  ;;  %377 = vmatmul.mubr.f32.gmra.mxu1 %v31_v23 }
  0x28   :  { %367 = vmatprep.mubr.f32.mxu0 %v24_v24  ;;  %379 = vmatprep.mubr.f32.mxu1 %v32_v25 }
  0x2b   :  { %368 = vmatmul.mubr.f32.gmra.mxu0 %v25_v26  ;;  %380 = vmatmul.mubr.f32.gmra.mxu1 %v33_v27  ;;  %v82_v26 = vmul.f32 %v549_v33, %v59_v8  ;;  %v90_v27 = vmul.f32 %v549_v33, %v67_v9 }
  0x2c   :  { %370 = vmatprep.mubr.f32.mxu0 %v26_v28  ;;  %382 = vmatprep.mubr.f32.mxu1 %v34_v29 }
  0x2f   :  { %371 = vmatmul.mubr.f32.gmra.mxu0 %v27_v30  ;;  %383 = vmatmul.mubr.f32.gmra.mxu1 %v35_v31 }
  0xe3   :  { %v363_v45 = vpop.f32.mrf.mxu0  ;;  %v375_v47 = vpop.f32.mrf.mxu1 }
  0xe4   :  { %v163_v48 = vadd.f32 %v363_v45, %v76_v37  ;;  %v203_v49 = vadd.f32 %v375_v47, %v84_v38  ;;  %v81_v37 = vmul.f32 %v549_v33, %v58_v20  ;;  %v89_v38 = vmul.f32 %v549_v33, %v66_v21 }
  0xe5   :  { %v157_v52 = vpop.f32.mrf.mxu0  ;;  %v197_v53 = vpop.f32.mrf.mxu1 }
  0xe6   :  { %v244_v58 = vadd.f32 %v579_v46, %v163_v48  ;;  %v252_v59 = vadd.f32 %v579_v46, %v203_v49  ;;  %v158_v60 = vadd.f32 %v157_v52, %v75_v40  ;;  %v198_v61 = vadd.f32 %v197_v53, %v83_v41 }
  0xe7   :  { %v366_v0 = vpop.f32.mrf.mxu0  ;;  %v378_v1 = vpop.f32.mrf.mxu1 }
  0xe8   :  { %v260_v4 = vmax.f32 %v244_v58, 0.0  ;;  %v268_v5 = vmax.f32 %v252_v59, 0.0  ;;  %v243_v6 = vadd.f32 %v579_v46, %v158_v60  ;;  %v251_v7 = vadd.f32 %v579_v46, %v198_v61 }
  0xe9   :  { %v173_v10 = vadd.f32 %v366_v0, %v78_v54  ;;  %v213_v11 = vadd.f32 %v378_v1, %v86_v55  ;;  %v167_v12 = vpop.f32.mrf.mxu0  ;;  %v207_v13 = vpop.f32.mrf.mxu1 }
  0xea   :  { %276 = vst [vmem:[%s686_s5 + $0x8] sm:$0xff] %v260_v4  ;;  %284 = vst [vmem:[%s686_s5 + $0x48] sm:$0xff] %v268_v5  ;;  %v259_v16 = vmax.f32 %v243_v6, 0.0  ;;  %v267_v17 = vmax.f32 %v251_v7, 0.0  ;;  %v168_v18 = vadd.f32 %v167_v12, %v77_v56  ;;  %v208_v19 = vadd.f32 %v207_v13, %v85_v57 }
  0xeb   :  { %v246_v22 = vadd.f32 %v579_v46, %v173_v10  ;;  %v254_v23 = vadd.f32 %v579_v46, %v213_v11  ;;  %v369_v24 = vpop.f32.mrf.mxu0  ;;  %v381_v25 = vpop.f32.mrf.mxu1 }
  0xec   :  { %275 = vst [vmem:[%s686_s5] sm:$0xff] %v259_v16  ;;  %283 = vst [vmem:[%s686_s5 + $0x40] sm:$0xff] %v267_v17  ;;  %v245_v28 = vadd.f32 %v579_v46, %v168_v18  ;;  %v253_v29 = vadd.f32 %v579_v46, %v208_v19  ;;  %v183_v30 = vadd.f32 %v369_v24, %v80_v2 }
  0xed   :  { %v223_v31 = vadd.f32 %v381_v25, %v88_v3  ;;  %v262_v32 = vmax.f32 %v246_v22, 0.0  ;;  %v270_v34 = vmax.f32 %v254_v23, 0.0  ;;  %v177_v35 = vpop.f32.mrf.mxu0  ;;  %v217_v36 = vpop.f32.mrf.mxu1 }
  0xee   :  { %v261_v39 = vmax.f32 %v245_v28, 0.0  ;;  %v269_v40 = vmax.f32 %v253_v29, 0.0  ;;  %v248_v41 = vadd.f32 %v579_v46, %v183_v30  ;;  %v178_v43 = vadd.f32 %v177_v35, %v79_v14 }
  0xef   :  { %v256_v42 = vadd.f32 %v579_v46, %v223_v31  ;;  %278 = vst [vmem:[%s686_s5 + $0x18] sm:$0xff] %v262_v32  ;;  %286 = vst [vmem:[%s686_s5 + $0x58] sm:$0xff] %v270_v34  ;;  %v218_v44 = vadd.f32 %v217_v36, %v87_v15  ;;  %v372_v45 = vpop.f32.mrf.mxu0  ;;  %v384_v47 = vpop.f32.mrf.mxu1 }
  0xf0   :  { %277 = vst [vmem:[%s686_s5 + $0x10] sm:$0xff] %v261_v39  ;;  %285 = vst [vmem:[%s686_s5 + $0x50] sm:$0xff] %v269_v40  ;;  %v264_v33 = vmax.f32 %v248_v41, 0.0  ;;  %v193_v49 = vadd.f32 %v372_v45, %v82_v26  ;;  %v233_v50 = vadd.f32 %v384_v47, %v90_v27  ;;  %v247_v51 = vadd.f32 %v579_v46, %v178_v43 }
  0xf1   :  { %v272_v48 = vmax.f32 %v256_v42, 0.0  ;;  %v255_v52 = vadd.f32 %v579_v46, %v218_v44  ;;  %v187_v53 = vpop.f32.mrf.mxu0  ;;  %v227_v54 = vpop.f32.mrf.mxu1 }
  0xf2   :  { %280 = vst [vmem:[%s686_s5 + $0x28] sm:$0xff] %v264_v33  ;;  %v250_v55 = vadd.f32 %v579_v46, %v193_v49  ;;  %v258_v56 = vadd.f32 %v579_v46, %v233_v50  ;;  %v188_v57 = vadd.f32 %v187_v53, %v81_v37  ;;  %v228_v58 = vadd.f32 %v227_v54, %v89_v38 }
  0xf3   :  { %288 = vst [vmem:[%s686_s5 + $0x68] sm:$0xff] %v272_v48  ;;  %v263_v59 = vmax.f32 %v247_v51, 0.0  ;;  %v271_v60 = vmax.f32 %v255_v52, 0.0 }
  0xf4   :  { %v266_v61 = vmax.f32 %v250_v55, 0.0  ;;  %v274_v62 = vmax.f32 %v258_v56, 0.0  ;;  %v249_v63 = vadd.f32 %v579_v46, %v188_v57  ;;  %v257_v0 = vadd.f32 %v579_v46, %v228_v58 }
  0xf5   :  { %279 = vst [vmem:[%s686_s5 + $0x20] sm:$0xff] %v263_v59  ;;  %287 = vst [vmem:[%s686_s5 + $0x60] sm:$0xff] %v271_v60 }
  0xf6   :  { %282 = vst [vmem:[%s686_s5 + $0x38] sm:$0xff] %v266_v61  ;;  %290 = vst [vmem:[%s686_s5 + $0x78] sm:$0xff] %v274_v62  ;;  %v265_v1 = vmax.f32 %v249_v63, 0.0  ;;  %v273_v2 = vmax.f32 %v257_v0, 0.0 }
  0xf8   :  { %281 = vst [vmem:[%s686_s5 + $0x30] sm:$0xff] %v265_v1  ;;  %289 = vst [vmem:[%s686_s5 + $0x70] sm:$0xff] %v273_v2 }

// kernel: tile.158
= control target key start
LH: loop header
LB: loop body
LE: loop exit
PB: predicated region body
PF: predicated region fallthrough
CT: control target
= control target key end

     0   :  { %s22_s0 = inlined_call_operand.vmem [shape: f32[128], index: 0, kind: input, shape index: {}]   ;;  %s23_s1 = inlined_call_operand.vmem [shape: f32[4,128], index: 1, kind: output, shape index: {}]  }
   0x1   :  { %v4_v0 = vld [vmem:[%s22_s0] ss:$0 sm:$0xff] }
   0x2   :  { %5 = vst [vmem:[%s23_s1] sm:$0xf] %v4_v0 }

// kernel: fno2d_forward.17
= control target key start
LH: loop header
LB: loop body
LE: loop exit
PB: predicated region body
PF: predicated region fallthrough
CT: control target
= control target key end

     0   :  { %vm1104_vm0 = vcmask 31744   ;;  %s2350_s2 = inlined_call_operand.vmem [shape: f32[128,128], index: 2, kind: input, shape index: {}]   ;;  %s2351_s0 = inlined_call_operand.vmem [shape: f32[128,128], index: 0, kind: input, shape index: {}]   ;;  %s2352_s5 = inlined_call_operand.vmem [shape: f32[128,512], index: 5, kind: input, shape index: {}]   ;;  %s2353_s7 = inlined_call_operand.vmem [shape: f32[512,4], index: 7, kind: input, shape index: {}]   ;;  %s2354_s1 = inlined_call_operand.vmem [shape: f32[128,128], index: 1, kind: input, shape index: {}]   ;;  %s2355_s3 = inlined_call_operand.vmem [shape: f32[1,128], index: 3, kind: input, shape index: {}]   ;;  %s2356_s4 = inlined_call_operand.vmem [shape: f32[1,128], index: 4, kind: input, shape index: {}]   ;;  %s2357_s6 = inlined_call_operand.vmem [shape: f32[1,512], index: 6, kind: input, shape index: {}]   ;;  %s2358_s8 = inlined_call_operand.vmem [shape: f32[1,4], index: 8, kind: input, shape index: {}]   ;;  %s2359_s9 = inlined_call_operand.vmem [shape: f32[128,4], index: 9, kind: output, shape index: {}]  }
   0x1   :  { %v63_v0 = vld [vmem:[%s2350_s2 + $0x78] sm:$0xff]  ;;  %v62_v1 = vld [vmem:[%s2350_s2 + $0x70] sm:$0xff]  ;;  %v61_v2 = vld [vmem:[%s2350_s2 + $0x68] sm:$0xff] }
   0x2   :  { %1320 = vmatprep.subr.mxu0 %v63_v0  ;;  %v60_v3 = vld [vmem:[%s2350_s2 + $0x60] sm:$0xff]  ;;  %v59_v5 = vld [vmem:[%s2350_s2 + $0x58] sm:$0xff]  ;;  %v58_v6 = vld [vmem:[%s2350_s2 + $0x50] sm:$0xff] }
   0x3   :  { %1321 = vmatpush3.msra.mxu0 %v63_v0  ;;  %v32_v4 = vld [vmem:[%s2351_s0] sm:$0xff]  ;;  %v57_v7 = vld [vmem:[%s2350_s2 + $0x48] sm:$0xff]  ;;  %v55_v14 = vld [vmem:[%s2350_s2 + $0x38] sm:$0xff] }
   0x4   :  { %1322 = vmatprep.subr.mxu0 %v62_v1  ;;  %1352 = vmatprep.mubr.f32.mxu0 %v32_v4  ;;  %v332_v8 = vld [vmem:[%s2352_s5 + $0x1e8] sm:$0xff]  ;;  %v331_v9 = vld [vmem:[%s2352_s5 + $0x1e0] sm:$0xff]  ;;  %v54_v18 = vld [vmem:[%s2350_s2 + $0x30] sm:$0xff] }
   0x5   :  { %1323 = vmatpush3.msra.mxu0 %v62_v1  ;;  %357 = vmatprep.subr.mxu1 %v332_v8  ;;  %v56_v10 = vld [vmem:[%s2350_s2 + $0x40] sm:$0xff]  ;;  %v328_v11 = vld [vmem:[%s2352_s5 + $0x1c8] sm:$0xff]  ;;  %v51_v27 = vld [vmem:[%s2350_s2 + $0x18] sm:$0xff] }
   0x6   :  { %1324 = vmatprep.subr.mxu0 %v61_v2  ;;  %358 = vmatpush1.msra.mxu1 %v331_v9  ;;  %v327_v12 = vld [vmem:[%s2352_s5 + $0x1c0] sm:$0xff]  ;;  %v324_v13 = vld [vmem:[%s2352_s5 + $0x1a8] sm:$0xff]  ;;  %v50_v30 = vld [vmem:[%s2350_s2 + $0x10] sm:$0xff] }
   0x7   :  { %1325 = vmatpush3.msra.mxu0 %v61_v2  ;;  %359 = vmatprep.subr.mxu1 %v328_v11  ;;  %v323_v15 = vld [vmem:[%s2352_s5 + $0x1a0] sm:$0xff]  ;;  %v320_v16 = vld [vmem:[%s2352_s5 + $0x188] sm:$0xff]  ;;  %v334_v40 = vld [vmem:[%s2352_s5 + $0x1f8] sm:$0xff] }
   0x8   :  { %1326 = vmatprep.subr.mxu0 %v60_v3  ;;  %360 = vmatpush1.msra.mxu1 %v327_v12  ;;  %v319_v17 = vld [vmem:[%s2352_s5 + $0x180] sm:$0xff]  ;;  %v316_v19 = vld [vmem:[%s2352_s5 + $0x168] sm:$0xff]  ;;  %v34_v41 = vld [vmem:[%s2351_s0 + $0x10] sm:$0xff] }
   0x9   :  { %1327 = vmatpush3.msra.mxu0 %v60_v3  ;;  %361 = vmatprep.subr.mxu1 %v324_v13  ;;  %v315_v20 = vld [vmem:[%s2352_s5 + $0x160] sm:$0xff]  ;;  %v53_v21 = vld [vmem:[%s2350_s2 + $0x28] sm:$0xff]  ;;  %v333_v42 = vld [vmem:[%s2352_s5 + $0x1f0] sm:$0xff] }
   0xa   :  { %1328 = vmatprep.subr.mxu0 %v59_v5  ;;  %362 = vmatpush1.msra.mxu1 %v323_v15  ;;  %v312_v22 = vld [vmem:[%s2352_s5 + $0x148] sm:$0xff]  ;;  %v311_v23 = vld [vmem:[%s2352_s5 + $0x140] sm:$0xff]  ;;  %v330_v43 = vld [vmem:[%s2352_s5 + $0x1d8] sm:$0xff] }
   0xb   :  { %1329 = vmatpush3.msra.mxu0 %v59_v5  ;;  %363 = vmatprep.subr.mxu1 %v320_v16  ;;  %v52_v24 = vld [vmem:[%s2350_s2 + $0x20] sm:$0xff]  ;;  %v308_v25 = vld [vmem:[%s2352_s5 + $0x128] sm:$0xff]  ;;  %v329_v45 = vld [vmem:[%s2352_s5 + $0x1d0] sm:$0xff] }
   0xc   :  { %1330 = vmatprep.subr.mxu0 %v58_v6  ;;  %364 = vmatpush1.msra.mxu1 %v319_v17  ;;  %v307_v26 = vld [vmem:[%s2352_s5 + $0x120] sm:$0xff]  ;;  %v304_v28 = vld [vmem:[%s2352_s5 + $0x108] sm:$0xff]  ;;  %v35_v47 = vld [vmem:[%s2351_s0 + $0x18] sm:$0xff] }
   0xd   :  { %1331 = vmatpush3.msra.mxu0 %v58_v6  ;;  %365 = vmatprep.subr.mxu1 %v316_v19  ;;  %v303_v29 = vld [vmem:[%s2352_s5 + $0x100] sm:$0xff]  ;;  %v300_v31 = vld [vmem:[%s2352_s5 + $0xe8] sm:$0xff]  ;;  %v326_v48 = vld [vmem:[%s2352_s5 + $0x1b8] sm:$0xff] }
   0xe   :  { %1332 = vmatprep.subr.mxu0 %v57_v7  ;;  %366 = vmatpush1.msra.mxu1 %v315_v20  ;;  %v299_v32 = vld [vmem:[%s2352_s5 + $0xe0] sm:$0xff]  ;;  %v49_v33 = vld [vmem:[%s2350_s2 + $0x8] sm:$0xff]  ;;  %v325_v50 = vld [vmem:[%s2352_s5 + $0x1b0] sm:$0xff] }
   0xf   :  { %1333 = vmatpush3.msra.mxu0 %v57_v7  ;;  %367 = vmatprep.subr.mxu1 %v312_v22  ;;  %v296_v34 = vld [vmem:[%s2352_s5 + $0xc8] sm:$0xff]  ;;  %v295_v35 = vld [vmem:[%s2352_s5 + $0xc0] sm:$0xff]  ;;  %v322_v51 = vld [vmem:[%s2352_s5 + $0x198] sm:$0xff] }
  0x10   :  { %1334 = vmatprep.subr.mxu0 %v56_v10  ;;  %368 = vmatpush1.msra.mxu1 %v311_v23  ;;  %v48_v36 = vld [vmem:[%s2350_s2] sm:$0xff]  ;;  %v292_v37 = vld [vmem:[%s2352_s5 + $0xa8] sm:$0xff]  ;;  %v321_v53 = vld [vmem:[%s2352_s5 + $0x190] sm:$0xff] }
  0x11   :  { %1335 = vmatpush3.msra.mxu0 %v56_v10  ;;  %369 = vmatprep.subr.mxu1 %v308_v25  ;;  %v291_v38 = vld [vmem:[%s2352_s5 + $0xa0] sm:$0xff]  ;;  %v33_v39 = vld [vmem:[%s2351_s0 + $0x8] sm:$0xff]  ;;  %v318_v55 = vld [vmem:[%s2352_s5 + $0x178] sm:$0xff] }
  0x12   :  { %1336 = vmatprep.subr.mxu0 %v55_v14  ;;  %370 = vmatpush1.msra.mxu1 %v307_v26  ;;  %v288_v44 = vld [vmem:[%s2352_s5 + $0x88] sm:$0xff]  ;;  %v287_v46 = vld [vmem:[%s2352_s5 + $0x80] sm:$0xff]  ;;  %v38_v56 = vld [vmem:[%s2351_s0 + $0x30] sm:$0xff] }
  0x13   :  { %1337 = vmatpush3.msra.mxu0 %v55_v14  ;;  %371 = vmatprep.subr.mxu1 %v304_v28  ;;  %v36_v49 = vld [vmem:[%s2351_s0 + $0x20] sm:$0xff]  ;;  %v284_v52 = vld [vmem:[%s2352_s5 + $0x68] sm:$0xff]  ;;  %v317_v57 = vld [vmem:[%s2352_s5 + $0x170] sm:$0xff] }
  0x14   :  { %1338 = vmatprep.subr.mxu0 %v54_v18  ;;  %372 = vmatpush1.msra.mxu1 %v303_v29  ;;  %v37_v54 = vld [vmem:[%s2351_s0 + $0x28] sm:$0xff]  ;;  %v314_v58 = vld [vmem:[%s2352_s5 + $0x158] sm:$0xff]  ;;  %v313_v59 = vld [vmem:[%s2352_s5 + $0x150] sm:$0xff] }
  0x15   :  { %1339 = vmatpush3.msra.mxu0 %v54_v18  ;;  %373 = vmatprep.subr.mxu1 %v300_v31  ;;  %v39_v60 = vld [vmem:[%s2351_s0 + $0x38] sm:$0xff]  ;;  %v40_v62 = vld [vmem:[%s2351_s0 + $0x40] sm:$0xff]  ;;  %v309_v63 = vld [vmem:[%s2352_s5 + $0x130] sm:$0xff] }
  0x16   :  { %1340 = vmatprep.subr.mxu0 %v53_v21  ;;  %374 = vmatpush1.msra.mxu1 %v299_v32  ;;  %v310_v61 = vld [vmem:[%s2352_s5 + $0x138] sm:$0xff]  ;;  %v305_v1 = vld [vmem:[%s2352_s5 + $0x110] sm:$0xff]  ;;  %v41_v2 = vld [vmem:[%s2351_s0 + $0x48] sm:$0xff]  ;;  %v1409_v32 = vmov 0.0  }
  0x17   :  { %1341 = vmatpush3.msra.mxu0 %v53_v21  ;;  %375 = vmatprep.subr.mxu1 %v296_v34  ;;  %v306_v0 = vld [vmem:[%s2352_s5 + $0x118] sm:$0xff]  ;;  %v42_v4 = vld [vmem:[%s2351_s0 + $0x50] sm:$0xff]  ;;  %v44_v10 = vld [vmem:[%s2351_s0 + $0x60] sm:$0xff] }
  0x18   :  { %1342 = vmatprep.subr.mxu0 %v52_v24  ;;  %376 = vmatpush1.msra.mxu1 %v295_v35  ;;  %v302_v3 = vld [vmem:[%s2352_s5 + $0xf8] sm:$0xff]  ;;  %v301_v5 = vld [vmem:[%s2352_s5 + $0xf0] sm:$0xff]  ;;  %v45_v14 = vld [vmem:[%s2351_s0 + $0x68] sm:$0xff] }
  0x19   :  { %1343 = vmatpush3.msra.mxu0 %v52_v24  ;;  %377 = vmatprep.subr.mxu1 %v292_v37  ;;  %v298_v6 = vld [vmem:[%s2352_s5 + $0xd8] sm:$0xff]  ;;  %v297_v7 = vld [vmem:[%s2352_s5 + $0xd0] sm:$0xff]  ;;  %v283_v18 = vld [vmem:[%s2352_s5 + $0x60] sm:$0xff] }
  0x1a   :  { %1344 = vmatprep.subr.mxu0 %v51_v27  ;;  %378 = vmatpush1.msra.mxu1 %v291_v38  ;;  %v43_v8 = vld [vmem:[%s2351_s0 + $0x58] sm:$0xff]  ;;  %v293_v11 = vld [vmem:[%s2352_s5 + $0xb0] sm:$0xff]  ;;  %v280_v20 = vld [vmem:[%s2352_s5 + $0x48] sm:$0xff] }
  0x1b   :  { %1345 = vmatpush3.msra.mxu0 %v51_v27  ;;  %379 = vmatprep.subr.mxu1 %v288_v44  ;;  %v294_v9 = vld [vmem:[%s2352_s5 + $0xb8] sm:$0xff]  ;;  %v289_v13 = vld [vmem:[%s2352_s5 + $0x90] sm:$0xff]  ;;  %v279_v22 = vld [vmem:[%s2352_s5 + $0x40] sm:$0xff] }
  0x1c   :  { %1346 = vmatprep.subr.mxu0 %v50_v30  ;;  %380 = vmatpush1.msra.mxu1 %v287_v46  ;;  %v290_v12 = vld [vmem:[%s2352_s5 + $0x98] sm:$0xff]  ;;  %v46_v16 = vld [vmem:[%s2351_s0 + $0x70] sm:$0xff]  ;;  %v276_v24 = vld [vmem:[%s2352_s5 + $0x28] sm:$0xff] }
  0x1d   :  { %1347 = vmatpush3.msra.mxu0 %v50_v30  ;;  %381 = vmatprep.subr.mxu1 %v284_v52  ;;  %v286_v15 = vld [vmem:[%s2352_s5 + $0x78] sm:$0xff]  ;;  %v285_v19 = vld [vmem:[%s2352_s5 + $0x70] sm:$0xff]  ;;  %v275_v26 = vld [vmem:[%s2352_s5 + $0x20] sm:$0xff] }
  0x1e   :  { %1348 = vmatprep.subr.mxu0 %v49_v33  ;;  %v47_v17 = vld [vmem:[%s2351_s0 + $0x78] sm:$0xff]  ;;  %382 = vmatpush1.msra.mxu1 %v283_v18  ;;  %v281_v23 = vld [vmem:[%s2352_s5 + $0x50] sm:$0xff]  ;;  %v272_v28 = vld [vmem:[%s2352_s5 + $0x8] sm:$0xff] }
  0x1f   :  { %1349 = vmatpush3.msra.mxu0 %v49_v33  ;;  %v282_v21 = vld [vmem:[%s2352_s5 + $0x58] sm:$0xff]  ;;  %383 = vmatprep.subr.mxu1 %v280_v20  ;;  %v277_v27 = vld [vmem:[%s2352_s5 + $0x30] sm:$0xff]  ;;  %v271_v30 = vld [vmem:[%s2352_s5] sm:$0xff] }
  0x20   :  { %1350 = vmatprep.subr.mxu0 %v48_v36  ;;  %384 = vmatpush1.msra.mxu1 %v279_v22  ;;  %v278_v25 = vld [vmem:[%s2352_s5 + $0x38] sm:$0xff]  ;;  %v273_v31 = vld [vmem:[%s2352_s5 + $0x10] sm:$0xff]  ;;  %v64_v35 = vld [vmem:[%s2354_s1] sm:$0xff] }
  0x21   :  { %1351 = vmatpush3.msra.mxu0 %v48_v36  ;;  %385 = vmatprep.subr.mxu1 %v276_v24  ;;  %v274_v29 = vld [vmem:[%s2352_s5 + $0x18] sm:$0xff]  ;;  %v65_v36 = vld [vmem:[%s2354_s1 + $0x8] sm:$0xff]  ;;  %v1768_v37 = vld [vmem:[%s2355_s3] ss:$0 sm:$0xff] }
  0x22   :  { %1353 = vmatmul.mubr.f32.vlgmr.msra.gmra.mxu0 %v33_v39  ;;  %518 = vmatprep.subr.mxu0 %v334_v40  ;;  %v774_v33 = vld [vmem:[%s2353_s7 + $0xf8] sm:$0xff]  ;;  %v87_v38 = vmul.f32 %v1768_v37, %v64_v35  ;;  %v88_v40 = vmul.f32 %v1768_v37, %v65_v36  ;;  %v1778_v44 = vld [vmem:[%s2356_s4] ss:$0 sm:$0xff]  ;;  %v1916_v35 = vld [vmem:[%s2353_s7 + $0x150] sm:$0xff] }
  0x23   :  { %1355 = vmatprep.mubr.f32.mxu0 %v34_v41  ;;  %519 = vmatpush1.msra.mxu0 %v333_v42  ;;  %v1756_v34 = vld [vmem:[%s2353_s7 + $0x1f8] sm:$0xff]  ;;  %v66_v42 = vld [vmem:[%s2354_s1 + $0x10] sm:$0xff]  ;;  %v768_v36 = vld [vmem:[%s2353_s7 + $0xc8] sm:$0xff] }
  0x24   :  { %520 = vmatprep.subr.mxu0 %v330_v43  ;;  %386 = vmatpush1.msra.mxu1 %v275_v26  ;;  %v1791_v52 = vld [vmem:[%s2353_s7 + $0x178] sm:$0xff]  ;;  %v1899_v26 = vld [vmem:[%s2353_s7 + $0x1d0] sm:$0xff] }
  0x25   :  { %521 = vmatpush1.msra.mxu0 %v329_v45  ;;  %387 = vmatprep.subr.mxu1 %v272_v28  ;;  %v1891_v24 = vld [vmem:[%s2353_s7 + $0x158] sm:$0xff] }
  0x26   :  { %1356 = vmatmul.mubr.f32.gmra.mxu0 %v35_v47  ;;  %522 = vmatprep.subr.mxu0 %v326_v48  ;;  %v89_v48 = vmul.f32 %v1768_v37, %v66_v42  ;;  %v73_v42 = vld [vmem:[%s2354_s1 + $0x48] sm:$0xff] }
  0x27   :  { %1358 = vmatprep.mubr.f32.mxu0 %v36_v49  ;;  %523 = vmatpush1.msra.mxu0 %v325_v50  ;;  %v67_v49 = vld [vmem:[%s2354_s1 + $0x18] sm:$0xff] }
  0x28   :  { %524 = vmatprep.subr.mxu0 %v322_v51  ;;  %388 = vmatpush1.msra.mxu1 %v271_v30  ;;  %v758_v51 = vld [vmem:[%s2353_s7 + $0x78] sm:$0xff] }
  0x29   :  { %525 = vmatpush1.msra.mxu0 %v321_v53  ;;  %421 = vmatprep.mubr.f32.mxu1 %v1409_v32  ;;  %v773_v53 = vld [vmem:[%s2353_s7 + $0xf0] sm:$0xff] }
  0x2a   :  { %1359 = vmatmul.mubr.f32.gmra.mxu0 %v37_v54  ;;  %526 = vmatprep.subr.mxu0 %v318_v55  ;;  %v1799_v54 = vld [vmem:[%s2353_s7 + $0x1f0] sm:$0xff] }
  0x2b   :  { %1361 = vmatprep.mubr.f32.mxu0 %v38_v56  ;;  %527 = vmatpush1.msra.mxu0 %v317_v57  ;;  %v90_v56 = vmul.f32 %v1768_v37, %v67_v49 }
  0x2c   :  { %528 = vmatprep.subr.mxu0 %v314_v58  ;;  %1160 = vmatprep.subr.mxu1 %v774_v33  ;;  %v753_v33 = vld [vmem:[%s2353_s7 + $0x50] sm:$0xff] }
  0x2d   :  { %529 = vmatpush1.msra.mxu0 %v313_v59  ;;  %v68_v59 = vld [vmem:[%s2354_s1 + $0x20] sm:$0xff] }
  0x2e   :  { %1362 = vmatmul.mubr.f32.gmra.mxu0 %v39_v60  ;;  %530 = vmatprep.subr.mxu0 %v310_v61  ;;  %v757_v60 = vld [vmem:[%s2353_s7 + $0x70] sm:$0xff] }
  0x2f   :  { %1364 = vmatprep.mubr.f32.mxu0 %v40_v62  ;;  %531 = vmatpush1.msra.mxu0 %v309_v63  ;;  %v1816_v61 = vld [vmem:[%s2353_s7 + $0x170] sm:$0xff]  ;;  %v772_v62 = vld [vmem:[%s2353_s7 + $0xe8] sm:$0xff] }
  0x30   :  { %532 = vmatprep.subr.mxu0 %v306_v0  ;;  %v1824_v63 = vld [vmem:[%s2353_s7 + $0x1e8] sm:$0xff] }
  0x31   :  { %533 = vmatpush1.msra.mxu0 %v305_v1 }
  0x32   :  { %1365 = vmatmul.mubr.f32.gmra.mxu0 %v41_v2  ;;  %534 = vmatprep.subr.mxu0 %v302_v3  ;;  %v91_v2 = vmul.f32 %v1768_v37, %v68_v59  ;;  %v69_v3 = vld [vmem:[%s2354_s1 + $0x28] sm:$0xff]  ;;  %v1974_v59 = vld [vmem:[%s2353_s7 + $0x1b8] sm:$0xff] }
  0x33   :  { %1367 = vmatprep.mubr.f32.mxu0 %v42_v4  ;;  %535 = vmatpush1.msra.mxu0 %v301_v5  ;;  %v756_v5 = vld [vmem:[%s2353_s7 + $0x68] sm:$0xff] }
  0x34   :  { %536 = vmatprep.subr.mxu0 %v298_v6  ;;  %v1841_v6 = vld [vmem:[%s2353_s7 + $0x168] sm:$0xff] }
  0x35   :  { %537 = vmatpush1.msra.mxu0 %v297_v7  ;;  %v771_v7 = vld [vmem:[%s2353_s7 + $0xe0] sm:$0xff] }
  0x36   :  { %1368 = vmatmul.mubr.f32.gmra.mxu0 %v43_v8  ;;  %538 = vmatprep.subr.mxu0 %v294_v9  ;;  %v1849_v8 = vld [vmem:[%s2353_s7 + $0x1e0] sm:$0xff] }
  0x37   :  { %1370 = vmatprep.mubr.f32.mxu0 %v44_v10  ;;  %539 = vmatpush1.msra.mxu0 %v293_v11  ;;  %v92_v10 = vmul.f32 %v1768_v37, %v69_v3  ;;  %v750_v3 = vld [vmem:[%s2353_s7 + $0x38] sm:$0xff] }
  0x38   :  { %540 = vmatprep.subr.mxu0 %v290_v12 }
  0x39   :  { %541 = vmatpush1.msra.mxu0 %v289_v13  ;;  %v70_v13 = vld [vmem:[%s2354_s1 + $0x30] sm:$0xff] }
  0x3a   :  { %1371 = vmatmul.mubr.f32.gmra.mxu0 %v45_v14  ;;  %542 = vmatprep.subr.mxu0 %v286_v15  ;;  %v755_v14 = vld [vmem:[%s2353_s7 + $0x60] sm:$0xff]  ;;  %v93_v20 = vmul.f32 %v1768_v37, %v70_v13 }
  0x3b   :  { %1373 = vmatprep.mubr.f32.mxu0 %v46_v16  ;;  %543 = vmatpush1.msra.mxu0 %v285_v19  ;;  %v1866_v15 = vld [vmem:[%s2353_s7 + $0x160] sm:$0xff]  ;;  %v770_v16 = vld [vmem:[%s2353_s7 + $0xd8] sm:$0xff] }
  0x3c   :  { %544 = vmatprep.subr.mxu0 %v282_v21  ;;  %v71_v21 = vld [vmem:[%s2354_s1 + $0x38] sm:$0xff]  ;;  %v76_v13 = vld [vmem:[%s2354_s1 + $0x60] sm:$0xff] }
  0x3d   :  { %545 = vmatpush1.msra.mxu0 %v281_v23  ;;  %v754_v23 = vld [vmem:[%s2353_s7 + $0x58] sm:$0xff]  ;;  %v94_v28 = vmul.f32 %v1768_v37, %v71_v21 }
  0x3e   :  { %1374 = vmatmul.mubr.f32.gmra.mxu0 %v47_v17  ;;  %546 = vmatprep.subr.mxu0 %v278_v25  ;;  %v1874_v17 = vld [vmem:[%s2353_s7 + $0x1d8] sm:$0xff]  ;;  %v769_v25 = vld [vmem:[%s2353_s7 + $0xd0] sm:$0xff] }
  0x3f   :  { %547 = vmatpush1.msra.mxu0 %v277_v27  ;;  %582 = vmatprep.mubr.f32.mxu0 %v1409_v32 }
  0x40   :  { %548 = vmatprep.subr.mxu0 %v274_v29 }
  0x41   :  { %549 = vmatpush1.msra.mxu0 %v273_v31  ;;  %v72_v31 = vld [vmem:[%s2354_s1 + $0x40] sm:$0xff] }
  0x42   :  { %1240 = vmatprep.subr.mxu0 %v1756_v34 }
  0xe2   :  { %v1354_v39 = vpop.f32.mrf.mxu0 }
  0xe3   :  { %v175_v46 = vadd.f32 %v1354_v39, %v88_v40 }
  0xe4   :  { %v169_v41 = vpop.f32.mrf.mxu0 }
  0xe5   :  { %v170_v43 = vadd.f32 %v169_v41, %v87_v38  ;;  %v256_v55 = vadd.f32 %v1778_v44, %v175_v46  ;;  %v1924_v38 = vld [vmem:[%s2353_s7 + $0x1c8] sm:$0xff]  ;;  %v95_v41 = vmul.f32 %v1768_v37, %v72_v31 }
  0xe6   :  { %v1357_v45 = vpop.f32.mrf.mxu0  ;;  %v1941_v46 = vld [vmem:[%s2353_s7 + $0x148] sm:$0xff] }
  0xe7   :  { %v255_v47 = vadd.f32 %v1778_v44, %v170_v43  ;;  %v185_v0 = vadd.f32 %v1357_v45, %v90_v56  ;;  %v752_v45 = vld [vmem:[%s2353_s7 + $0x48] sm:$0xff]  ;;  %v751_v56 = vld [vmem:[%s2353_s7 + $0x40] sm:$0xff] }
  0xe8   :  { %v179_v50 = vpop.f32.mrf.mxu0 }
  0xe9   :  { %422 = vmatmul.mubr.f32.vlgmr.msra.gmra.mxu1 %v255_v47  ;;  %583 = vmatmul.mubr.f32.vlgmr.msra.gmra.mxu0 %v255_v47  ;;  %v180_v57 = vadd.f32 %v179_v50, %v89_v48  ;;  %v258_v9 = vadd.f32 %v1778_v44, %v185_v0  ;;  %v767_v47 = vld [vmem:[%s2353_s7 + $0xc0] sm:$0xff]  ;;  %v96_v50 = vmul.f32 %v1768_v37, %v73_v42 }
  0xea   :  { %427 = vmatprep.mubr.f32.mxu1 %v1409_v32  ;;  %588 = vmatprep.mubr.f32.mxu0 %v1409_v32  ;;  %v1360_v58 = vpop.f32.mrf.mxu0  ;;  %v1949_v48 = vld [vmem:[%s2353_s7 + $0x1c0] sm:$0xff] }
  0xeb   :  { %1161 = vmatpush3.msra.mxu1 %v758_v51  ;;  %1241 = vmatpush3.msra.mxu0 %v1791_v52  ;;  %v257_v1 = vadd.f32 %v1778_v44, %v180_v57  ;;  %v195_v18 = vadd.f32 %v1360_v58, %v92_v10  ;;  %v1966_v57 = vld [vmem:[%s2353_s7 + $0x140] sm:$0xff]  ;;  %v766_v58 = vld [vmem:[%s2353_s7 + $0xb8] sm:$0xff] }
  0xec   :  { %1162 = vmatprep.subr.mxu1 %v773_v53  ;;  %1242 = vmatprep.subr.mxu0 %v1799_v54  ;;  %v189_v4 = vpop.f32.mrf.mxu0  ;;  %v2066_v42 = vld [vmem:[%s2353_s7 + $0x120] sm:$0xff] }
  0xed   :  { %428 = vmatmul.mubr.f32.gmra.mxu1 %v256_v55  ;;  %589 = vmatmul.mubr.f32.gmra.mxu0 %v256_v55  ;;  %v190_v11 = vadd.f32 %v189_v4, %v91_v2  ;;  %v260_v27 = vadd.f32 %v1778_v44, %v195_v18  ;;  %v74_v55 = vld [vmem:[%s2354_s1 + $0x50] sm:$0xff]  ;;  %v1991_v4 = vld [vmem:[%s2353_s7 + $0x138] sm:$0xff]  ;;  %v764_v18 = vld [vmem:[%s2353_s7 + $0xa8] sm:$0xff] }
  0xee   :  { %433 = vmatprep.mubr.f32.mxu1 %v1409_v32  ;;  %594 = vmatprep.mubr.f32.mxu0 %v1409_v32  ;;  %v1363_v12 = vpop.f32.mrf.mxu0  ;;  %v97_v0 = vmul.f32 %v1768_v37, %v74_v55  ;;  %v761_v55 = vld [vmem:[%s2353_s7 + $0x90] sm:$0xff] }
  0xef   :  { %1163 = vmatpush3.msra.mxu1 %v757_v60  ;;  %1243 = vmatpush3.msra.mxu0 %v1816_v61  ;;  %v259_v19 = vadd.f32 %v1778_v44, %v190_v11  ;;  %v205_v39 = vadd.f32 %v1363_v12, %v94_v28  ;;  %v2041_v28 = vld [vmem:[%s2353_s7 + $0x128] sm:$0xff] }
  0xf0   :  { %1164 = vmatprep.subr.mxu1 %v772_v62  ;;  %1244 = vmatprep.subr.mxu0 %v1824_v63  ;;  %v199_v22 = vpop.f32.mrf.mxu0 }
  0xf1   :  { %434 = vmatmul.mubr.f32.gmra.mxu1 %v257_v1  ;;  %595 = vmatmul.mubr.f32.gmra.mxu0 %v257_v1  ;;  %v200_v29 = vadd.f32 %v199_v22, %v93_v20  ;;  %v262_v49 = vadd.f32 %v1778_v44, %v205_v39  ;;  %v75_v1 = vld [vmem:[%s2354_s1 + $0x58] sm:$0xff]  ;;  %v99_v22 = vmul.f32 %v1768_v37, %v76_v13  ;;  %v2146_v13 = vld [vmem:[%s2353_s7 + $0x180] sm:$0xff] }
  0xf2   :  { %439 = vmatprep.mubr.f32.mxu1 %v1409_v32  ;;  %600 = vmatprep.mubr.f32.mxu0 %v1409_v32  ;;  %v1366_v30 = vpop.f32.mrf.mxu0  ;;  %v98_v10 = vmul.f32 %v1768_v37, %v75_v1 }
  0xf3   :  { %1165 = vmatpush3.msra.mxu1 %v756_v5  ;;  %1245 = vmatpush3.msra.mxu0 %v1841_v6  ;;  %v261_v40 = vadd.f32 %v1778_v44, %v200_v29  ;;  %v215_v60 = vadd.f32 %v1366_v30, %v96_v50  ;;  %v765_v5 = vld [vmem:[%s2353_s7 + $0xb0] sm:$0xff]  ;;  %v763_v29 = vld [vmem:[%s2353_s7 + $0xa0] sm:$0xff]  ;;  %v79_v50 = vld [vmem:[%s2354_s1 + $0x78] sm:$0xff] }
  0xf4   :  { %1166 = vmatprep.subr.mxu1 %v771_v7  ;;  %1246 = vmatprep.subr.mxu0 %v1849_v8  ;;  %v209_v43 = vpop.f32.mrf.mxu0  ;;  %v1999_v7 = vld [vmem:[%s2353_s7 + $0x1b0] sm:$0xff]  ;;  %v2049_v30 = vld [vmem:[%s2353_s7 + $0x1a0] sm:$0xff] }
  0xf5   :  { %440 = vmatmul.mubr.f32.gmra.mxu1 %v258_v9  ;;  %601 = vmatmul.mubr.f32.gmra.mxu0 %v258_v9  ;;  %v210_v51 = vadd.f32 %v209_v43, %v95_v41  ;;  %v264_v9 = vadd.f32 %v1778_v44, %v215_v60  ;;  %v747_v41 = vld [vmem:[%s2353_s7 + $0x20] sm:$0xff]  ;;  %v762_v43 = vld [vmem:[%s2353_s7 + $0x98] sm:$0xff] }
  0xf6   :  { %445 = vmatprep.mubr.f32.mxu1 %v1409_v32  ;;  %606 = vmatprep.mubr.f32.mxu0 %v1409_v32  ;;  %v1369_v53 = vpop.f32.mrf.mxu0 }
  0xf7   :  { %1167 = vmatpush3.msra.mxu1 %v755_v14  ;;  %1247 = vmatpush3.msra.mxu0 %v1866_v15  ;;  %v263_v62 = vadd.f32 %v1778_v44, %v210_v51  ;;  %v749_v14 = vld [vmem:[%s2353_s7 + $0x30] sm:$0xff]  ;;  %v225_v20 = vadd.f32 %v1369_v53, %v98_v10  ;;  %v746_v53 = vld [vmem:[%s2353_s7 + $0x18] sm:$0xff]  ;;  %v2131_v10 = vld [vmem:[%s2353_s7 + $0x188] sm:$0xff] }
  0xf8   :  { %1168 = vmatprep.subr.mxu1 %v770_v16  ;;  %1248 = vmatprep.subr.mxu0 %v1874_v17  ;;  %v219_v2 = vpop.f32.mrf.mxu0  ;;  %v2016_v16 = vld [vmem:[%s2353_s7 + $0x130] sm:$0xff] }
  0xf9   :  { %446 = vmatmul.mubr.f32.gmra.mxu1 %v259_v19  ;;  %607 = vmatmul.mubr.f32.gmra.mxu0 %v259_v19  ;;  %v220_v11 = vadd.f32 %v219_v2, %v97_v0  ;;  %v2024_v19 = vld [vmem:[%s2353_s7 + $0x1a8] sm:$0xff]  ;;  %v266_v31 = vadd.f32 %v1778_v44, %v225_v20  ;;  %v337_v20 = vlaneseq }
  0xfa   :  { %451 = vmatprep.mubr.f32.mxu1 %v1409_v32  ;;  %612 = vmatprep.mubr.f32.mxu0 %v1409_v32  ;;  %v1372_v12 = vpop.f32.mrf.mxu0  ;;  %v760_v0 = vld [vmem:[%s2353_s7 + $0x88] sm:$0xff] }
  0xfb   :  { %1169 = vmatpush3.msra.mxu1 %v754_v23  ;;  %1249 = vmatpush3.msra.mxu0 %v1891_v24  ;;  %v265_v21 = vadd.f32 %v1778_v44, %v220_v11  ;;  %v77_v23 = vld [vmem:[%s2354_s1 + $0x68] sm:$0xff] }
  0xfc   :  { %1170 = vmatprep.subr.mxu1 %v769_v25  ;;  %1250 = vmatprep.subr.mxu0 %v1899_v26  ;;  %v229_v25 = vpop.f32.mrf.mxu0  ;;  %v2137_v11 = vld [vmem:[%s2353_s7 + $0x108] sm:$0xff] }
  0xfd   :  { %452 = vmatmul.mubr.f32.gmra.mxu1 %v260_v27  ;;  %613 = vmatmul.mubr.f32.gmra.mxu0 %v260_v27  ;;  %v748_v27 = vld [vmem:[%s2353_s7 + $0x28] sm:$0xff] }
  0xfe   :  { %457 = vmatprep.mubr.f32.mxu1 %v1409_v32  ;;  %618 = vmatprep.mubr.f32.mxu0 %v1409_v32  ;;  %v1375_v39 = vpop.f32.mrf.mxu0 }
  0xff   :  { %1171 = vmatpush3.msra.mxu1 %v753_v33  ;;  %1251 = vmatpush3.msra.mxu0 %v1916_v35  ;;  %v100_v33 = vmul.f32 %v1768_v37, %v77_v23 }
 0x100   :  { %1172 = vmatprep.subr.mxu1 %v768_v36  ;;  %1252 = vmatprep.subr.mxu0 %v1924_v38  ;;  %v230_v36 = vadd.f32 %v229_v25, %v99_v22  ;;  %v239_v51 = vpop.f32.mrf.mxu0  ;;  %v335_v25 = vld [vmem:[%s2357_s6] sm:$0xf] }
 0x101   :  { %458 = vmatmul.mubr.f32.gmra.mxu1 %v261_v40  ;;  %619 = vmatmul.mubr.f32.gmra.mxu0 %v261_v40  ;;  %v78_v40 = vld [vmem:[%s2354_s1 + $0x70] sm:$0xff] }
 0x102   :  { %463 = vmatprep.mubr.f32.mxu1 %v1409_v32  ;;  %624 = vmatprep.mubr.f32.mxu0 %v1409_v32 }
 0x103   :  { %1173 = vmatpush3.msra.mxu1 %v752_v45  ;;  %1253 = vmatpush3.msra.mxu0 %v1941_v46  ;;  %v235_v45 = vadd.f32 %v1372_v12, %v100_v33  ;;  %v759_v12 = vld [vmem:[%s2353_s7 + $0x80] sm:$0xff] }
 0x104   :  { %1174 = vmatprep.subr.mxu1 %v767_v47  ;;  %1254 = vmatprep.subr.mxu0 %v1949_v48  ;;  %v267_v47 = vadd.f32 %v1778_v44, %v230_v36 }
 0x105   :  { %464 = vmatmul.mubr.f32.gmra.mxu1 %v262_v49  ;;  %625 = vmatmul.mubr.f32.gmra.mxu0 %v262_v49  ;;  %v101_v49 = vmul.f32 %v1768_v37, %v78_v40 }
 0x106   :  { %469 = vmatprep.mubr.f32.mxu1 %v1409_v32  ;;  %630 = vmatprep.mubr.f32.mxu0 %v1409_v32 }
 0x107   :  { %1175 = vmatpush3.msra.mxu1 %v751_v56  ;;  %1255 = vmatpush3.msra.mxu0 %v1966_v57  ;;  %v268_v56 = vadd.f32 %v1778_v44, %v235_v45  ;;  %v240_v60 = vadd.f32 %v239_v51, %v101_v49 }
 0x108   :  { %1176 = vmatprep.subr.mxu1 %v766_v58  ;;  %1256 = vmatprep.subr.mxu0 %v1974_v59  ;;  %v102_v58 = vmul.f32 %v1768_v37, %v79_v50 }
 0x109   :  { %470 = vmatmul.mubr.f32.gmra.mxu1 %v263_v62  ;;  %631 = vmatmul.mubr.f32.gmra.mxu0 %v263_v62  ;;  %v745_v62 = vld [vmem:[%s2353_s7 + $0x10] sm:$0xff]  ;;  %v269_v37 = vadd.f32 %v1778_v44, %v240_v60 }
 0x10a   :  { %475 = vmatprep.mubr.f32.mxu1 %v1409_v32  ;;  %636 = vmatprep.mubr.f32.mxu0 %v1409_v32  ;;  %v245_v1 = vadd.f32 %v1375_v39, %v102_v58 }
 0x10b   :  { %1177 = vmatpush3.msra.mxu1 %v750_v3  ;;  %1257 = vmatpush3.msra.mxu0 %v1991_v4  ;;  %v2104_v3 = vld [vmem:[%s2353_s7 + $0x198] sm:$0xff] }
 0x10c   :  { %1178 = vmatprep.subr.mxu1 %v765_v5  ;;  %1258 = vmatprep.subr.mxu0 %v1999_v7  ;;  %v270_v2 = vadd.f32 %v1778_v44, %v245_v1  ;;  %v2110_v5 = vld [vmem:[%s2353_s7 + $0x118] sm:$0xff]  ;;  %v2122_v44 = vld [vmem:[%s2353_s7 + $0x110] sm:$0xff] }
 0x10d   :  { %476 = vmatmul.mubr.f32.gmra.mxu1 %v264_v9  ;;  %637 = vmatmul.mubr.f32.gmra.mxu0 %v264_v9  ;;  %v744_v9 = vld [vmem:[%s2353_s7 + $0x8] sm:$0xff] }
 0x10e   :  { %481 = vmatprep.mubr.f32.mxu1 %v1409_v32  ;;  %642 = vmatprep.mubr.f32.mxu0 %v1409_v32 }
 0x10f   :  { %1179 = vmatpush3.msra.mxu1 %v749_v14  ;;  %1259 = vmatpush3.msra.mxu0 %v2016_v16  ;;  %v743_v14 = vld [vmem:[%s2353_s7] sm:$0xff] }
 0x110   :  { %1180 = vmatprep.subr.mxu1 %v764_v18  ;;  %1260 = vmatprep.subr.mxu0 %v2024_v19  ;;  %v2155_v18 = vld [vmem:[%s2353_s7 + $0x100] sm:$0xff] }
 0x111   :  { %482 = vmatmul.mubr.f32.gmra.mxu1 %v265_v21  ;;  %643 = vmatmul.mubr.f32.gmra.mxu0 %v265_v21  ;;  %v338_v21 = vshrl.u32 %v337_v20, 7 }
 0x112   :  { %487 = vmatprep.mubr.f32.mxu1 %v1409_v32  ;;  %648 = vmatprep.mubr.f32.mxu0 %v1409_v32 }
 0x113   :  { %1181 = vmatpush3.msra.mxu1 %v748_v27  ;;  %1261 = vmatpush3.msra.mxu0 %v2041_v28  ;;  %v339_v22 = vsub.s32 0, %v338_v21  ;;  %v347_v23 = vsub.s32 2, %v338_v21  ;;  %v343_v27 = vsub.s32 1, %v338_v21 }
 0x114   :  { %1182 = vmatprep.subr.mxu1 %v763_v29  ;;  %1262 = vmatprep.subr.mxu0 %v2049_v30  ;;  %v351_v29 = vsub.s32 3, %v338_v21 }
 0x115   :  { %488 = vmatmul.mubr.f32.gmra.mxu1 %v266_v31  ;;  %649 = vmatmul.mubr.f32.gmra.mxu0 %v266_v31  ;;  %v2162_v31 = vrot.slane %v335_v25, %v339_v22  ;;  %v2164_v33 = vrot.slane %v335_v25, %v347_v23  ;;  %v2166_v36 = vrot.slane %v335_v25, %v343_v27 }
 0x116   :  { %493 = vmatprep.mubr.f32.mxu1 %v1409_v32  ;;  %654 = vmatprep.mubr.f32.mxu0 %v1409_v32  ;;  %v2168_v39 = vrot.slane %v335_v25, %v351_v29 }
 0x117   :  { %1183 = vmatpush3.msra.mxu1 %v747_v41  ;;  %1263 = vmatpush3.msra.mxu0 %v2066_v42 }
 0x118   :  { %1184 = vmatprep.subr.mxu1 %v762_v43  ;;  %1264 = vmatprep.subr.mxu0 %v2104_v3 }
 0x119   :  { %494 = vmatmul.mubr.f32.gmra.mxu1 %v267_v47  ;;  %655 = vmatmul.mubr.f32.gmra.mxu0 %v267_v47 }
 0x11a   :  { %499 = vmatprep.mubr.f32.mxu1 %v1409_v32  ;;  %660 = vmatprep.mubr.f32.mxu0 %v1409_v32 }
 0x11b   :  { %1185 = vmatpush3.msra.mxu1 %v746_v53  ;;  %1265 = vmatpush3.msra.mxu0 %v2110_v5 }
 0x11c   :  { %1186 = vmatprep.subr.mxu1 %v761_v55 }
 0x11d   :  { %500 = vmatmul.mubr.f32.gmra.mxu1 %v268_v56  ;;  %661 = vmatmul.mubr.f32.gmra.mxu0 %v268_v56 }
 0x11e   :  { %505 = vmatprep.mubr.f32.mxu1 %v1409_v32  ;;  %666 = vmatprep.mubr.f32.mxu0 %v1409_v32 }
 0x11f   :  { %1187 = vmatpush3.msra.mxu1 %v745_v62 }
 0x120   :  { %1188 = vmatprep.subr.mxu1 %v760_v0 }
 0x121   :  { %506 = vmatmul.mubr.f32.gmra.mxu1 %v269_v37  ;;  %667 = vmatmul.mubr.f32.gmra.mxu0 %v269_v37 }
 0x122   :  { %511 = vmatprep.mubr.f32.mxu1 %v1409_v32  ;;  %672 = vmatprep.mubr.f32.mxu0 %v1409_v32  ;;  %v2116_v32 = vld [vmem:[%s2353_s7 + $0x190] sm:$0xff] }
 0x123   :  { %1266 = vmatprep.subr.mxu0 %v2116_v32  ;;  %1189 = vmatpush3.msra.mxu1 %v744_v9 }
 0x124   :  { %1267 = vmatpush3.msra.mxu0 %v2122_v44  ;;  %1190 = vmatprep.subr.mxu1 %v759_v12 }
 0x125   :  { %512 = vmatmul.mubr.f32.gmra.mxu1 %v270_v2  ;;  %673 = vmatmul.mubr.f32.gmra.mxu0 %v270_v2 }
 0x126   :  { %1268 = vmatprep.subr.mxu0 %v2131_v10  ;;  %1191 = vmatpush3.msra.mxu1 %v743_v14 }
 0x127   :  { %1269 = vmatpush3.msra.mxu0 %v2137_v11  ;;  %1376 = vmatprep.subr.mxu1 %v1756_v34 }
 0x128   :  { %1270 = vmatprep.subr.mxu0 %v2146_v13 }
 0x129   :  { %1271 = vmatpush3.msra.mxu0 %v2155_v18 }
 0x1a9   :  { %v423_v40 = vpop.f32.mrf.mxu1  ;;  %v584_v34 = vpop.f32.mrf.mxu0 }
 0x1aa   :  { %v424_v41 = vadd.f32 %v423_v40, %v2162_v31  ;;  %v585_v43 = vadd.f32 %v584_v34, %v2164_v33 }
 0x1ab   :  { %v425_v45 = vpop.f32.mrf.mxu1  ;;  %v586_v47 = vpop.f32.mrf.mxu0 }
 0x1ac   :  { %v426_v49 = vadd.f32 %v425_v45, %v2166_v36  ;;  %v587_v50 = vadd.f32 %v586_v47, %v2168_v39  ;;  %v679_v58 = vmax.f32 %v424_v41, 0.0  ;;  %v681_v60 = vmax.f32 %v585_v43, 0.0 }
 0x1ad   :  { %v429_v51 = vpop.f32.mrf.mxu1  ;;  %v590_v53 = vpop.f32.mrf.mxu0 }
 0x1ae   :  { %v680_v55 = vmax.f32 %v426_v49, 0.0  ;;  %v682_v56 = vmax.f32 %v587_v50, 0.0  ;;  %v430_v62 = vadd.f32 %v429_v51, %v2162_v31  ;;  %v591_v0 = vadd.f32 %v590_v53, %v2164_v33 }
 0x1af   :  { %v431_v1 = vpop.f32.mrf.mxu1  ;;  %v592_v37 = vpop.f32.mrf.mxu0 }
 0x1b0   :  { %v432_v2 = vadd.f32 %v431_v1, %v2166_v36  ;;  %v593_v9 = vadd.f32 %v592_v37, %v2168_v39  ;;  %878 = vmatprep.mubr.f32.mxu1 %v680_v55  ;;  %1023 = vmatprep.mubr.f32.mxu0 %v682_v56  ;;  %v683_v22 = vmax.f32 %v430_v62, 0.0  ;;  %v685_v23 = vmax.f32 %v591_v0, 0.0 }
 0x1b1   :  { %v435_v12 = vpop.f32.mrf.mxu1  ;;  %v596_v14 = vpop.f32.mrf.mxu0  ;;  %879 = vmatmul.mubr.f32.vlgmr.msra.gmra.mxu1 %v679_v58  ;;  %1024 = vmatmul.mubr.f32.vlgmr.msra.gmra.mxu0 %v681_v60 }
 0x1b2   :  { %v684_v20 = vmax.f32 %v432_v2, 0.0  ;;  %v686_v21 = vmax.f32 %v593_v9, 0.0  ;;  %1392 = vmatpush3.msra.mxu1 %v1791_v52  ;;  %v436_v25 = vadd.f32 %v435_v12, %v2162_v31  ;;  %v597_v27 = vadd.f32 %v596_v14, %v2164_v33 }
 0x1b3   :  { %v437_v29 = vpop.f32.mrf.mxu1  ;;  %v598_v40 = vpop.f32.mrf.mxu0  ;;  %1377 = vmatprep.subr.mxu1 %v1799_v54 }
 0x1b4   :  { %v438_v34 = vadd.f32 %v437_v29, %v2166_v36  ;;  %v599_v41 = vadd.f32 %v598_v40, %v2168_v39  ;;  %883 = vmatprep.mubr.f32.mxu1 %v684_v20  ;;  %1028 = vmatprep.mubr.f32.mxu0 %v686_v21  ;;  %v687_v49 = vmax.f32 %v436_v25, 0.0  ;;  %v689_v50 = vmax.f32 %v597_v27, 0.0 }
 0x1b5   :  { %v441_v43 = vpop.f32.mrf.mxu1  ;;  %v602_v45 = vpop.f32.mrf.mxu0  ;;  %884 = vmatmul.mubr.f32.gmra.mxu1 %v683_v22  ;;  %1029 = vmatmul.mubr.f32.gmra.mxu0 %v685_v23 }
 0x1b6   :  { %v688_v52 = vmax.f32 %v438_v34, 0.0  ;;  %v690_v47 = vmax.f32 %v599_v41, 0.0  ;;  %1393 = vmatpush3.msra.mxu1 %v1816_v61  ;;  %v442_v51 = vadd.f32 %v441_v43, %v2162_v31  ;;  %v603_v54 = vadd.f32 %v602_v45, %v2164_v33 }
 0x1b7   :  { %v443_v53 = vpop.f32.mrf.mxu1  ;;  %v604_v55 = vpop.f32.mrf.mxu0  ;;  %1378 = vmatprep.subr.mxu1 %v1824_v63 }
 0x1b8   :  { %v444_v56 = vadd.f32 %v443_v53, %v2166_v36  ;;  %v605_v58 = vadd.f32 %v604_v55, %v2168_v39  ;;  %888 = vmatprep.mubr.f32.mxu1 %v688_v52  ;;  %1033 = vmatprep.mubr.f32.mxu0 %v690_v47  ;;  %v691_v1 = vmax.f32 %v442_v51, 0.0  ;;  %v693_v37 = vmax.f32 %v603_v54, 0.0 }
 0x1b9   :  { %v447_v60 = vpop.f32.mrf.mxu1  ;;  %v608_v62 = vpop.f32.mrf.mxu0  ;;  %889 = vmatmul.mubr.f32.gmra.mxu1 %v687_v49  ;;  %1034 = vmatmul.mubr.f32.gmra.mxu0 %v689_v50 }
 0x1ba   :  { %v692_v61 = vmax.f32 %v444_v56, 0.0  ;;  %v694_v0 = vmax.f32 %v605_v58, 0.0  ;;  %1394 = vmatpush3.msra.mxu1 %v1841_v6  ;;  %v448_v2 = vadd.f32 %v447_v60, %v2162_v31  ;;  %v609_v63 = vadd.f32 %v608_v62, %v2164_v33 }
 0x1bb   :  { %v449_v9 = vpop.f32.mrf.mxu1  ;;  %v610_v12 = vpop.f32.mrf.mxu0  ;;  %1379 = vmatprep.subr.mxu1 %v1849_v8 }
 0x1bc   :  { %v450_v14 = vadd.f32 %v449_v9, %v2166_v36  ;;  %v611_v20 = vadd.f32 %v610_v12, %v2168_v39  ;;  %893 = vmatprep.mubr.f32.mxu1 %v692_v61  ;;  %1038 = vmatprep.mubr.f32.mxu0 %v694_v0  ;;  %v695_v25 = vmax.f32 %v448_v2, 0.0  ;;  %v697_v27 = vmax.f32 %v609_v63, 0.0 }
 0x1bd   :  { %v453_v21 = vpop.f32.mrf.mxu1  ;;  %v614_v22 = vpop.f32.mrf.mxu0  ;;  %894 = vmatmul.mubr.f32.gmra.mxu1 %v691_v1  ;;  %1039 = vmatmul.mubr.f32.gmra.mxu0 %v693_v37 }
 0x1be   :  { %v696_v6 = vmax.f32 %v450_v14, 0.0  ;;  %v698_v23 = vmax.f32 %v611_v20, 0.0  ;;  %1395 = vmatpush3.msra.mxu1 %v1866_v15  ;;  %v454_v29 = vadd.f32 %v453_v21, %v2162_v31  ;;  %v615_v8 = vadd.f32 %v614_v22, %v2164_v33 }
 0x1bf   :  { %v455_v40 = vpop.f32.mrf.mxu1  ;;  %v616_v34 = vpop.f32.mrf.mxu0  ;;  %1380 = vmatprep.subr.mxu1 %v1874_v17 }
 0x1c0   :  { %v456_v41 = vadd.f32 %v455_v40, %v2166_v36  ;;  %v617_v43 = vadd.f32 %v616_v34, %v2168_v39  ;;  %898 = vmatprep.mubr.f32.mxu1 %v696_v6  ;;  %1043 = vmatprep.mubr.f32.mxu0 %v698_v23  ;;  %v699_v49 = vmax.f32 %v454_v29, 0.0  ;;  %v701_v50 = vmax.f32 %v615_v8, 0.0 }
 0x1c1   :  { %v459_v45 = vpop.f32.mrf.mxu1  ;;  %v620_v52 = vpop.f32.mrf.mxu0  ;;  %899 = vmatmul.mubr.f32.gmra.mxu1 %v695_v25  ;;  %1044 = vmatmul.mubr.f32.gmra.mxu0 %v697_v27 }
 0x1c2   :  { %v700_v15 = vmax.f32 %v456_v41, 0.0  ;;  %v702_v47 = vmax.f32 %v617_v43, 0.0  ;;  %1396 = vmatpush3.msra.mxu1 %v1891_v24  ;;  %v460_v51 = vadd.f32 %v459_v45, %v2162_v31  ;;  %v621_v17 = vadd.f32 %v620_v52, %v2164_v33 }
 0x1c3   :  { %v461_v54 = vpop.f32.mrf.mxu1  ;;  %v622_v53 = vpop.f32.mrf.mxu0  ;;  %1381 = vmatprep.subr.mxu1 %v1899_v26 }
 0x1c4   :  { %v462_v55 = vadd.f32 %v461_v54, %v2166_v36  ;;  %v623_v56 = vadd.f32 %v622_v53, %v2168_v39  ;;  %903 = vmatprep.mubr.f32.mxu1 %v700_v15  ;;  %1048 = vmatprep.mubr.f32.mxu0 %v702_v47  ;;  %v703_v61 = vmax.f32 %v460_v51, 0.0  ;;  %v705_v0 = vmax.f32 %v621_v17, 0.0 }
 0x1c5   :  { %v465_v58 = vpop.f32.mrf.mxu1  ;;  %v626_v60 = vpop.f32.mrf.mxu0  ;;  %904 = vmatmul.mubr.f32.gmra.mxu1 %v699_v49  ;;  %1049 = vmatmul.mubr.f32.gmra.mxu0 %v701_v50 }
 0x1c6   :  { %v704_v24 = vmax.f32 %v462_v55, 0.0  ;;  %v706_v62 = vmax.f32 %v623_v56, 0.0  ;;  %1397 = vmatpush3.msra.mxu1 %v1916_v35  ;;  %v466_v1 = vadd.f32 %v465_v58, %v2162_v31  ;;  %v627_v26 = vadd.f32 %v626_v60, %v2164_v33 }
 0x1c7   :  { %v467_v37 = vpop.f32.mrf.mxu1  ;;  %v628_v2 = vpop.f32.mrf.mxu0  ;;  %1382 = vmatprep.subr.mxu1 %v1924_v38 }
 0x1c8   :  { %v468_v63 = vadd.f32 %v467_v37, %v2166_v36  ;;  %v629_v9 = vadd.f32 %v628_v2, %v2168_v39  ;;  %908 = vmatprep.mubr.f32.mxu1 %v704_v24  ;;  %1053 = vmatprep.mubr.f32.mxu0 %v706_v62  ;;  %v707_v21 = vmax.f32 %v466_v1, 0.0  ;;  %v709_v22 = vmax.f32 %v627_v26, 0.0 }
 0x1c9   :  { %v471_v12 = vpop.f32.mrf.mxu1  ;;  %v632_v14 = vpop.f32.mrf.mxu0  ;;  %909 = vmatmul.mubr.f32.gmra.mxu1 %v703_v61  ;;  %1054 = vmatmul.mubr.f32.gmra.mxu0 %v705_v0 }
 0x1ca   :  { %v708_v35 = vmax.f32 %v468_v63, 0.0  ;;  %v710_v20 = vmax.f32 %v629_v9, 0.0  ;;  %1398 = vmatpush3.msra.mxu1 %v1941_v46  ;;  %v472_v6 = vadd.f32 %v471_v12, %v2162_v31  ;;  %v633_v38 = vadd.f32 %v632_v14, %v2164_v33 }
 0x1cb   :  { %v473_v23 = vpop.f32.mrf.mxu1  ;;  %v634_v25 = vpop.f32.mrf.mxu0  ;;  %1383 = vmatprep.subr.mxu1 %v1949_v48 }
 0x1cc   :  { %v474_v27 = vadd.f32 %v473_v23, %v2166_v36  ;;  %v635_v29 = vadd.f32 %v634_v25, %v2168_v39  ;;  %913 = vmatprep.mubr.f32.mxu1 %v708_v35  ;;  %1058 = vmatprep.mubr.f32.mxu0 %v710_v20  ;;  %v711_v41 = vmax.f32 %v472_v6, 0.0  ;;  %v713_v43 = vmax.f32 %v633_v38, 0.0 }
 0x1cd   :  { %v477_v8 = vpop.f32.mrf.mxu1  ;;  %v638_v40 = vpop.f32.mrf.mxu0  ;;  %914 = vmatmul.mubr.f32.gmra.mxu1 %v707_v21  ;;  %1059 = vmatmul.mubr.f32.gmra.mxu0 %v709_v22 }
 0x1ce   :  { %v712_v46 = vmax.f32 %v474_v27, 0.0  ;;  %v714_v34 = vmax.f32 %v635_v29, 0.0  ;;  %1399 = vmatpush3.msra.mxu1 %v1966_v57  ;;  %v478_v45 = vadd.f32 %v477_v8, %v2162_v31  ;;  %v639_v48 = vadd.f32 %v638_v40, %v2164_v33 }
 0x1cf   :  { %v479_v52 = vpop.f32.mrf.mxu1  ;;  %v640_v15 = vpop.f32.mrf.mxu0  ;;  %1384 = vmatprep.subr.mxu1 %v1974_v59 }
 0x1d0   :  { %v480_v47 = vadd.f32 %v479_v52, %v2166_v36  ;;  %v641_v49 = vadd.f32 %v640_v15, %v2168_v39  ;;  %918 = vmatprep.mubr.f32.mxu1 %v712_v46  ;;  %1063 = vmatprep.mubr.f32.mxu0 %v714_v34  ;;  %v715_v54 = vmax.f32 %v478_v45, 0.0  ;;  %v717_v53 = vmax.f32 %v639_v48, 0.0 }
 0x1d1   :  { %v483_v50 = vpop.f32.mrf.mxu1  ;;  %v644_v51 = vpop.f32.mrf.mxu0  ;;  %919 = vmatmul.mubr.f32.gmra.mxu1 %v711_v41  ;;  %1064 = vmatmul.mubr.f32.gmra.mxu0 %v713_v43 }
 0x1d2   :  { %v716_v57 = vmax.f32 %v480_v47, 0.0  ;;  %v718_v17 = vmax.f32 %v641_v49, 0.0  ;;  %1400 = vmatpush3.msra.mxu1 %v1991_v4  ;;  %v484_v55 = vadd.f32 %v483_v50, %v2162_v31  ;;  %v645_v59 = vadd.f32 %v644_v51, %v2164_v33 }
 0x1d3   :  { %v485_v56 = vpop.f32.mrf.mxu1  ;;  %v646_v58 = vpop.f32.mrf.mxu0  ;;  %1385 = vmatprep.subr.mxu1 %v1999_v7 }
 0x1d4   :  { %v486_v60 = vadd.f32 %v485_v56, %v2166_v36  ;;  %v647_v24 = vadd.f32 %v646_v58, %v2168_v39  ;;  %923 = vmatprep.mubr.f32.mxu1 %v716_v57  ;;  %1068 = vmatprep.mubr.f32.mxu0 %v718_v17  ;;  %v719_v1 = vmax.f32 %v484_v55, 0.0  ;;  %v721_v26 = vmax.f32 %v645_v59, 0.0 }
 0x1d5   :  { %v489_v62 = vpop.f32.mrf.mxu1  ;;  %v650_v61 = vpop.f32.mrf.mxu0  ;;  %924 = vmatmul.mubr.f32.gmra.mxu1 %v715_v54  ;;  %1069 = vmatmul.mubr.f32.gmra.mxu0 %v717_v53 }
 0x1d6   :  { %v720_v4 = vmax.f32 %v486_v60, 0.0  ;;  %v722_v0 = vmax.f32 %v647_v24, 0.0  ;;  %1401 = vmatpush3.msra.mxu1 %v2016_v16  ;;  %v490_v37 = vadd.f32 %v489_v62, %v2162_v31  ;;  %v651_v7 = vadd.f32 %v650_v61, %v2164_v33 }
 0x1d7   :  { %v491_v2 = vpop.f32.mrf.mxu1  ;;  %v652_v63 = vpop.f32.mrf.mxu0  ;;  %1386 = vmatprep.subr.mxu1 %v2024_v19 }
 0x1d8   :  { %v492_v9 = vadd.f32 %v491_v2, %v2166_v36  ;;  %v653_v12 = vadd.f32 %v652_v63, %v2168_v39  ;;  %928 = vmatprep.mubr.f32.mxu1 %v720_v4  ;;  %1073 = vmatprep.mubr.f32.mxu0 %v722_v0  ;;  %v723_v21 = vmax.f32 %v490_v37, 0.0  ;;  %v725_v22 = vmax.f32 %v651_v7, 0.0 }
 0x1d9   :  { %v495_v14 = vpop.f32.mrf.mxu1  ;;  %v656_v35 = vpop.f32.mrf.mxu0  ;;  %929 = vmatmul.mubr.f32.gmra.mxu1 %v719_v1  ;;  %1074 = vmatmul.mubr.f32.gmra.mxu0 %v721_v26  ;;  %v2268_v1 = vld [vmem:[%s2358_s8] ss:$0 sm:$0xff] }
 0x1da   :  { %v724_v16 = vmax.f32 %v492_v9, 0.0  ;;  %v726_v20 = vmax.f32 %v653_v12, 0.0  ;;  %1402 = vmatpush3.msra.mxu1 %v2041_v28  ;;  %v496_v6 = vadd.f32 %v495_v14, %v2162_v31  ;;  %v657_v50 = vadd.f32 %v656_v35, %v2164_v33 }
 0x1db   :  { %v497_v38 = vpop.f32.mrf.mxu1  ;;  %v658_v19 = vpop.f32.mrf.mxu0  ;;  %1387 = vmatprep.subr.mxu1 %v2049_v30 }
 0x1dc   :  { %v498_v23 = vadd.f32 %v497_v38, %v2166_v36  ;;  %933 = vmatprep.mubr.f32.mxu1 %v724_v16  ;;  %1078 = vmatprep.mubr.f32.mxu0 %v726_v20  ;;  %v727_v28 = vmax.f32 %v496_v6, 0.0  ;;  %v659_v47 = vadd.f32 %v658_v19, %v2168_v39 }
 0x1dd   :  { %v501_v25 = vpop.f32.mrf.mxu1  ;;  %v662_v27 = vpop.f32.mrf.mxu0  ;;  %934 = vmatmul.mubr.f32.gmra.mxu1 %v723_v21  ;;  %1079 = vmatmul.mubr.f32.gmra.mxu0 %v725_v22 }
 0x1de   :  { %v728_v29 = vmax.f32 %v498_v23, 0.0  ;;  %1403 = vmatpush3.msra.mxu1 %v2066_v42  ;;  %v502_v8 = vadd.f32 %v501_v25, %v2162_v31  ;;  %v730_v57 = vmax.f32 %v659_v47, 0.0  ;;  %v663_v17 = vadd.f32 %v662_v27, %v2164_v33 }
 0x1df   :  { %v503_v40 = vpop.f32.mrf.mxu1  ;;  %1388 = vmatprep.subr.mxu1 %v2104_v3  ;;  %v664_v30 = vpop.f32.mrf.mxu0 }
 0x1e0   :  { %v504_v46 = vadd.f32 %v503_v40, %v2166_v36  ;;  %938 = vmatprep.mubr.f32.mxu1 %v728_v29  ;;  %1404 = vmatpush3.msra.mxu1 %v2110_v5  ;;  %v731_v42 = vmax.f32 %v502_v8, 0.0  ;;  %v733_v55 = vmax.f32 %v663_v17, 0.0 }
 0x1e1   :  { %v507_v34 = vpop.f32.mrf.mxu1  ;;  %939 = vmatmul.mubr.f32.gmra.mxu1 %v727_v28  ;;  %1389 = vmatprep.subr.mxu1 %v2116_v32  ;;  %v668_v5 = vpop.f32.mrf.mxu0 }
 0x1e2   :  { %v732_v41 = vmax.f32 %v504_v46, 0.0  ;;  %1405 = vmatpush3.msra.mxu1 %v2122_v44  ;;  %v508_v43 = vadd.f32 %v507_v34, %v2162_v31  ;;  %v669_v59 = vadd.f32 %v668_v5, %v2164_v33 }
 0x1e3   :  { %v509_v45 = vpop.f32.mrf.mxu1  ;;  %1390 = vmatprep.subr.mxu1 %v2131_v10  ;;  %v670_v49 = vpop.f32.mrf.mxu0 }
 0x1e4   :  { %v510_v3 = vadd.f32 %v509_v45, %v2166_v36  ;;  %943 = vmatprep.mubr.f32.mxu1 %v732_v41  ;;  %1406 = vmatpush3.msra.mxu1 %v2137_v11  ;;  %v735_v44 = vmax.f32 %v508_v43, 0.0  ;;  %v737_v60 = vmax.f32 %v669_v59, 0.0 }
 0x1e5   :  { %v513_v48 = vpop.f32.mrf.mxu1  ;;  %944 = vmatmul.mubr.f32.gmra.mxu1 %v731_v42  ;;  %1391 = vmatprep.subr.mxu1 %v2146_v13  ;;  %v665_v13 = vadd.f32 %v664_v30, %v2168_v39 }
 0x1e6   :  { %v736_v32 = vmax.f32 %v510_v3, 0.0  ;;  %1407 = vmatpush3.msra.mxu1 %v2155_v18  ;;  %v514_v52 = vadd.f32 %v513_v48, %v2162_v31  ;;  %v674_v18 = vpop.f32.mrf.mxu0  ;;  %v729_v31 = vmax.f32 %v657_v50, 0.0 }
 0x1e7   :  { %v515_v15 = vpop.f32.mrf.mxu1  ;;  %v734_v54 = vmax.f32 %v665_v13, 0.0  ;;  %v675_v24 = vadd.f32 %v674_v18, %v2164_v33 }
 0x1e8   :  { %v516_v10 = vadd.f32 %v515_v15, %v2166_v36  ;;  %948 = vmatprep.mubr.f32.mxu1 %v736_v32  ;;  %v739_v51 = vmax.f32 %v514_v52, 0.0  ;;  %v671_v36 = vadd.f32 %v670_v49, %v2168_v39  ;;  %v676_v53 = vpop.f32.mrf.mxu0 }
 0x1e9   :  { %949 = vmatmul.mubr.f32.gmra.mxu1 %v735_v44  ;;  %v677_v58 = vadd.f32 %v676_v53, %v2168_v39  ;;  %v741_v61 = vmax.f32 %v675_v24, 0.0 }
 0x1ea   :  { %v740_v11 = vmax.f32 %v516_v10, 0.0  ;;  %v738_v56 = vmax.f32 %v671_v36, 0.0 }
 0x1eb   :  { %v742_v62 = vmax.f32 %v677_v58, 0.0 }
 0x1ec   :  { %953 = vmatprep.mubr.f32.mxu1 %v740_v11 }
 0x1ed   :  { %954 = vmatmul.mubr.f32.gmra.mxu1 %v739_v51 }
 0x1ee   :  { %1083 = vmatprep.mubr.f32.mxu1 %v730_v57 }
 0x1f1   :  { %1084 = vmatmul.mubr.f32.vlgmr.msra.gmra.mxu1 %v729_v31 }
 0x1f2   :  { %1088 = vmatprep.mubr.f32.mxu1 %v734_v54 }
 0x1f5   :  { %1089 = vmatmul.mubr.f32.gmra.mxu1 %v733_v55 }
 0x1f6   :  { %1093 = vmatprep.mubr.f32.mxu1 %v738_v56 }
 0x1f9   :  { %1094 = vmatmul.mubr.f32.gmra.mxu1 %v737_v60 }
 0x1fa   :  { %1098 = vmatprep.mubr.f32.mxu1 %v742_v62 }
 0x1fd   :  { %1099 = vmatmul.mubr.f32.gmra.mxu1 %v741_v61 }
 0x271   :  { %v1192_v4 = vpop.f32.mrf.mxu1  ;;  %v1272_v0 = vpop.f32.mrf.mxu0 }
 0x273   :  { %v1193_v26 = vpop.f32.mrf.mxu1  ;;  %v1273_v37 = vpop.f32.mrf.mxu0 }
 0x274   :  { %v1194_v39 = vadd.f32 %v1193_v26, %v1192_v4  ;;  %v1274_v33 = vadd.f32 %v1273_v37, %v1272_v0 }
 0x275   :  { %v1195_v7 = vpop.f32.mrf.mxu1  ;;  %v1275_v2 = vpop.f32.mrf.mxu0 }
 0x276   :  { %v881_v63 = vadd.f32 %v1194_v39, %v2268_v1 }
 0x277   :  { %v1196_v9 = vpop.f32.mrf.mxu1  ;;  %v1276_v12 = vpop.f32.mrf.mxu0 }
 0x278   :  { %v1026_v14 = vadd.f32 %v1274_v33, %v881_v63  ;;  %v1197_v35 = vadd.f32 %v1196_v9, %v1195_v7  ;;  %v1277_v22 = vadd.f32 %v1276_v12, %v1275_v2 }
 0x279   :  { %v1198_v16 = vpop.f32.mrf.mxu1  ;;  %v1278_v20 = vpop.f32.mrf.mxu0 }
 0x27a   :  { %1105 = vst.msk [vmem:[%s2359_s9] sm:$0xff] %vm1104_vm0, %v1026_v14  ;;  %v886_v21 = vadd.f32 %v1197_v35, %v2268_v1 }
 0x27b   :  { %v1199_v6 = vpop.f32.mrf.mxu1  ;;  %v1279_v38 = vpop.f32.mrf.mxu0 }
 0x27c   :  { %v1031_v19 = vadd.f32 %v1277_v22, %v886_v21  ;;  %v1200_v23 = vadd.f32 %v1199_v6, %v1198_v16  ;;  %v1280_v28 = vadd.f32 %v1279_v38, %v1278_v20 }
 0x27d   :  { %v1201_v25 = vpop.f32.mrf.mxu1  ;;  %v1281_v27 = vpop.f32.mrf.mxu0 }
 0x27e   :  { %1106 = vst.msk [vmem:[%s2359_s9 + $0x8] sm:$0xff] %vm1104_vm0, %v1031_v19  ;;  %v891_v29 = vadd.f32 %v1200_v23, %v2268_v1 }
 0x27f   :  { %v1202_v8 = vpop.f32.mrf.mxu1  ;;  %v1282_v40 = vpop.f32.mrf.mxu0 }
 0x280   :  { %v1036_v46 = vadd.f32 %v1280_v28, %v891_v29  ;;  %v1203_v30 = vadd.f32 %v1202_v8, %v1201_v25  ;;  %v1283_v43 = vadd.f32 %v1282_v40, %v1281_v27 }
 0x281   :  { %v1204_v34 = vpop.f32.mrf.mxu1  ;;  %v1284_v41 = vpop.f32.mrf.mxu0 }
 0x282   :  { %1107 = vst.msk [vmem:[%s2359_s9 + $0x10] sm:$0xff] %vm1104_vm0, %v1036_v46  ;;  %v896_v42 = vadd.f32 %v1203_v30, %v2268_v1 }
 0x283   :  { %v1205_v45 = vpop.f32.mrf.mxu1  ;;  %v1285_v3 = vpop.f32.mrf.mxu0 }
 0x284   :  { %v1041_v5 = vadd.f32 %v1283_v43, %v896_v42  ;;  %v1206_v48 = vadd.f32 %v1205_v45, %v1204_v34  ;;  %v1286_v15 = vadd.f32 %v1285_v3, %v1284_v41 }
 0x285   :  { %v1207_v32 = vpop.f32.mrf.mxu1  ;;  %v1287_v44 = vpop.f32.mrf.mxu0 }
 0x286   :  { %1108 = vst.msk [vmem:[%s2359_s9 + $0x18] sm:$0xff] %vm1104_vm0, %v1041_v5  ;;  %v901_v52 = vadd.f32 %v1206_v48, %v2268_v1 }
 0x287   :  { %v1208_v47 = vpop.f32.mrf.mxu1  ;;  %v1288_v10 = vpop.f32.mrf.mxu0 }
 0x288   :  { %v1046_v49 = vadd.f32 %v1286_v15, %v901_v52  ;;  %v1209_v11 = vadd.f32 %v1208_v47, %v1207_v32  ;;  %v1289_v13 = vadd.f32 %v1288_v10, %v1287_v44 }
 0x289   :  { %v1210_v50 = vpop.f32.mrf.mxu1  ;;  %v1290_v51 = vpop.f32.mrf.mxu0 }
 0x28a   :  { %1109 = vst.msk [vmem:[%s2359_s9 + $0x20] sm:$0xff] %vm1104_vm0, %v1046_v49  ;;  %v906_v57 = vadd.f32 %v1209_v11, %v2268_v1 }
 0x28b   :  { %v1211_v18 = vpop.f32.mrf.mxu1  ;;  %v1291_v31 = vpop.f32.mrf.mxu0 }
 0x28c   :  { %v1051_v17 = vadd.f32 %v1289_v13, %v906_v57  ;;  %v1212_v54 = vadd.f32 %v1211_v18, %v1210_v50  ;;  %v1292_v59 = vadd.f32 %v1291_v31, %v1290_v51 }
 0x28d   :  { %v1213_v36 = vpop.f32.mrf.mxu1  ;;  %v1293_v53 = vpop.f32.mrf.mxu0 }
 0x28e   :  { %1110 = vst.msk [vmem:[%s2359_s9 + $0x28] sm:$0xff] %vm1104_vm0, %v1051_v17  ;;  %v911_v55 = vadd.f32 %v1212_v54, %v2268_v1 }
 0x28f   :  { %v1214_v56 = vpop.f32.mrf.mxu1  ;;  %v1294_v58 = vpop.f32.mrf.mxu0 }
 0x290   :  { %v1056_v60 = vadd.f32 %v1292_v59, %v911_v55  ;;  %v1215_v24 = vadd.f32 %v1214_v56, %v1213_v36  ;;  %v1295_v0 = vadd.f32 %v1294_v58, %v1293_v53 }
 0x291   :  { %v1216_v62 = vpop.f32.mrf.mxu1  ;;  %v1296_v61 = vpop.f32.mrf.mxu0 }
 0x292   :  { %1111 = vst.msk [vmem:[%s2359_s9 + $0x30] sm:$0xff] %vm1104_vm0, %v1056_v60  ;;  %v916_v4 = vadd.f32 %v1215_v24, %v2268_v1 }
 0x293   :  { %v1217_v26 = vpop.f32.mrf.mxu1  ;;  %v1297_v37 = vpop.f32.mrf.mxu0 }
 0x294   :  { %v1061_v39 = vadd.f32 %v1295_v0, %v916_v4  ;;  %v1218_v7 = vadd.f32 %v1217_v26, %v1216_v62  ;;  %v1298_v9 = vadd.f32 %v1297_v37, %v1296_v61 }
 0x295   :  { %v1219_v2 = vpop.f32.mrf.mxu1  ;;  %v1299_v63 = vpop.f32.mrf.mxu0 }
 0x296   :  { %1112 = vst.msk [vmem:[%s2359_s9 + $0x38] sm:$0xff] %vm1104_vm0, %v1061_v39  ;;  %v921_v33 = vadd.f32 %v1218_v7, %v2268_v1 }
 0x297   :  { %v1220_v12 = vpop.f32.mrf.mxu1  ;;  %v1300_v14 = vpop.f32.mrf.mxu0 }
 0x298   :  { %v1066_v35 = vadd.f32 %v1298_v9, %v921_v33  ;;  %v1221_v16 = vadd.f32 %v1220_v12, %v1219_v2  ;;  %v1301_v6 = vadd.f32 %v1300_v14, %v1299_v63 }
 0x299   :  { %v1222_v20 = vpop.f32.mrf.mxu1  ;;  %v1302_v21 = vpop.f32.mrf.mxu0 }
 0x29a   :  { %1113 = vst.msk [vmem:[%s2359_s9 + $0x40] sm:$0xff] %vm1104_vm0, %v1066_v35  ;;  %v926_v22 = vadd.f32 %v1221_v16, %v2268_v1 }
 0x29b   :  { %v1223_v38 = vpop.f32.mrf.mxu1  ;;  %v1303_v19 = vpop.f32.mrf.mxu0 }
 0x29c   :  { %v1071_v23 = vadd.f32 %v1301_v6, %v926_v22  ;;  %v1224_v25 = vadd.f32 %v1223_v38, %v1222_v20  ;;  %v1304_v8 = vadd.f32 %v1303_v19, %v1302_v21 }
 0x29d   :  { %v1225_v27 = vpop.f32.mrf.mxu1  ;;  %v1305_v29 = vpop.f32.mrf.mxu0 }
 0x29e   :  { %1114 = vst.msk [vmem:[%s2359_s9 + $0x48] sm:$0xff] %vm1104_vm0, %v1071_v23  ;;  %v931_v28 = vadd.f32 %v1224_v25, %v2268_v1 }
 0x29f   :  { %v1226_v40 = vpop.f32.mrf.mxu1  ;;  %v1306_v46 = vpop.f32.mrf.mxu0 }
 0x2a0   :  { %v1076_v30 = vadd.f32 %v1304_v8, %v931_v28  ;;  %v1227_v34 = vadd.f32 %v1226_v40, %v1225_v27  ;;  %v1307_v43 = vadd.f32 %v1306_v46, %v1305_v29 }
 0x2a1   :  { %v1228_v41 = vpop.f32.mrf.mxu1 }
 0x2a2   :  { %1115 = vst.msk [vmem:[%s2359_s9 + $0x50] sm:$0xff] %vm1104_vm0, %v1076_v30  ;;  %v936_v42 = vadd.f32 %v1227_v34, %v2268_v1 }
 0x2a3   :  { %v1229_v45 = vpop.f32.mrf.mxu1 }
 0x2a4   :  { %v1081_v3 = vadd.f32 %v1307_v43, %v936_v42  ;;  %v1230_v47 = vadd.f32 %v1229_v45, %v1228_v41 }
 0x2a5   :  { %v1231_v5 = vpop.f32.mrf.mxu1 }
 0x2a6   :  { %1116 = vst.msk [vmem:[%s2359_s9 + $0x58] sm:$0xff] %vm1104_vm0, %v1081_v3  ;;  %v941_v11 = vadd.f32 %v1230_v47, %v2268_v1 }
 0x2a7   :  { %v1232_v48 = vpop.f32.mrf.mxu1 }
 0x2a8   :  { %v1233_v50 = vadd.f32 %v1232_v48, %v1231_v5 }
 0x2a9   :  { %v1234_v32 = vpop.f32.mrf.mxu1 }
 0x2aa   :  { %v946_v31 = vadd.f32 %v1233_v50, %v2268_v1 }
 0x2ab   :  { %v1235_v44 = vpop.f32.mrf.mxu1 }
 0x2ac   :  { %v1236_v17 = vadd.f32 %v1235_v44, %v1234_v32 }
 0x2ad   :  { %v1237_v52 = vpop.f32.mrf.mxu1 }
 0x2ae   :  { %v951_v59 = vadd.f32 %v1236_v17, %v2268_v1 }
 0x2af   :  { %v1238_v15 = vpop.f32.mrf.mxu1 }
 0x2b0   :  { %v1239_v56 = vadd.f32 %v1238_v15, %v1237_v52 }
 0x2b1   :  { %v1308_v10 = vpop.f32.mrf.mxu1 }
 0x2b2   :  { %v956_v61 = vadd.f32 %v1239_v56, %v2268_v1 }
 0x2b3   :  { %v1309_v49 = vpop.f32.mrf.mxu1 }
 0x2b4   :  { %v1310_v51 = vadd.f32 %v1309_v49, %v1308_v10 }
 0x2b5   :  { %v1311_v57 = vpop.f32.mrf.mxu1 }
 0x2b6   :  { %v1086_v13 = vadd.f32 %v1310_v51, %v941_v11 }
 0x2b7   :  { %v1312_v18 = vpop.f32.mrf.mxu1 }
 0x2b8   :  { %1117 = vst.msk [vmem:[%s2359_s9 + $0x60] sm:$0xff] %vm1104_vm0, %v1086_v13  ;;  %v1313_v54 = vadd.f32 %v1312_v18, %v1311_v57 }
 0x2b9   :  { %v1314_v36 = vpop.f32.mrf.mxu1 }
 0x2ba   :  { %v1091_v53 = vadd.f32 %v1313_v54, %v946_v31 }
 0x2bb   :  { %v1315_v55 = vpop.f32.mrf.mxu1 }
 0x2bc   :  { %1118 = vst.msk [vmem:[%s2359_s9 + $0x68] sm:$0xff] %vm1104_vm0, %v1091_v53  ;;  %v1316_v58 = vadd.f32 %v1315_v55, %v1314_v36 }
 0x2bd   :  { %v1317_v60 = vpop.f32.mrf.mxu1 }
 0x2be   :  { %v1096_v24 = vadd.f32 %v1316_v58, %v951_v59 }
 0x2bf   :  { %v1318_v62 = vpop.f32.mrf.mxu1 }
 0x2c0   :  { %1119 = vst.msk [vmem:[%s2359_s9 + $0x70] sm:$0xff] %vm1104_vm0, %v1096_v24  ;;  %v1319_v4 = vadd.f32 %v1318_v62, %v1317_v60 }
 0x2c2   :  { %v1101_v0 = vadd.f32 %v1319_v4, %v956_v61 }
 0x2c4   :  { %1120 = vst.msk [vmem:[%s2359_s9 + $0x78] sm:$0xff] %vm1104_vm0, %v1101_v0 }

</bundles_post_ra>
